<compile_context>
chip_gen: v6e
topology: v6e:2x2x1
jax: 0.10.0
libtpu: 0.0.40
codegen_flags: <defaults>
</compile_context>

<pallas_src>
import functools

import jax
import jax.numpy as jnp
from jax.experimental import pallas as pl
from jax.experimental.pallas import tpu as pltpu

FEATURE_CFG = [32, "M", 64, "M", 512, "M"]   # VGG-style make_layers cfg (small)
IN_CHANNELS = 3
IN_HW = 8
NUM_CLASSES = 10


# ----------------------------------------------------------------------------
# Fused kernel body (runs once per sample; everything stays in VMEM/vregs)
# ----------------------------------------------------------------------------
def _conv3x3_relu_pool(x, w_ref, b_ref, H, W, Cout, do_pool):
    """One conv3x3(pad=1,stride=1)+ReLU[+maxpool2x2] stage for a single sample.

    x     : (H, W*Cin) f32 activation, lanes = (w-major, c-minor)
    w_ref : (3, W*Cin, W*Cout) bf16 banded weight matrices (one per kh)
    b_ref : (1, W*Cout) f32 bias tiled across w
    """
    WC = x.shape[1]
    zrow = jnp.zeros((1, WC), jnp.float32)
    # Row h of x_m / x_p holds x[h-1] / x[h+1]; the zero rows realise pad=1 in h.
    x_m = jnp.concatenate([zrow, x[:-1, :]], axis=0)
    x_p = jnp.concatenate([x[1:, :], zrow], axis=0)

    acc = jnp.dot(x_m.astype(jnp.bfloat16), w_ref[0],
                  preferred_element_type=jnp.float32)
    acc += jnp.dot(x.astype(jnp.bfloat16), w_ref[1],
                   preferred_element_type=jnp.float32)
    acc += jnp.dot(x_p.astype(jnp.bfloat16), w_ref[2],
                   preferred_element_type=jnp.float32)
    y = jnp.maximum(acc + b_ref[...], 0.0)                     # (H, W*Cout)

    if not do_pool:
        return y

    Wo, Ho = W // 2, H // 2
    # max over w: adjacent lane blocks of width Cout
    wp = [jnp.maximum(y[:, (2 * wo) * Cout:(2 * wo + 1) * Cout],
                      y[:, (2 * wo + 1) * Cout:(2 * wo + 2) * Cout])
          for wo in range(Wo)]
    yw = wp[0] if Wo == 1 else jnp.concatenate(wp, axis=1)     # (H, Wo*Cout)
    # max over h: adjacent row pairs
    hp = [jnp.maximum(yw[2 * ho:2 * ho + 1, :], yw[2 * ho + 1:2 * ho + 2, :])
          for ho in range(Ho)]
    return hp[0] if Ho == 1 else jnp.concatenate(hp, axis=0)   # (Ho, Wo*Cout)


def _make_vgg_kernel(layer_meta):
    """layer_meta: tuple of (H, W, Cout, do_pool) per conv layer (per-sample)."""
    n_conv = len(layer_meta)

    def kernel(*refs):
        x_ref = refs[0]
        conv_refs = refs[1:1 + 2 * n_conv]
        fw1, fb1, fw2, fb2, fw3, fb3 = refs[1 + 2 * n_conv:-1]
        out_ref = refs[-1]

        x = x_ref[...]                                         # (H0, W0*Cin0) f32
        for li, (H, W, Cout, do_pool) in enumerate(layer_meta):
            x = _conv3x3_relu_pool(x, conv_refs[2 * li], conv_refs[2 * li + 1],
                                   H, W, Cout, do_pool)
        # x is now (1, 512): identical ordering to PyTorch's flatten of (512,1,1).

        # classifier: Dropout -> Linear -> ReLU -> Dropout -> Linear -> ReLU -> Linear
        # TODO(synk): training-mode dropout RNG not implemented (identity at eval).
        a = jnp.maximum(
            jnp.dot(x.astype(jnp.bfloat16), fw1[...],
                    preferred_element_type=jnp.float32) + fb1[...], 0.0)
        a = jnp.maximum(
            jnp.dot(a.astype(jnp.bfloat16), fw2[...],
                    preferred_element_type=jnp.float32) + fb2[...], 0.0)
        logits = jnp.dot(a.astype(jnp.bfloat16), fw3[...],
                         preferred_element_type=jnp.float32) + fb3[...]
        out_ref[0] = logits                                    # (1, NUM_CLASSES)

    return kernel


# ----------------------------------------------------------------------------
# Parameter construction (mirrors the PyTorch init semantics)
# ----------------------------------------------------------------------------
def init_params(key, in_channels=IN_CHANNELS):
    params = {"features": [], "classifier": []}
    cin = in_channels
    for v in FEATURE_CFG:
        if v == "M":
            continue
        key, kw = jax.random.split(key)
        n = 3 * 3 * v                                # kh*kw*out_channels
        std = (2.0 / n) ** 0.5
        w = std * jax.random.normal(kw, (3, 3, cin, v), dtype=jnp.float32)
        b = jnp.zeros((v,), dtype=jnp.float32)
        params["features"].append((w, b))
        cin = v

    dims = [(512, 512), (512, 512), (512, NUM_CLASSES)]
    for fan_in, fan_out in dims:
        key, kw, kb = jax.random.split(key, 3)
        bound = 1.0 / (fan_in ** 0.5)                # PyTorch nn.Linear default
        w = jax.random.uniform(kw, (fan_in, fan_out), jnp.float32, -bound, bound)
        b = jax.random.uniform(kb, (fan_out,), jnp.float32, -bound, bound)
        params["classifier"].append((w, b))
    return params


def _band_conv_weights(w, Wi):
    """(3,3,Cin,Cout) conv weights -> (3, Wi*Cin, Wi*Cout) banded block matrices.

    band[kh][w_in*Cin + ci, w_out*Cout + co] = w[kh, w_in - w_out + 1, ci, co]
    when |w_in - w_out| <= 1, else 0.  Matmul of the (H, Wi*Cin) activation with
    band[kh] (summed over the three h-shifts) reproduces a 3x3/pad=1/stride=1 conv.
    """
    Cin, Cout = w.shape[2], w.shape[3]
    mats = []
    for kh in range(3):
        m = jnp.zeros((Wi, Cin, Wi, Cout), jnp.float32)
        for w_out in range(Wi):
            for dw in (-1, 0, 1):
                w_in = w_out + dw
                if 0 <= w_in < Wi:
                    m = m.at[w_in, :, w_out, :].set(w[kh, dw + 1])
        mats.append(m.reshape(Wi * Cin, Wi * Cout))
    return jnp.stack(mats, axis=0)


def prepare_params(params, in_hw=IN_HW):
    """One-time layout/dtype plumbing for the fused kernel."""
    ops, meta = [], []
    hw = in_hw
    conv_idx = 0
    i = 0
    cout = None
    while i < len(FEATURE_CFG):
        v = FEATURE_CFG[i]
        assert v != "M", "cfg must pair each 'M' with a preceding conv"
        do_pool = (i + 1 < len(FEATURE_CFG) and FEATURE_CFG[i + 1] == "M")
        w, b = params["features"][conv_idx]
        cout = w.shape[3]
        wb = _band_conv_weights(w, hw).astype(jnp.bfloat16)     # (3, hw*Cin, hw*Cout)
        bt = jnp.tile(b, (hw,)).reshape(1, hw * cout)           # (1, hw*Cout) f32
        ops += [wb, bt]
        meta.append((hw, hw, cout, do_pool))
        conv_idx += 1
        if do_pool:
            hw //= 2
            i += 2
        else:
            i += 1

    assert hw == 1 and cout == 512, "feature stack must reduce to (1,1,512)"
    for w, b in params["classifier"]:
        ops += [w.astype(jnp.bfloat16), b.reshape(1, -1).astype(jnp.float32)]
    return ops, meta


# ----------------------------------------------------------------------------
# Forward pass: one fused pallas_call over the batch
# ----------------------------------------------------------------------------
def vgg_forward(x_nchw, kernel_ops, layer_meta):
    N, Cin, H, W = x_nchw.shape
    # NCHW -> NHWC -> (N*H, W*Cin): rows = (n, h), lanes = (w-major, c-minor).
    x2d = jnp.transpose(x_nchw, (0, 2, 3, 1)).reshape(N * H, W * Cin)
    x2d = x2d.astype(jnp.float32)

    kernel = _make_vgg_kernel(tuple(layer_meta))

    def const_map(ndim):
        if ndim == 3:
            return lambda i: (0, 0, 0)
        return lambda i: (0, 0)

    in_specs = [pl.BlockSpec((H, W * Cin), lambda i: (i, 0))]          # one sample / step
    in_specs += [pl.BlockSpec(op.shape, const_map(op.ndim)) for op in kernel_ops]

    out = pl.pallas_call(
        kernel,
        out_shape=jax.ShapeDtypeStruct((N, 1, NUM_CLASSES), jnp.float32),
        grid=(N,),
        in_specs=in_specs,
        out_specs=pl.BlockSpec((1, 1, NUM_CLASSES), lambda i: (i, 0, 0)),
        compiler_params=pltpu.CompilerParams(
            dimension_semantics=("parallel",)),   # v7x: one sample per TensorCore
    )(x2d, *kernel_ops)
    return out.reshape(N, NUM_CLASSES)


if __name__ == "__main__":
    key = jax.random.PRNGKey(0)
    key, kx = jax.random.split(key)
    x = jax.random.normal(kx, (2, IN_CHANNELS, IN_HW, IN_HW), dtype=jnp.float32)  # NCHW
    params = init_params(key)
    kernel_ops, layer_meta = prepare_params(params)

    fwd = jax.jit(functools.partial(vgg_forward, layer_meta=layer_meta))
    out = jax.block_until_ready(fwd(x, kernel_ops))

    assert out.shape == (2, NUM_CLASSES), out.shape
    assert out.dtype == jnp.float32
    print("KERNEL_OK")
</pallas_src>

<mosaic_0001>
module attributes {stable_mosaic.version = 11 : i64} {
  func.func @kernel(%arg0: i32, %arg1: memref<8x24xf32, #tpu.memory_space<vmem>>, %arg2: memref<3x24x256xbf16, #tpu.memory_space<vmem>>, %arg3: memref<1x256xf32, #tpu.memory_space<vmem>>, %arg4: memref<3x128x256xbf16, #tpu.memory_space<vmem>>, %arg5: memref<1x256xf32, #tpu.memory_space<vmem>>, %arg6: memref<3x128x1024xbf16, #tpu.memory_space<vmem>>, %arg7: memref<1x1024xf32, #tpu.memory_space<vmem>>, %arg8: memref<512x512xbf16, #tpu.memory_space<vmem>>, %arg9: memref<1x512xf32, #tpu.memory_space<vmem>>, %arg10: memref<512x512xbf16, #tpu.memory_space<vmem>>, %arg11: memref<1x512xf32, #tpu.memory_space<vmem>>, %arg12: memref<512x10xbf16, #tpu.memory_space<vmem>>, %arg13: memref<1x10xf32, #tpu.memory_space<vmem>>, %arg14: memref<1x1x10xf32, #tpu.memory_space<vmem>>) attributes {dimension_semantics = [#tpu.dimension_semantics<parallel>], iteration_bounds = array<i64: 2>, scalar_prefetch = 0 : i64, scratch_operands = 0 : i64, tpu.core_type = #tpu.core_type<tc>, window_params = [{transform_indices = @transform_0, window_bounds = array<i64: 8, 24>}, {pipeline_mode = #tpu.pipeline_mode<synchronous>, transform_indices = @transform_1, window_bounds = array<i64: 3, 24, 256>}, {pipeline_mode = #tpu.pipeline_mode<synchronous>, transform_indices = @transform_2, window_bounds = array<i64: 1, 256>}, {pipeline_mode = #tpu.pipeline_mode<synchronous>, transform_indices = @transform_3, window_bounds = array<i64: 3, 128, 256>}, {pipeline_mode = #tpu.pipeline_mode<synchronous>, transform_indices = @transform_4, window_bounds = array<i64: 1, 256>}, {pipeline_mode = #tpu.pipeline_mode<synchronous>, transform_indices = @transform_5, window_bounds = array<i64: 3, 128, 1024>}, {pipeline_mode = #tpu.pipeline_mode<synchronous>, transform_indices = @transform_6, window_bounds = array<i64: 1, 1024>}, {pipeline_mode = #tpu.pipeline_mode<synchronous>, transform_indices = @transform_7, window_bounds = array<i64: 512, 512>}, {pipeline_mode = #tpu.pipeline_mode<synchronous>, transform_indices = @transform_8, window_bounds = array<i64: 1, 512>}, {pipeline_mode = #tpu.pipeline_mode<synchronous>, transform_indices = @transform_9, window_bounds = array<i64: 512, 512>}, {pipeline_mode = #tpu.pipeline_mode<synchronous>, transform_indices = @transform_10, window_bounds = array<i64: 1, 512>}, {pipeline_mode = #tpu.pipeline_mode<synchronous>, transform_indices = @transform_11, window_bounds = array<i64: 512, 10>}, {pipeline_mode = #tpu.pipeline_mode<synchronous>, transform_indices = @transform_12, window_bounds = array<i64: 1, 10>}, {transform_indices = @transform_13, window_bounds = array<i64: 1, 1, 10>}]} {
    %c0 = arith.constant 0 : index
    %c0_0 = arith.constant 0 : index
    %0 = vector.load %arg1[%c0, %c0_0] : memref<8x24xf32, #tpu.memory_space<vmem>>, vector<8x24xf32>
    %cst = arith.constant 0.000000e+00 : f32
    %1 = vector.broadcast %cst : f32 to vector<1x24xf32>
    %2 = vector.extract_strided_slice %0 {offsets = [0, 0], sizes = [7, 24], strides = [1, 1]} : vector<8x24xf32> to vector<7x24xf32>
    %3 = tpu.concatenate %1, %2 in 0 : vector<1x24xf32>, vector<7x24xf32> -> vector<8x24xf32>
    %4 = vector.extract_strided_slice %0 {offsets = [1, 0], sizes = [7, 24], strides = [1, 1]} : vector<8x24xf32> to vector<7x24xf32>
    %5 = tpu.concatenate %4, %1 in 0 : vector<7x24xf32>, vector<1x24xf32> -> vector<8x24xf32>
    %6 = arith.truncf %3 : vector<8x24xf32> to vector<8x24xbf16>
    %c0_1 = arith.constant 0 : index
    %c0_2 = arith.constant 0 : index
    %c0_3 = arith.constant 0 : index
    %7 = vector.load %arg2[%c0_1, %c0_2, %c0_3] : memref<3x24x256xbf16, #tpu.memory_space<vmem>>, vector<1x24x256xbf16>
    %8 = vector.shape_cast %7 : vector<1x24x256xbf16> to vector<24x256xbf16>
    %cst_4 = arith.constant dense<0.000000e+00> : vector<8x256xf32>
    %9 = tpu.matmul %6, %8, %cst_4 {dimension_numbers = #tpu.dot_dimension_numbers<[1], [0], [0], [1], [0, 0, 1, 1], [], []>} : vector<8x24xbf16>, vector<24x256xbf16>, vector<8x256xf32> -> vector<8x256xf32>
    %10 = arith.truncf %0 : vector<8x24xf32> to vector<8x24xbf16>
    %c1 = arith.constant 1 : index
    %c0_5 = arith.constant 0 : index
    %c0_6 = arith.constant 0 : index
    %11 = vector.load %arg2[%c1, %c0_5, %c0_6] : memref<3x24x256xbf16, #tpu.memory_space<vmem>>, vector<1x24x256xbf16>
    %12 = vector.shape_cast %11 : vector<1x24x256xbf16> to vector<24x256xbf16>
    %cst_7 = arith.constant dense<0.000000e+00> : vector<8x256xf32>
    %13 = tpu.matmul %10, %12, %cst_7 {dimension_numbers = #tpu.dot_dimension_numbers<[1], [0], [0], [1], [0, 0, 1, 1], [], []>} : vector<8x24xbf16>, vector<24x256xbf16>, vector<8x256xf32> -> vector<8x256xf32>
    %14 = arith.addf %9, %13 : vector<8x256xf32>
    %15 = arith.truncf %5 : vector<8x24xf32> to vector<8x24xbf16>
    %c2 = arith.constant 2 : index
    %c0_8 = arith.constant 0 : index
    %c0_9 = arith.constant 0 : index
    %16 = vector.load %arg2[%c2, %c0_8, %c0_9] : memref<3x24x256xbf16, #tpu.memory_space<vmem>>, vector<1x24x256xbf16>
    %17 = vector.shape_cast %16 : vector<1x24x256xbf16> to vector<24x256xbf16>
    %cst_10 = arith.constant dense<0.000000e+00> : vector<8x256xf32>
    %18 = tpu.matmul %15, %17, %cst_10 {dimension_numbers = #tpu.dot_dimension_numbers<[1], [0], [0], [1], [0, 0, 1, 1], [], []>} : vector<8x24xbf16>, vector<24x256xbf16>, vector<8x256xf32> -> vector<8x256xf32>
    %19 = arith.addf %14, %18 : vector<8x256xf32>
    %c0_11 = arith.constant 0 : index
    %c0_12 = arith.constant 0 : index
    %20 = vector.load %arg3[%c0_11, %c0_12] : memref<1x256xf32, #tpu.memory_space<vmem>>, vector<1x256xf32>
    %21 = vector.broadcast %20 : vector<1x256xf32> to vector<8x256xf32>
    %22 = arith.addf %19, %21 : vector<8x256xf32>
    %cst_13 = arith.constant 0.000000e+00 : f32
    %23 = vector.broadcast %cst_13 : f32 to vector<8x256xf32>
    %24 = arith.maximumf %22, %23 : vector<8x256xf32>
    %25 = vector.extract_strided_slice %24 {offsets = [0, 0], sizes = [8, 32], strides = [1, 1]} : vector<8x256xf32> to vector<8x32xf32>
    %26 = vector.extract_strided_slice %24 {offsets = [0, 32], sizes = [8, 32], strides = [1, 1]} : vector<8x256xf32> to vector<8x32xf32>
    %27 = arith.maximumf %25, %26 : vector<8x32xf32>
    %28 = vector.extract_strided_slice %24 {offsets = [0, 64], sizes = [8, 32], strides = [1, 1]} : vector<8x256xf32> to vector<8x32xf32>
    %29 = vector.extract_strided_slice %24 {offsets = [0, 96], sizes = [8, 32], strides = [1, 1]} : vector<8x256xf32> to vector<8x32xf32>
    %30 = arith.maximumf %28, %29 : vector<8x32xf32>
    %31 = vector.extract_strided_slice %24 {offsets = [0, 128], sizes = [8, 32], strides = [1, 1]} : vector<8x256xf32> to vector<8x32xf32>
    %32 = vector.extract_strided_slice %24 {offsets = [0, 160], sizes = [8, 32], strides = [1, 1]} : vector<8x256xf32> to vector<8x32xf32>
    %33 = arith.maximumf %31, %32 : vector<8x32xf32>
    %34 = vector.extract_strided_slice %24 {offsets = [0, 192], sizes = [8, 32], strides = [1, 1]} : vector<8x256xf32> to vector<8x32xf32>
    %35 = vector.extract_strided_slice %24 {offsets = [0, 224], sizes = [8, 32], strides = [1, 1]} : vector<8x256xf32> to vector<8x32xf32>
    %36 = arith.maximumf %34, %35 : vector<8x32xf32>
    %37 = tpu.concatenate %27, %30, %33, %36 in 1 : vector<8x32xf32>, vector<8x32xf32>, vector<8x32xf32>, vector<8x32xf32> -> vector<8x128xf32>
    %38 = vector.extract_strided_slice %37 {offsets = [0, 0], sizes = [1, 128], strides = [1, 1]} : vector<8x128xf32> to vector<1x128xf32>
    %39 = vector.extract_strided_slice %37 {offsets = [1, 0], sizes = [1, 128], strides = [1, 1]} : vector<8x128xf32> to vector<1x128xf32>
    %40 = arith.maximumf %38, %39 : vector<1x128xf32>
    %41 = vector.extract_strided_slice %37 {offsets = [2, 0], sizes = [1, 128], strides = [1, 1]} : vector<8x128xf32> to vector<1x128xf32>
    %42 = vector.extract_strided_slice %37 {offsets = [3, 0], sizes = [1, 128], strides = [1, 1]} : vector<8x128xf32> to vector<1x128xf32>
    %43 = arith.maximumf %41, %42 : vector<1x128xf32>
    %44 = vector.extract_strided_slice %37 {offsets = [4, 0], sizes = [1, 128], strides = [1, 1]} : vector<8x128xf32> to vector<1x128xf32>
    %45 = vector.extract_strided_slice %37 {offsets = [5, 0], sizes = [1, 128], strides = [1, 1]} : vector<8x128xf32> to vector<1x128xf32>
    %46 = arith.maximumf %44, %45 : vector<1x128xf32>
    %47 = vector.extract_strided_slice %37 {offsets = [6, 0], sizes = [1, 128], strides = [1, 1]} : vector<8x128xf32> to vector<1x128xf32>
    %48 = vector.extract_strided_slice %37 {offsets = [7, 0], sizes = [1, 128], strides = [1, 1]} : vector<8x128xf32> to vector<1x128xf32>
    %49 = arith.maximumf %47, %48 : vector<1x128xf32>
    %50 = tpu.concatenate %40, %43, %46, %49 in 0 : vector<1x128xf32>, vector<1x128xf32>, vector<1x128xf32>, vector<1x128xf32> -> vector<4x128xf32>
    %cst_14 = arith.constant 0.000000e+00 : f32
    %51 = vector.broadcast %cst_14 : f32 to vector<1x128xf32>
    %52 = vector.extract_strided_slice %50 {offsets = [0, 0], sizes = [3, 128], strides = [1, 1]} : vector<4x128xf32> to vector<3x128xf32>
    %53 = tpu.concatenate %51, %52 in 0 : vector<1x128xf32>, vector<3x128xf32> -> vector<4x128xf32>
    %54 = vector.extract_strided_slice %50 {offsets = [1, 0], sizes = [3, 128], strides = [1, 1]} : vector<4x128xf32> to vector<3x128xf32>
    %55 = tpu.concatenate %54, %51 in 0 : vector<3x128xf32>, vector<1x128xf32> -> vector<4x128xf32>
    %56 = arith.truncf %53 : vector<4x128xf32> to vector<4x128xbf16>
    %c0_15 = arith.constant 0 : index
    %c0_16 = arith.constant 0 : index
    %c0_17 = arith.constant 0 : index
    %57 = vector.load %arg4[%c0_15, %c0_16, %c0_17] : memref<3x128x256xbf16, #tpu.memory_space<vmem>>, vector<1x128x256xbf16>
    %58 = vector.shape_cast %57 : vector<1x128x256xbf16> to vector<128x256xbf16>
    %cst_18 = arith.constant dense<0.000000e+00> : vector<4x256xf32>
    %59 = tpu.matmul %56, %58, %cst_18 {dimension_numbers = #tpu.dot_dimension_numbers<[1], [0], [0], [1], [0, 0, 1, 1], [], []>} : vector<4x128xbf16>, vector<128x256xbf16>, vector<4x256xf32> -> vector<4x256xf32>
    %60 = arith.truncf %50 : vector<4x128xf32> to vector<4x128xbf16>
    %c1_19 = arith.constant 1 : index
    %c0_20 = arith.constant 0 : index
    %c0_21 = arith.constant 0 : index
    %61 = vector.load %arg4[%c1_19, %c0_20, %c0_21] : memref<3x128x256xbf16, #tpu.memory_space<vmem>>, vector<1x128x256xbf16>
    %62 = vector.shape_cast %61 : vector<1x128x256xbf16> to vector<128x256xbf16>
    %cst_22 = arith.constant dense<0.000000e+00> : vector<4x256xf32>
    %63 = tpu.matmul %60, %62, %cst_22 {dimension_numbers = #tpu.dot_dimension_numbers<[1], [0], [0], [1], [0, 0, 1, 1], [], []>} : vector<4x128xbf16>, vector<128x256xbf16>, vector<4x256xf32> -> vector<4x256xf32>
    %64 = arith.addf %59, %63 : vector<4x256xf32>
    %65 = arith.truncf %55 : vector<4x128xf32> to vector<4x128xbf16>
    %c2_23 = arith.constant 2 : index
    %c0_24 = arith.constant 0 : index
    %c0_25 = arith.constant 0 : index
    %66 = vector.load %arg4[%c2_23, %c0_24, %c0_25] : memref<3x128x256xbf16, #tpu.memory_space<vmem>>, vector<1x128x256xbf16>
    %67 = vector.shape_cast %66 : vector<1x128x256xbf16> to vector<128x256xbf16>
    %cst_26 = arith.constant dense<0.000000e+00> : vector<4x256xf32>
    %68 = tpu.matmul %65, %67, %cst_26 {dimension_numbers = #tpu.dot_dimension_numbers<[1], [0], [0], [1], [0, 0, 1, 1], [], []>} : vector<4x128xbf16>, vector<128x256xbf16>, vector<4x256xf32> -> vector<4x256xf32>
    %69 = arith.addf %64, %68 : vector<4x256xf32>
    %c0_27 = arith.constant 0 : index
    %c0_28 = arith.constant 0 : index
    %70 = vector.load %arg5[%c0_27, %c0_28] : memref<1x256xf32, #tpu.memory_space<vmem>>, vector<1x256xf32>
    %71 = vector.broadcast %70 : vector<1x256xf32> to vector<4x256xf32>
    %72 = arith.addf %69, %71 : vector<4x256xf32>
    %cst_29 = arith.constant 0.000000e+00 : f32
    %73 = vector.broadcast %cst_29 : f32 to vector<4x256xf32>
    %74 = arith.maximumf %72, %73 : vector<4x256xf32>
    %75 = vector.extract_strided_slice %74 {offsets = [0, 0], sizes = [4, 64], strides = [1, 1]} : vector<4x256xf32> to vector<4x64xf32>
    %76 = vector.extract_strided_slice %74 {offsets = [0, 64], sizes = [4, 64], strides = [1, 1]} : vector<4x256xf32> to vector<4x64xf32>
    %77 = arith.maximumf %75, %76 : vector<4x64xf32>
    %78 = vector.extract_strided_slice %74 {offsets = [0, 128], sizes = [4, 64], strides = [1, 1]} : vector<4x256xf32> to vector<4x64xf32>
    %79 = vector.extract_strided_slice %74 {offsets = [0, 192], sizes = [4, 64], strides = [1, 1]} : vector<4x256xf32> to vector<4x64xf32>
    %80 = arith.maximumf %78, %79 : vector<4x64xf32>
    %81 = tpu.concatenate %77, %80 in 1 : vector<4x64xf32>, vector<4x64xf32> -> vector<4x128xf32>
    %82 = vector.extract_strided_slice %81 {offsets = [0, 0], sizes = [1, 128], strides = [1, 1]} : vector<4x128xf32> to vector<1x128xf32>
    %83 = vector.extract_strided_slice %81 {offsets = [1, 0], sizes = [1, 128], strides = [1, 1]} : vector<4x128xf32> to vector<1x128xf32>
    %84 = arith.maximumf %82, %83 : vector<1x128xf32>
    %85 = vector.extract_strided_slice %81 {offsets = [2, 0], sizes = [1, 128], strides = [1, 1]} : vector<4x128xf32> to vector<1x128xf32>
    %86 = vector.extract_strided_slice %81 {offsets = [3, 0], sizes = [1, 128], strides = [1, 1]} : vector<4x128xf32> to vector<1x128xf32>
    %87 = arith.maximumf %85, %86 : vector<1x128xf32>
    %88 = tpu.concatenate %84, %87 in 0 : vector<1x128xf32>, vector<1x128xf32> -> vector<2x128xf32>
    %cst_30 = arith.constant 0.000000e+00 : f32
    %89 = vector.broadcast %cst_30 : f32 to vector<1x128xf32>
    %90 = vector.extract_strided_slice %88 {offsets = [0, 0], sizes = [1, 128], strides = [1, 1]} : vector<2x128xf32> to vector<1x128xf32>
    %91 = tpu.concatenate %89, %90 in 0 : vector<1x128xf32>, vector<1x128xf32> -> vector<2x128xf32>
    %92 = vector.extract_strided_slice %88 {offsets = [1, 0], sizes = [1, 128], strides = [1, 1]} : vector<2x128xf32> to vector<1x128xf32>
    %93 = tpu.concatenate %92, %89 in 0 : vector<1x128xf32>, vector<1x128xf32> -> vector<2x128xf32>
    %94 = arith.truncf %91 : vector<2x128xf32> to vector<2x128xbf16>
    %c0_31 = arith.constant 0 : index
    %c0_32 = arith.constant 0 : index
    %c0_33 = arith.constant 0 : index
    %95 = vector.load %arg6[%c0_31, %c0_32, %c0_33] : memref<3x128x1024xbf16, #tpu.memory_space<vmem>>, vector<1x128x1024xbf16>
    %96 = vector.shape_cast %95 : vector<1x128x1024xbf16> to vector<128x1024xbf16>
    %cst_34 = arith.constant dense<0.000000e+00> : vector<2x1024xf32>
    %97 = tpu.matmul %94, %96, %cst_34 {dimension_numbers = #tpu.dot_dimension_numbers<[1], [0], [0], [1], [0, 0, 1, 1], [], []>} : vector<2x128xbf16>, vector<128x1024xbf16>, vector<2x1024xf32> -> vector<2x1024xf32>
    %98 = arith.truncf %88 : vector<2x128xf32> to vector<2x128xbf16>
    %c1_35 = arith.constant 1 : index
    %c0_36 = arith.constant 0 : index
    %c0_37 = arith.constant 0 : index
    %99 = vector.load %arg6[%c1_35, %c0_36, %c0_37] : memref<3x128x1024xbf16, #tpu.memory_space<vmem>>, vector<1x128x1024xbf16>
    %100 = vector.shape_cast %99 : vector<1x128x1024xbf16> to vector<128x1024xbf16>
    %cst_38 = arith.constant dense<0.000000e+00> : vector<2x1024xf32>
    %101 = tpu.matmul %98, %100, %cst_38 {dimension_numbers = #tpu.dot_dimension_numbers<[1], [0], [0], [1], [0, 0, 1, 1], [], []>} : vector<2x128xbf16>, vector<128x1024xbf16>, vector<2x1024xf32> -> vector<2x1024xf32>
    %102 = arith.addf %97, %101 : vector<2x1024xf32>
    %103 = arith.truncf %93 : vector<2x128xf32> to vector<2x128xbf16>
    %c2_39 = arith.constant 2 : index
    %c0_40 = arith.constant 0 : index
    %c0_41 = arith.constant 0 : index
    %104 = vector.load %arg6[%c2_39, %c0_40, %c0_41] : memref<3x128x1024xbf16, #tpu.memory_space<vmem>>, vector<1x128x1024xbf16>
    %105 = vector.shape_cast %104 : vector<1x128x1024xbf16> to vector<128x1024xbf16>
    %cst_42 = arith.constant dense<0.000000e+00> : vector<2x1024xf32>
    %106 = tpu.matmul %103, %105, %cst_42 {dimension_numbers = #tpu.dot_dimension_numbers<[1], [0], [0], [1], [0, 0, 1, 1], [], []>} : vector<2x128xbf16>, vector<128x1024xbf16>, vector<2x1024xf32> -> vector<2x1024xf32>
    %107 = arith.addf %102, %106 : vector<2x1024xf32>
    %c0_43 = arith.constant 0 : index
    %c0_44 = arith.constant 0 : index
    %108 = vector.load %arg7[%c0_43, %c0_44] : memref<1x1024xf32, #tpu.memory_space<vmem>>, vector<1x1024xf32>
    %109 = vector.broadcast %108 : vector<1x1024xf32> to vector<2x1024xf32>
    %110 = arith.addf %107, %109 : vector<2x1024xf32>
    %cst_45 = arith.constant 0.000000e+00 : f32
    %111 = vector.broadcast %cst_45 : f32 to vector<2x1024xf32>
    %112 = arith.maximumf %110, %111 : vector<2x1024xf32>
    %113 = vector.extract_strided_slice %112 {offsets = [0, 0], sizes = [2, 512], strides = [1, 1]} : vector<2x1024xf32> to vector<2x512xf32>
    %114 = vector.extract_strided_slice %112 {offsets = [0, 512], sizes = [2, 512], strides = [1, 1]} : vector<2x1024xf32> to vector<2x512xf32>
    %115 = arith.maximumf %113, %114 : vector<2x512xf32>
    %116 = vector.extract_strided_slice %115 {offsets = [0, 0], sizes = [1, 512], strides = [1, 1]} : vector<2x512xf32> to vector<1x512xf32>
    %117 = vector.extract_strided_slice %115 {offsets = [1, 0], sizes = [1, 512], strides = [1, 1]} : vector<2x512xf32> to vector<1x512xf32>
    %118 = arith.maximumf %116, %117 : vector<1x512xf32>
    %119 = arith.truncf %118 : vector<1x512xf32> to vector<1x512xbf16>
    %c0_46 = arith.constant 0 : index
    %c0_47 = arith.constant 0 : index
    %120 = vector.load %arg8[%c0_46, %c0_47] : memref<512x512xbf16, #tpu.memory_space<vmem>>, vector<512x512xbf16>
    %cst_48 = arith.constant dense<0.000000e+00> : vector<1x512xf32>
    %121 = tpu.matmul %119, %120, %cst_48 {dimension_numbers = #tpu.dot_dimension_numbers<[1], [0], [0], [1], [0, 0, 1, 1], [], []>} : vector<1x512xbf16>, vector<512x512xbf16>, vector<1x512xf32> -> vector<1x512xf32>
    %c0_49 = arith.constant 0 : index
    %c0_50 = arith.constant 0 : index
    %122 = vector.load %arg9[%c0_49, %c0_50] : memref<1x512xf32, #tpu.memory_space<vmem>>, vector<1x512xf32>
    %123 = arith.addf %121, %122 : vector<1x512xf32>
    %cst_51 = arith.constant 0.000000e+00 : f32
    %124 = vector.broadcast %cst_51 : f32 to vector<1x512xf32>
    %125 = arith.maximumf %123, %124 : vector<1x512xf32>
    %126 = arith.truncf %125 : vector<1x512xf32> to vector<1x512xbf16>
    %c0_52 = arith.constant 0 : index
    %c0_53 = arith.constant 0 : index
    %127 = vector.load %arg10[%c0_52, %c0_53] : memref<512x512xbf16, #tpu.memory_space<vmem>>, vector<512x512xbf16>
    %cst_54 = arith.constant dense<0.000000e+00> : vector<1x512xf32>
    %128 = tpu.matmul %126, %127, %cst_54 {dimension_numbers = #tpu.dot_dimension_numbers<[1], [0], [0], [1], [0, 0, 1, 1], [], []>} : vector<1x512xbf16>, vector<512x512xbf16>, vector<1x512xf32> -> vector<1x512xf32>
    %c0_55 = arith.constant 0 : index
    %c0_56 = arith.constant 0 : index
    %129 = vector.load %arg11[%c0_55, %c0_56] : memref<1x512xf32, #tpu.memory_space<vmem>>, vector<1x512xf32>
    %130 = arith.addf %128, %129 : vector<1x512xf32>
    %cst_57 = arith.constant 0.000000e+00 : f32
    %131 = vector.broadcast %cst_57 : f32 to vector<1x512xf32>
    %132 = arith.maximumf %130, %131 : vector<1x512xf32>
    %133 = arith.truncf %132 : vector<1x512xf32> to vector<1x512xbf16>
    %c0_58 = arith.constant 0 : index
    %c0_59 = arith.constant 0 : index
    %134 = vector.load %arg12[%c0_58, %c0_59] : memref<512x10xbf16, #tpu.memory_space<vmem>>, vector<512x10xbf16>
    %cst_60 = arith.constant dense<0.000000e+00> : vector<1x10xf32>
    %135 = tpu.matmul %133, %134, %cst_60 {dimension_numbers = #tpu.dot_dimension_numbers<[1], [0], [0], [1], [0, 0, 1, 1], [], []>} : vector<1x512xbf16>, vector<512x10xbf16>, vector<1x10xf32> -> vector<1x10xf32>
    %c0_61 = arith.constant 0 : index
    %c0_62 = arith.constant 0 : index
    %136 = vector.load %arg13[%c0_61, %c0_62] : memref<1x10xf32, #tpu.memory_space<vmem>>, vector<1x10xf32>
    %137 = arith.addf %135, %136 : vector<1x10xf32>
    %c0_63 = arith.constant 0 : index
    %c0_64 = arith.constant 0 : index
    %c0_65 = arith.constant 0 : index
    %138 = vector.load %arg14[%c0_63, %c0_64, %c0_65] : memref<1x1x10xf32, #tpu.memory_space<vmem>>, vector<1x1x10xf32>
    %139 = vector.shape_cast %138 : vector<1x1x10xf32> to vector<1x10xf32>
    %140 = vector.shape_cast %137 : vector<1x10xf32> to vector<1x1x10xf32>
    tpu.vector_store %arg14[%c0_63, %c0_64, %c0_65], %140 {strides = array<i32>} : memref<1x1x10xf32, #tpu.memory_space<vmem>>, vector<1x1x10xf32>,
    return
  }
  func.func @transform_0(%arg0: i32) -> (i32, i32) {
    %c0_i32 = arith.constant 0 : i32
    %c0_i32_0 = arith.constant 0 : i32
    return %arg0, %c0_i32 : i32, i32
  }
  func.func @transform_1(%arg0: i32) -> (i32, i32, i32) {
    %c0_i32 = arith.constant 0 : i32
    %c0_i32_0 = arith.constant 0 : i32
    %c0_i32_1 = arith.constant 0 : i32
    %c0_i32_2 = arith.constant 0 : i32
    return %c0_i32, %c0_i32_0, %c0_i32_1 : i32, i32, i32
  }
  func.func @transform_2(%arg0: i32) -> (i32, i32) {
    %c0_i32 = arith.constant 0 : i32
    %c0_i32_0 = arith.constant 0 : i32
    %c0_i32_1 = arith.constant 0 : i32
    return %c0_i32, %c0_i32_0 : i32, i32
  }
  func.func @transform_3(%arg0: i32) -> (i32, i32, i32) {
    %c0_i32 = arith.constant 0 : i32
    %c0_i32_0 = arith.constant 0 : i32
    %c0_i32_1 = arith.constant 0 : i32
    %c0_i32_2 = arith.constant 0 : i32
    return %c0_i32, %c0_i32_0, %c0_i32_1 : i32, i32, i32
  }
  func.func @transform_4(%arg0: i32) -> (i32, i32) {
    %c0_i32 = arith.constant 0 : i32
    %c0_i32_0 = arith.constant 0 : i32
    %c0_i32_1 = arith.constant 0 : i32
    return %c0_i32, %c0_i32_0 : i32, i32
  }
  func.func @transform_5(%arg0: i32) -> (i32, i32, i32) {
    %c0_i32 = arith.constant 0 : i32
    %c0_i32_0 = arith.constant 0 : i32
    %c0_i32_1 = arith.constant 0 : i32
    %c0_i32_2 = arith.constant 0 : i32
    return %c0_i32, %c0_i32_0, %c0_i32_1 : i32, i32, i32
  }
  func.func @transform_6(%arg0: i32) -> (i32, i32) {
    %c0_i32 = arith.constant 0 : i32
    %c0_i32_0 = arith.constant 0 : i32
    %c0_i32_1 = arith.constant 0 : i32
    return %c0_i32, %c0_i32_0 : i32, i32
  }
  func.func @transform_7(%arg0: i32) -> (i32, i32) {
    %c0_i32 = arith.constant 0 : i32
    %c0_i32_0 = arith.constant 0 : i32
    %c0_i32_1 = arith.constant 0 : i32
    return %c0_i32, %c0_i32_0 : i32, i32
  }
  func.func @transform_8(%arg0: i32) -> (i32, i32) {
    %c0_i32 = arith.constant 0 : i32
    %c0_i32_0 = arith.constant 0 : i32
    %c0_i32_1 = arith.constant 0 : i32
    return %c0_i32, %c0_i32_0 : i32, i32
  }
  func.func @transform_9(%arg0: i32) -> (i32, i32) {
    %c0_i32 = arith.constant 0 : i32
    %c0_i32_0 = arith.constant 0 : i32
    %c0_i32_1 = arith.constant 0 : i32
    return %c0_i32, %c0_i32_0 : i32, i32
  }
  func.func @transform_10(%arg0: i32) -> (i32, i32) {
    %c0_i32 = arith.constant 0 : i32
    %c0_i32_0 = arith.constant 0 : i32
    %c0_i32_1 = arith.constant 0 : i32
    return %c0_i32, %c0_i32_0 : i32, i32
  }
  func.func @transform_11(%arg0: i32) -> (i32, i32) {
    %c0_i32 = arith.constant 0 : i32
    %c0_i32_0 = arith.constant 0 : i32
    %c0_i32_1 = arith.constant 0 : i32
    return %c0_i32, %c0_i32_0 : i32, i32
  }
  func.func @transform_12(%arg0: i32) -> (i32, i32) {
    %c0_i32 = arith.constant 0 : i32
    %c0_i32_0 = arith.constant 0 : i32
    %c0_i32_1 = arith.constant 0 : i32
    return %c0_i32, %c0_i32_0 : i32, i32
  }
  func.func @transform_13(%arg0: i32) -> (i32, i32, i32) {
    %c0_i32 = arith.constant 0 : i32
    %c0_i32_0 = arith.constant 0 : i32
    %c0_i32_1 = arith.constant 0 : i32
    return %arg0, %c0_i32, %c0_i32_0 : i32, i32, i32
  }
}

</mosaic_0001>

<bundles_post_ra>
// kernel: vgg_forward.1
= control target key start
LH: loop header
LB: loop body
LE: loop exit
PB: predicated region body
PF: predicated region fallthrough
CT: control target
= control target key end

     0   :  { %18 = vsyncpa [#allocation3], 0  ;;  %s7530_s0 = inlined_call_operand.vmem [shape: f32[16,24], index: 0, kind: input, shape index: {}]   ;;  %s7531_s1 = inlined_call_operand.vmem [shape: bf16[3,24,256], index: 1, kind: input, shape index: {}]   ;;  %s7532_s2 = inlined_call_operand.vmem [shape: f32[1,256], index: 2, kind: input, shape index: {}]   ;;  %s7533_s3 = inlined_call_operand.vmem [shape: bf16[3,128,256], index: 3, kind: input, shape index: {}]   ;;  %s7534_s4 = inlined_call_operand.hbm [shape: f32[1,256], index: 4, kind: input, shape index: {}]   ;;  %s7535_s5 = inlined_call_operand.hbm [shape: bf16[3,128,1024], index: 5, kind: input, shape index: {}]   ;;  %s7536_s6 = inlined_call_operand.vmem [shape: f32[1,1024], index: 6, kind: input, shape index: {}]   ;;  %s7537_s7 = inlined_call_operand.hbm [shape: bf16[512,512], index: 7, kind: input, shape index: {}]   ;;  %s7538_s8 = inlined_call_operand.vmem [shape: f32[1,512], index: 8, kind: input, shape index: {}]   ;;  %s7539_s9 = inlined_call_operand.hbm [shape: bf16[512,512], index: 9, kind: input, shape index: {}]   ;;  %s7540_s10 = inlined_call_operand.vmem [shape: f32[1,512], index: 10, kind: input, shape index: {}]   ;;  %s7541_s11 = inlined_call_operand.vmem [shape: bf16[512,10], index: 11, kind: input, shape index: {}]   ;;  %s7542_s12 = inlined_call_operand.vmem [shape: f32[1,10], index: 12, kind: input, shape index: {}]   ;;  %s7543_s13 = inlined_call_operand.hbm [shape: f32[2,1,10], index: 13, kind: output, shape index: {}]  }
   0x1   :  { %19 = vsyncpa [#allocation6], 0 }
   0x2   :  { %20 = vsyncpa [#allocation9], 0 }
   0x3   :  { %21 = vsyncpa [#allocation4], 0 }
   0x4   :  { %23 = vsyncpa [#allocation4 + $0x1], 0  ;;  %s6898_s25 = smov 0   ;;  %s6900_s26 = smov 0  }
   0x5   :  { %s6902_s27 = smov 0   ;;  %s6904_s28 = smov 0  }
   0x6 LB: > { %7550 = sst [smem:[#allocation15_spill]] %s6809_s27  ;;  %s6919_s29 = sadd.s32 4294967295, %s6813_s28   ;;  %s6813_s28 = sphi %s6904_s28, %s7571_s28   ;;  %s6809_s27 = sphi %s6902_s27, %s7573_s27   ;;  %s6805_s26 = sphi %s6900_s26, %s7575_s26   ;;  %s6801_s25 = sphi %s6898_s25, %s7574_s25  }
   0x7   : > { %s5357_s30 = sadd.s32 4294967294, %s6813_s28   ;;  %s6923_s14 = sadd.s32 1, %s6813_s28  }
   0x8   : > { %7551 = sst [smem:[#allocation16_spill]] %s6923_s14  ;;  %s314_s15 = sadd.s32 1, %s6809_s27 }
   0x9   : > { %s311_s16 = ssub.s32 %s6813_s28, %s6923_s14  ;;  %p324_p0 = scmp.ne.s32.totalorder %s6809_s27, %s6805_s26 }
   0xa   : > { %p312_p1 = scmp.eq.s32.totalorder %s311_s16, 0  ;;  %p325_p2 = scmp.eq.s32.totalorder %s6919_s29, 1 }
   0xb   : > { %p330_p3 = scmp.ne.s32.totalorder %s6805_s26, %s6801_s25  ;;  %p331_p4 = scmp.eq.s32.totalorder %s5357_s30, 1 }
   0xc   : > { %s6934_s17 = scalar_select %p312_p1, %s6809_s27, %s314_s15  }
   0xd   : > { %p6936_p5 = por %p325_p2, %p324_p0  ;;  %p6940_p6 = por %p331_p4, %p330_p3 }
   0xe   : > { %7552 = sst [smem:[#allocation17_spill]] %s6934_s17  ;;  %p5358_p7 = scmp.ge.s32.totalorder %s6813_s28, 1 }
   0xf   : > { %s7553_s18 = scalar_select %p6936_p5, 1, 0 }
  0x10   : > { %s7554_s19 = scalar_select %p6940_p6, 1, 0 }
  0x11   : > { %p338_p8 = scmp.lt.s32.totalorder %s6813_s28, 3  ;;  %p7547_p9 = scmp.eq.s32.totalorder %s6919_s29, 0 }
  0x12   : > { %7555 = sst [smem:[#allocation18_spill]] %s7554_s19  ;;  %s6815_s21 = smov [#allocation5]  }
  0x13   : > { %p6947_p10 = pnand %p5358_p7, %p338_p8  ;;  %s370_s22 = sshll.u32 %s6815_s21, 4  ;;  %s371_s22 = int_to_ptr.vmem [resolvable:$true] %s370_s22 }
  0x14   : > { %s6816_s24 = smov [#allocation2]   ;;  %s6817_s15 = smov [#allocation7]  }
  0x15   : > { %p6059_p11 = pneg %p6947_p10  ;;  %s360_s30 = sshll.u32 %s6816_s24, 4  ;;  %s361_s30 = int_to_ptr.vmem [resolvable:$true] %s360_s30 }
  0x16   : > { %s386_s16 = sshll.u32 %s6817_s15, 4  ;;  %s6648_s17 = scalar_lea.vmem %s371_s22, 24576  ;;  %s387_s16 = int_to_ptr.vmem [resolvable:$true] %s386_s16 }
  0x17   : > { %p6955_p12 = pnand %p7547_p9, %p6059_p11  ;;  %p6649_p0 = scmp.ne.s32.totalorder %s371_s22, %s6648_s17 }
  0x18   : > { %p6656_p3 = scmp.lt.s32.totalorder %s371_s22, %s371_s22  ;;  %p6657_p4 = scmp.lt.s32.totalorder %s6648_s17, %s6648_s17 }
  0x19   : > { %p6639_p13 = pneg %p6955_p12 }
  0x1a   : > { %p6658_p7 = por %p6657_p4, %p6656_p3 }
  0x1b   : > { %p6651_p1 = pnand %p6649_p0, %p6639_p13 }
  0x1d   : > { %p6652_p2 = pneg %p6651_p1 }
  0x1f   : > { %p6659_p8 = pnand %p6658_p7, %p6652_p2 }
  0x21   : > { %6662 = shalt.err (!%p6659_p8)
}
  0x22   : > { %s6818_s21 = smov 512   ;;  %s6819_s24 = smov 32  }
  0x23   : > { %6065 = dma.hbm_to_vmem [thread:$0]  (!%p6955_p12), %s7535_s5, 24576, %s371_s22, [#allocation6], %s6818_s21, %s6818_s21, %s6819_s24  }
  0x24   : > { %s6674_s14 = scalar_lea.vmem %s361_s30, 32  ;;  %p6682_p9 = scmp.lt.s32.totalorder %s361_s30, %s361_s30 }
  0x25   : > { %p6675_p11 = scmp.ne.s32.totalorder %s361_s30, %s6674_s14  ;;  %p6683_p6 = scmp.lt.s32.totalorder %s6674_s14, %s6674_s14 }
  0x27   : > { %p6677_p0 = pnand %p6675_p11, %p6639_p13  ;;  %p6684_p3 = por %p6683_p6, %p6682_p9 }
  0x29   : > { %p6678_p1 = pneg %p6677_p0 }
  0x2b   : > { %p6685_p2 = pnand %p6684_p3, %p6678_p1 }
  0x2d   : > { %6688 = shalt.err (!%p6685_p2)
}
  0x2e   : > { %6062 = dma.hbm_to_vmem [thread:$0]  (!%p6955_p12), %s7534_s4, 32, %s361_s30, [#allocation3]  }
  0x2f   : > { %s6700_s27 = scalar_lea.vmem %s387_s16, 16384  ;;  %p6708_p11 = scmp.lt.s32.totalorder %s387_s16, %s387_s16 }
  0x30   : > { %p6701_p4 = scmp.ne.s32.totalorder %s387_s16, %s6700_s27  ;;  %p6709_p0 = scmp.lt.s32.totalorder %s6700_s27, %s6700_s27 }
  0x32   : > { %p6703_p7 = pnand %p6701_p4, %p6639_p13  ;;  %p6710_p5 = por %p6709_p0, %p6708_p11 }
  0x34   : > { %p6704_p8 = pneg %p6703_p7 }
  0x36   : > { %p6711_p6 = pnand %p6710_p5, %p6704_p8 }
  0x38   : > { %6714 = shalt.err (!%p6711_p6)
}
  0x39   : > { %s6820_s14 = smov 256   ;;  %s6821_s22 = smov 16  }
  0x3a   : > { %6068 = dma.hbm_to_vmem [thread:$0]  (!%p6955_p12), %s7537_s7, 16384, %s387_s16, [#allocation6], %s6820_s14, %s6820_s14, %s6821_s22  }
  0x3b   : > { %s6822_s30 = smov [#allocation8]  }
  0x3c   : > { %s402_s24 = sshll.u32 %s6822_s30, 4  ;;  %s403_s24 = int_to_ptr.vmem [resolvable:$true] %s402_s24 }
  0x3d   : > { %s6726_s15 = scalar_lea.vmem %s403_s24, 16384  ;;  %p6734_p5 = scmp.lt.s32.totalorder %s403_s24, %s403_s24 }
  0x3e   : > { %p6727_p9 = scmp.ne.s32.totalorder %s403_s24, %s6726_s15  ;;  %p6735_p2 = scmp.lt.s32.totalorder %s6726_s15, %s6726_s15 }
  0x40   : > { %p6729_p1 = pnand %p6727_p9, %p6639_p13  ;;  %p6736_p4 = por %p6735_p2, %p6734_p5 }
  0x42   : > { %p6730_p3 = pneg %p6729_p1 }
  0x44   : > { %p6737_p7 = pnand %p6736_p4, %p6730_p3 }
  0x46   : > { %6740 = shalt.err (!%p6737_p7)
}
  0x47   : > { %6071 = dma.hbm_to_vmem [thread:$0]  (!%p6955_p12), %s7539_s9, 16384, %s403_s24, [#allocation9], %s6820_s14, %s6820_s14, %s6821_s22  }
  0x48   : > { %434 = sbr.rel (%p6947_p10) target bundleno = 2156 (0x86c), region = 72  ;;  %p7558_p8 = scmp.eq.s32.totalorder (!%p6947_p10), %s6919_s29, 0 }
  0x4d   : > { %6784 = dma.done.wait (%p7558_p8), [#allocation3], 32   ;;  %p7559_p13 = pmov %p7558_p8 }
  0x4e   : > { %p7560_p11 = pmov %p7558_p8 }
  0x4f   : > { %6786 = vsyncadd (%p7559_p13), [#allocation3], 4294967264 }
  0x50   : > { %6788 = dma.done.wait (%p7560_p11), [#allocation6], 40960   ;;  %p7561_p0 = pmov %p7558_p8 }
  0x52   : > { %6790 = vsyncadd (%p7561_p0), [#allocation6], 4294926336  ;;  %p7562_p6 = pmov %p7561_p0 }
  0x53   : > { %p7563_p12 = pmov %p7561_p0 }
  0x54   : > { %6792 = dma.done.wait (%p7562_p6), [#allocation9], 16384  }
  0x55   : > { %6794 = vsyncadd (%p7563_p12), [#allocation9], 4294950912  ;;  %p488_p10 = scmp.lt.s32.totalorder %s6919_s29, 1  ;;  %v6823_v0 = vmov 0   ;;  %v5372_v1 = vld [vmem:[%s7531_s1 + $0x28] sm:$0xff]  ;;  %vm531_vm0 = vcmask 1043456   ;;  %v718_v29 = vlaneseq }
  0x56   : > { %570 = vmatprep.mubr.bf16.mxu0 %v6823_v0  ;;  %929 = vmatprep.mubr.bf16.mxu1 %v6823_v0  ;;  %v5376_v2 = vcombine.high %v5372_v1, %v5372_v1  ;;  %v5375_v3 = vcombine.low %v5372_v1, %v5372_v1  ;;  %v6136_v4 = vld [vmem:[%s7531_s1 + $0x1c] ss:$8 sps:$4 sm:$0xff]   ;;  %v506_v5 = vld [vmem:[%s7531_s1 + $0x10] sm:$0xff]  ;;  %v6138_v7 = vld [vmem:[%s7531_s1 + $0x18] ss:$8 sps:$4 sm:$0xff]   ;;  %vm527_vm1 = vcmask 195584  }
  0x57   : > { %s489_s20 = scalar_select %p488_p10, %s6919_s29, 1  ;;  %v5382_v9 = vcombine.high %v506_v5, %v506_v5  ;;  %v5381_v10 = vcombine.low %v506_v5, %v506_v5  ;;  %v6143_v12 = vld [vmem:[%s7531_s1 + $0x4] ss:$8 sps:$4 sm:$0xff]   ;;  %vm497_vm2 = vcmask 1040384   ;;  %v6141_v16 = vld [vmem:[%s7531_s1] ss:$8 sps:$4 sm:$0xff]  }
  0x58   : > { %5377 = vmatprep.subr.msk.bf16.mxu0 %vm531_vm0, %v5376_v2  ;;  %v533_v6 = vsel %vm531_vm0, %v5375_v3, 0  ;;  %v5387_v14 = vld [vmem:[%s7531_s1 + $0x40] sm:$0xff]  ;;  %v6148_v21 = vld [vmem:[%s7531_s1 + $0x34] ss:$8 sps:$4 sm:$0xff]   ;;  %vm501_vm3 = vcmask 1046528   ;;  %v7054_v32 = vshrl.u32 %v718_v29, 7  ;;  %vm5442_vm9 = vmneg %vm497_vm2 }
  0x59   : > { %s5369_s23 = sshll.u32 %s489_s20, 3  ;;  %551 = vmatpush1.bf16.msra.mxu0 %v533_v6  ;;  %v598_v15 = vsel %vm531_vm0, %v5381_v10, 0  ;;  %v5391_v18 = vcombine.high %v5387_v14, %v5387_v14  ;;  %v5390_v19 = vcombine.low %v5387_v14, %v5387_v14  ;;  %v6146_v24 = vld [vmem:[%s7531_s1 + $0x30] ss:$8 sps:$4 sm:$0xff]   ;;  %v716_v37 = vld [vmem:[%s7532_s2] sm:$0x3]  ;;  %vm7193_vm10 = vmpackc.low %vm5442_vm9, %vm5442_vm9 }
  0x5a   : > { %s491_s24 = scalar_lea.vmem %s7530_s0, %s5369_s23  ;;  %552 = vmatprep.subr.bf16.mxu0 %v6136_v4  ;;  %v7057_v35 = vsub.s32 0, %v7054_v32  ;;  %v7063_v38 = vsub.s32 1, %v7054_v32  ;;  %v6149_v52 = vld [vmem:[%s7533_s3 + $0xf4] ss:$8 sps:$4 sm:$0xff]   ;;  %v6151_v53 = vld [vmem:[%s7533_s3 + $0xf0] ss:$8 sps:$4 sm:$0xff]   ;;  %vm7300_vm12 = vmpackc.low %vm497_vm2, %vm497_vm2 }
  0x5b   : > { %v493_v8 = vld [vmem:[%s491_s24] sm:$0xff]  ;;  %v668_v23 = vsel %vm531_vm0, %v5390_v19, 0  ;;  %v6152_v54 = vld [vmem:[%s7533_s3 + $0x70] ss:$8 sps:$4 sm:$0xff]   ;;  %v6154_v57 = vld [vmem:[%s7533_s3 + $0x74] ss:$8 sps:$4 sm:$0xff]   ;;  %897 = vmatprep.subr.bf16.mxu1 %v6149_v52 }
  0x5c   : > { %v507_v11 = vpack.c.bf16 %v493_v8, %v493_v8  ;;  %v495_v13 = vrot.slane %v493_v8, 7  ;;  %v499_v22 = vrot.slane %v493_v8, 1  ;;  %v721_v41 = vrot.slane %v716_v37, %v7057_v35  ;;  %v6155_v58 = vld [vmem:[%s7533_s3 + $0xe4] ss:$8 sps:$4 sm:$0xff]   ;;  %898 = vmatpush1.bf16.msra.mxu1 %v6151_v53  ;;  %v6157_v61 = vld [vmem:[%s7533_s3 + $0xe0] ss:$8 sps:$4 sm:$0xff]  }
  0x5d   : > { %553 = vmatpush1.bf16.msra.mxu0 %v6138_v7  ;;  %v725_v45 = vrot.slane %v716_v37, %v7063_v38  ;;  %v6160_v59 = vld [vmem:[%s7533_s3 + $0x64] ss:$8 sps:$4 sm:$0xff]   ;;  %899 = vmatprep.subr.bf16.mxu1 %v6155_v58  ;;  %v6158_v62 = vld [vmem:[%s7533_s3 + $0x60] ss:$8 sps:$4 sm:$0xff]   ;;  %v6161_v63 = vld [vmem:[%s7533_s3 + $0xd4] ss:$8 sps:$4 sm:$0xff]  }
  0x5e   : > { %5383 = vmatprep.subr.msk.bf16.mxu0 %vm531_vm0, %v5382_v9  ;;  %v498_v17 = vsel %vm497_vm2, 0.0, %v495_v13  ;;  %v502_v25 = vsel %vm501_vm3, %v499_v22, 0.0  ;;  %s6824_s30 = smov 96   ;;  %v6166_v1 = vld [vmem:[%s7533_s3 + $0x54] ss:$8 sps:$4 sm:$0xff]   ;;  %s6825_s20 = smov 64  }
  0x5f   : > { %v503_v20 = vpack.c.bf16 %v498_v17, %v498_v17  ;;  %v644_v26 = vpack.c.bf16 %v502_v25, %v502_v25  ;;  %v6163_v2 = vld [vmem:[%s7533_s3 + $0xd0] ss:$8 sps:$4 sm:$0xff]   ;;  %v6167_v4 = vld [vmem:[%s7533_s3 + $0xc4] ss:$8 sps:$4 sm:$0xff]   ;;  %v6169_v6 = vld [vmem:[%s7533_s3 + $0xc0] ss:$8 sps:$4 sm:$0xff]  }
  0x60   : > { %5378 = vmatmul.mubr.msk.bf16.vlgmr.msra.gmra.mxu0 %vm527_vm1, %v507_v11  ;;  %900 = vmatpush1.bf16.msra.mxu1 %v6157_v61  ;;  %v6164_v3 = vld [vmem:[%s7533_s3 + $0x50] ss:$8 sps:$4 sm:$0xff]   ;;  %v6172_v5 = vld [vmem:[%s7533_s3 + $0x44] ss:$8 sps:$4 sm:$0xff]   ;;  %v6170_v7 = vld [vmem:[%s7533_s3 + $0x40] ss:$8 sps:$4 sm:$0xff]  }
  0x61   : > { %616 = vmatpush1.bf16.msra.mxu0 %v598_v15  ;;  %635 = vmatprep.mubr.bf16.mxu0 %v6823_v0  ;;  %v6173_v8 = vld [vmem:[%s7533_s3 + $0xb4] ss:$8 sps:$4 sm:$0xff]   ;;  %v6175_v9 = vld [vmem:[%s7533_s3 + $0xb0] ss:$8 sps:$4 sm:$0xff]   ;;  %v6181_v13 = vld [vmem:[%s7533_s3 + $0xa0] ss:$8 sps:$4 sm:$0xff]  }
  0x62   : > { %617 = vmatprep.subr.bf16.mxu0 %v6143_v12  ;;  %901 = vmatprep.subr.bf16.mxu1 %v6161_v63  ;;  %v6176_v10 = vld [vmem:[%s7533_s3 + $0x30] ss:$8 sps:$4 sm:$0xff]   ;;  %v6178_v11 = vld [vmem:[%s7533_s3 + $0x34] ss:$8 sps:$4 sm:$0xff]   ;;  %v6179_v12 = vld [vmem:[%s7533_s3 + $0xa4] ss:$8 sps:$4 sm:$0xff]  }
  0x63   : > { %v6184_v14 = vld [vmem:[%s7533_s3 + $0x24] ss:$8 sps:$4 sm:$0xff]   ;;  %v6182_v15 = vld [vmem:[%s7533_s3 + $0x20] ss:$8 sps:$4 sm:$0xff]   ;;  %v6187_v17 = vld [vmem:[%s7533_s3 + $0x90] ss:$8 sps:$4 sm:$0xff]  }
  0x64   : > { %902 = vmatpush1.bf16.msra.mxu1 %v6163_v2  ;;  %v6190_v19 = vld [vmem:[%s7533_s3 + $0x14] ss:$8 sps:$4 sm:$0xff]   ;;  %v6188_v22 = vld [vmem:[%s7533_s3 + $0x10] ss:$8 sps:$4 sm:$0xff]   ;;  %v6196_v25 = vld [vmem:[%s7533_s3 + $0x4] ss:$8 sps:$4 sm:$0xff]  }
  0x65   : > { %618 = vmatpush1.bf16.msra.mxu0 %v6141_v16  ;;  %903 = vmatprep.subr.bf16.mxu1 %v6167_v4  ;;  %v6185_v16 = vld [vmem:[%s7533_s3 + $0x94] ss:$8 sps:$4 sm:$0xff]   ;;  %s6826_s16 = smov 32   ;;  %vm753_vm4 = vcmask 261120   ;;  %vm755_vm5 = vcmask 523264   ;;  %vm757_vm6 = vcmask 785408  }
  0x66   : > { %5392 = vmatprep.subr.msk.bf16.mxu0 %vm531_vm0, %v5391_v18  ;;  %v6199_v29 = vld [vmem:[%s7533_s3 + $0x174] ss:$8 sps:$4 sm:$0xff]   ;;  %vm771_vm7 = vcmask 1041408   ;;  %vm773_vm8 = vcmask 1042432   ;;  %v6200_v53 = vld [vmem:[%s7533_s3 + $0x160] ss:$8 sps:$4 sm:$0xff]  }
  0x67   : > { %v6211_v58 = vld [vmem:[%s7533_s3 + $0x134] ss:$8 sps:$4 sm:$0xff]   ;;  %v6212_v61 = vld [vmem:[%s7533_s3 + $0x120] ss:$8 sps:$4 sm:$0xff]   ;;  %v6215_v63 = vld [vmem:[%s7533_s3 + $0x110] ss:$8 sps:$4 sm:$0xff]  }
  0x68   : > { %5384 = vmatmul.mubr.msk.bf16.vlgmr.msra.gmra.mxu0 %vm527_vm1, %v503_v20  ;;  %904 = vmatpush1.bf16.msra.mxu1 %v6169_v6  ;;  %v6218_v2 = vld [vmem:[%s7533_s3 + $0x100] ss:$8 sps:$4 sm:$0xff]   ;;  %vm5479_vm11 = vmpackc.low %vm773_vm8, %vm773_vm8  ;;  %s486_s24 = sand.u32 1, %s6805_s26   ;;  %s5994_s17 = sshll.u32 %s6919_s29, 4  ;;  %vm5246_vm13 = vcmask 73728  }
  0x69   : > { %686 = vmatpush1.bf16.msra.mxu0 %v668_v23  ;;  %705 = vmatprep.mubr.bf16.mxu0 %v6823_v0  ;;  %v6191_v23 = vld [vmem:[%s7533_s3 + $0x84] ss:$8 sps:$4 sm:$0xff]   ;;  %s487_s27 = scalar_lea.vmem [#allocation10], %s486_s24  ;;  %s7495_s14 = scalar_lea.hbm %s7543_s13, %s5994_s17 }
  0x6a   : > { %687 = vmatprep.subr.bf16.mxu0 %v6148_v21  ;;  %905 = vmatprep.subr.bf16.mxu1 %v6173_v8  ;;  %s5249_s22 = scalar_lea.sflag [#allocation4], %s486_s24  ;;  %p7568_p1 = scmp.ne.s32.totalorder %s7553_s18, 0 }
  0x6b   : > { %s6827_s29 = smov [#allocation10]  }
  0x6c   : > { %906 = vmatpush1.bf16.msra.mxu1 %v6175_v9  ;;  %s6745_s21 = sshll.u32 %s6827_s29, 4  ;;  %s6746_s21 = int_to_ptr.vmem [resolvable:$false] %s6745_s21 }
  0x6d   : > { %688 = vmatpush1.bf16.msra.mxu0 %v6146_v24  ;;  %907 = vmatprep.subr.bf16.mxu1 %v6179_v12  ;;  %v6193_v24 = vld [vmem:[%s7533_s3 + $0x80] ss:$8 sps:$4 sm:$0xff]   ;;  %s6747_s15 = scalar_lea.vmem %s6746_s21, 32 }
  0x6e   : > { %1018 = vmatprep.subr.bf16.mxu0 %v6154_v57  ;;  %v6206_v57 = vld [vmem:[%s7533_s3 + $0x140] ss:$8 sps:$4 sm:$0xff]  }
  0x70   : > { %5393 = vmatmul.mubr.msk.bf16.vlgmr.msra.gmra.mxu0 %vm527_vm1, %v644_v26  ;;  %908 = vmatpush1.bf16.msra.mxu1 %v6181_v13  ;;  %v1200_v13 = vld [vmem:[#allocation2] sm:$0x3] }
  0x71   : > { %1050 = vmatprep.mubr.bf16.mxu0 %v6823_v0  ;;  %1019 = vmatpush1.bf16.msra.mxu0 %v6152_v54  ;;  %v6205_v54 = vld [vmem:[%s7533_s3 + $0x154] ss:$8 sps:$4 sm:$0xff]  }
  0x72   : > { %1020 = vmatprep.subr.bf16.mxu0 %v6160_v59  ;;  %909 = vmatprep.subr.bf16.mxu1 %v6185_v16  ;;  %v6209_v59 = vld [vmem:[%s7533_s3 + $0x130] ss:$8 sps:$4 sm:$0xff]  }
  0x73   : > { %v1370_v16 = vld [vmem:[#allocation5 + $0x3c8] sm:$0xff] }
  0x74   : > { %910 = vmatpush1.bf16.msra.mxu1 %v6187_v17 }
  0x75   : > { %1021 = vmatpush1.bf16.msra.mxu0 %v6158_v62  ;;  %911 = vmatprep.subr.bf16.mxu1 %v6191_v23  ;;  %v6217_v62 = vld [vmem:[%s7533_s3 + $0x114] ss:$8 sps:$4 sm:$0xff]   ;;  %v1365_v23 = vld [vmem:[#allocation5 + $0x3a0] sm:$0xff] }
  0x76   : > { %1022 = vmatprep.subr.bf16.mxu0 %v6166_v1  ;;  %v6220_v1 = vld [vmem:[%s7533_s3 + $0x104] ss:$8 sps:$4 sm:$0xff]  }
  0x78   : > { %912 = vmatpush1.bf16.msra.mxu1 %v6193_v24 }
  0x79   : > { %1023 = vmatpush1.bf16.msra.mxu0 %v6164_v3  ;;  %1157 = vmatprep.subr.bf16.mxu1 %v6199_v29  ;;  %v1366_v29 = vld [vmem:[#allocation5 + $0x3a8] sm:$0xff] }
  0x7a   : > { %1024 = vmatprep.subr.bf16.mxu0 %v6172_v5 }
  0x7d   : > { %1025 = vmatpush1.bf16.msra.mxu0 %v6170_v7 }
  0x7e   : > { %1026 = vmatprep.subr.bf16.mxu0 %v6178_v11 }
  0x81   : > { %1027 = vmatpush1.bf16.msra.mxu0 %v6176_v10 }
  0x82   : > { %1028 = vmatprep.subr.bf16.mxu0 %v6184_v14  ;;  %v1369_v14 = vld [vmem:[#allocation5 + $0x3c0] sm:$0xff] }
  0x85   : > { %1029 = vmatpush1.bf16.msra.mxu0 %v6182_v15  ;;  %v1373_v15 = vld [vmem:[#allocation5 + $0x3e0] sm:$0xff] }
  0x86   : > { %1030 = vmatprep.subr.bf16.mxu0 %v6190_v19  ;;  %v5538_v19 = vcombine.low %v1369_v14, %v1373_v15 }
  0x89   : > { %1031 = vmatpush1.bf16.msra.mxu0 %v6188_v22  ;;  %v1361_v22 = vld [vmem:[#allocation5 + $0x380] sm:$0xff] }
  0x8a   : > { %1032 = vmatprep.subr.bf16.mxu0 %v6196_v25 }
 0x120   : > { %v572_v27 = vpop.f32.mrf.mxu0 }
 0x122   : > { %v574_v28 = vpop.f32.mrf.mxu0 }
 0x124   : > { %v576_v30 = vpop.f32.mrf.mxu0 }
 0x126   : > { %v577_v31 = vpop.f32.mrf.mxu0 }
 0x128   : > { %v637_v33 = vpop.f32.mrf.mxu0 }
 0x129   : > { %v638_v40 = vadd.f32 %v637_v33, %v572_v27 }
 0x12a   : > { %v639_v34 = vpop.f32.mrf.mxu0 }
 0x12b   : > { %v640_v43 = vadd.f32 %v639_v34, %v574_v28  ;;  %v6194_v28 = vld [vmem:[%s7533_s3] ss:$8 sps:$4 sm:$0xff]  }
 0x12c   : > { %v641_v36 = vpop.f32.mrf.mxu0  ;;  %1033 = vmatpush1.bf16.msra.mxu0 %v6194_v28  ;;  %v1362_v28 = vld [vmem:[#allocation5 + $0x388] sm:$0xff] }
 0x12e   : > { %v642_v39 = vpop.f32.mrf.mxu0 }
 0x130   : > { %v707_v42 = vpop.f32.mrf.mxu0 }
 0x131   : > { %v714_v44 = vadd.f32 %v707_v42, %v638_v40 }
 0x132   : > { %v709_v46 = vpop.f32.mrf.mxu0 }
 0x133   : > { %v7067_v47 = vadd.f32 %v721_v41, %v714_v44  ;;  %v715_v48 = vadd.f32 %v709_v46, %v640_v43  ;;  %v6197_v46 = vld [vmem:[%s7533_s3 + $0x170] ss:$8 sps:$4 sm:$0xff]  }
 0x134   : > { %v711_v49 = vpop.f32.mrf.mxu0 }
 0x135   : > { %v7069_v50 = vadd.f32 %v725_v45, %v715_v48  ;;  %v730_v55 = vmax.f32 %v7067_v47, 0.0 }
 0x136   : > { %v712_v51 = vpop.f32.mrf.mxu0 }
 0x137   : > { %v731_v56 = vmax.f32 %v7069_v50, 0.0  ;;  %v6202_v50 = vld [vmem:[%s7533_s3 + $0x164] ss:$8 sps:$4 sm:$0xff]  }
 0x139   : > { %v6129_v60 = vpack.i.bf16 %v731_v56, %v730_v55 }
 0x13b   : > { %6130 = vrot.lane.b32.xlu0 %v6129_v60, %s6824_s30  ;;  %v6214_v60 = vld [vmem:[%s7533_s3 + $0x124] ss:$8 sps:$4 sm:$0xff]  }
 0x1ad   : > { %v6131_v18 = vpop.permute.xlu0 %6130 }
 0x1ae   : > { %v6133_v20 = vunpack.i.h.bf16 %v6131_v18  ;;  %v6132_v21 = vunpack.i.l.bf16 %v6131_v18  ;;  %v1205_v18 = vrot.slane %v1200_v13, %v7057_v35 }
 0x1b0   : > { %v736_v26 = vmax.f32 %v730_v55, %v6132_v21  ;;  %v741_v27 = vmax.f32 %v731_v56, %v6133_v20  ;;  %v6203_v55 = vld [vmem:[%s7533_s3 + $0x150] ss:$8 sps:$4 sm:$0xff]   ;;  %v6208_v56 = vld [vmem:[%s7533_s3 + $0x144] ss:$8 sps:$4 sm:$0xff]   ;;  %v5539_v20 = vcombine.high %v1369_v14, %v1373_v15 }
 0x1b1   : > { %v1374_v21 = vld [vmem:[#allocation5 + $0x3e8] sm:$0xff] }
 0x1b2   : > { %747 = vrot.lane.b32.xlu1 %v741_v27, %s6825_s20  ;;  %743 = vrot.lane.b32.xlu0 %v736_v26, %s6824_s30  ;;  %v5540_v25 = vcombine.low %v1370_v16, %v1374_v21 }
 0x1b3   : > { %1697 = vmatprep.subr.bf16.mxu0 %v5539_v20 }
 0x1b6   : > { %750 = vrot.lane.b32.xlu1 %v741_v27, %s6826_s16  ;;  %v5531_v27 = vcombine.high %v1361_v22, %v1365_v23  ;;  %s5261_s16 = sshll.u32 %s487_s27, 4  ;;  %s5262_s16 = int_to_ptr.vmem [resolvable:$true] %s5261_s16 }
 0x1b7   : > { %s6741_s19 = scalar_lea.vmem %s5262_s16, 16  ;;  %p6748_p2 = scmp.lt.s32.totalorder %s5262_s16, %s6746_s21 }
 0x1b8   : > { %p6742_p9 = scmp.ne.s32.totalorder %s5262_s16, %s6741_s19  ;;  %p6749_p4 = scmp.lt.s32.totalorder %s6747_s15, %s6741_s19 }
 0x1ba   : > { %p6743_p3 = pnand %p6742_p9, %p7568_p1  ;;  %p6750_p7 = por %p6749_p4, %p6748_p2 }
 0x1bc   : > { %p6744_p5 = pneg %p6743_p3 }
 0x1be   : > { %p6751_p8 = pnand %p6750_p7, %p6744_p5 }
 0x224   : > { %v748_v30 = vpop.permute.xlu1 %747  ;;  %v744_v31 = vpop.permute.xlu0 %743 }
 0x225   : > { %v754_v33 = vsel %vm753_vm4, %v736_v26, %v744_v31  ;;  %v5541_v26 = vcombine.high %v1370_v16, %v1374_v21  ;;  %v1326_v21 = vld [vmem:[#allocation5 + $0x268] sm:$0xff] }
 0x226   : > { %v756_v36 = vsel %vm755_vm5, %v754_v33, %v748_v30  ;;  %v1353_v30 = vld [vmem:[#allocation5 + $0x340] sm:$0xff] }
 0x228   : > { %v751_v34 = vpop.permute.xlu1 %750 }
 0x229   : > { %v758_v37 = vsel %vm757_vm6, %v756_v36, %v751_v34  ;;  %v1209_v34 = vrot.slane %v1200_v13, %v7063_v38  ;;  %v5533_v36 = vcombine.high %v1362_v28, %v1366_v29 }
 0x22a   : > { %v760_v39 = vrot.slane %v758_v37, 1 }
 0x22c   : > { %v762_v40 = vmax.f32 %v758_v37, %v760_v39  ;;  %v1357_v37 = vld [vmem:[#allocation5 + $0x360] sm:$0xff]  ;;  %v1354_v39 = vld [vmem:[#allocation5 + $0x348] sm:$0xff] }
 0x22e   : > { %v764_v41 = vrot.slane %v762_v40, 1  ;;  %v766_v42 = vrot.slane %v762_v40, 2  ;;  %v768_v43 = vrot.slane %v762_v40, 3 }
 0x230   : > { %v770_v44 = vsel %vm497_vm2, %v762_v40, %v764_v41  ;;  %v1358_v40 = vld [vmem:[#allocation5 + $0x368] sm:$0xff] }
 0x231   : > { %v772_v45 = vsel %vm771_vm7, %v770_v44, %v766_v42  ;;  %v5530_v42 = vcombine.low %v1361_v22, %v1365_v23 }
 0x232   : > { %v774_v47 = vsel %vm773_vm8, %v772_v45, %v768_v43  ;;  %v5532_v45 = vcombine.low %v1362_v28, %v1366_v29  ;;  %v1318_v29 = vld [vmem:[#allocation5 + $0x228] sm:$0xff] }
 0x233   : > { %v776_v48 = vrot.slane %v774_v47, 7  ;;  %v799_v49 = vpack.c.bf16 %v774_v47, %v774_v47  ;;  %v779_v3 = vrot.slane %v774_v47, 1  ;;  %v5523_v47 = vcombine.high %v1353_v30, %v1357_v37 }
 0x235   : > { %930 = vmatmul.mubr.bf16.vlgmr.msra.gmra.mxu1 %v799_v49  ;;  %v5445_v52 = vpack.c.bf16 %v776_v48, %v776_v48  ;;  %v5480_v4 = vpack.c.bf16 %v779_v3, %v779_v3  ;;  %v5525_v48 = vcombine.high %v1354_v39, %v1358_v40  ;;  %v1345_v49 = vld [vmem:[#allocation5 + $0x300] sm:$0xff] }
 0x236   : > { %1158 = vmatpush1.bf16.msra.mxu1 %v6197_v46  ;;  %1189 = vmatprep.mubr.bf16.mxu1 %v6823_v0 }
 0x237   : > { %5446 = vmatmul.mubr.msk.bf16.vlgmr.msra.gmra.mxu0 %vm7193_vm10, %v5445_v52  ;;  %1159 = vmatprep.subr.bf16.mxu1 %v6202_v50  ;;  %v1349_v50 = vld [vmem:[#allocation5 + $0x320] sm:$0xff] }
 0x238   : > { %1729 = vmatprep.mubr.bf16.mxu0 %v6823_v0  ;;  %1698 = vmatpush1.bf16.msra.mxu0 %v5538_v19  ;;  %v5514_v3 = vcombine.low %v1345_v49, %v1349_v50  ;;  %v1322_v19 = vld [vmem:[#allocation5 + $0x248] sm:$0xff] }
 0x239   : > { %1699 = vmatprep.subr.bf16.mxu0 %v5531_v27  ;;  %v5492_v23 = vcombine.low %v1322_v19, %v1326_v21  ;;  %v1314_v27 = vld [vmem:[#allocation5 + $0x208] sm:$0xff] }
 0x23a   : > { %1160 = vmatpush1.bf16.msra.mxu1 %v6200_v53 }
 0x23b   : > { %1161 = vmatprep.subr.bf16.mxu1 %v6205_v54  ;;  %v1346_v54 = vld [vmem:[#allocation5 + $0x308] sm:$0xff] }
 0x23c   : > { %1700 = vmatpush1.bf16.msra.mxu0 %v5530_v42 }
 0x23d   : > { %1701 = vmatprep.subr.bf16.mxu0 %v5523_v47 }
 0x23e   : > { %1162 = vmatpush1.bf16.msra.mxu1 %v6203_v55  ;;  %v1350_v55 = vld [vmem:[#allocation5 + $0x328] sm:$0xff] }
 0x23f   : > { %1163 = vmatprep.subr.bf16.mxu1 %v6208_v56 }
 0x242   : > { %1164 = vmatpush1.bf16.msra.mxu1 %v6206_v57  ;;  %v5522_v57 = vcombine.low %v1353_v30, %v1357_v37  ;;  %v1372_v37 = vld [vmem:[#allocation5 + $0x3d8] sm:$0xff] }
 0x243   : > { %1165 = vmatprep.subr.bf16.mxu1 %v6211_v58 }
 0x244   : > { %1702 = vmatpush1.bf16.msra.mxu0 %v5522_v57 }
 0x246   : > { %1166 = vmatpush1.bf16.msra.mxu1 %v6209_v59  ;;  %v5524_v59 = vcombine.low %v1354_v39, %v1358_v40  ;;  %v1376_v40 = vld [vmem:[#allocation5 + $0x3f8] sm:$0xff] }
 0x247   : > { %1167 = vmatprep.subr.bf16.mxu1 %v6214_v60  ;;  %v5515_v60 = vcombine.high %v1345_v49, %v1349_v50  ;;  %v5544_v42 = vcombine.low %v1372_v37, %v1376_v40 }
 0x249   : > { %1703 = vmatprep.subr.bf16.mxu0 %v5515_v60  ;;  %v1364_v60 = vld [vmem:[#allocation5 + $0x398] sm:$0xff] }
 0x24a   : > { %1168 = vmatpush1.bf16.msra.mxu1 %v6212_v61  ;;  %v5517_v61 = vcombine.high %v1346_v54, %v1350_v55  ;;  %1704 = vmatpush1.bf16.msra.mxu0 %v5514_v3 }
 0x24b   : > { %1169 = vmatprep.subr.bf16.mxu1 %v6217_v62  ;;  %v1337_v62 = vld [vmem:[#allocation5 + $0x2c0] sm:$0xff] }
 0x24e   : > { %1170 = vmatpush1.bf16.msra.mxu1 %v6215_v63  ;;  %v1341_v63 = vld [vmem:[#allocation5 + $0x2e0] sm:$0xff] }
 0x24f   : > { %1171 = vmatprep.subr.bf16.mxu1 %v6220_v1  ;;  %v1338_v1 = vld [vmem:[#allocation5 + $0x2c8] sm:$0xff] }
 0x252   : > { %1172 = vmatpush1.bf16.msra.mxu1 %v6218_v2  ;;  %v1342_v2 = vld [vmem:[#allocation5 + $0x2e8] sm:$0xff] }
 0x253   : > { %1738 = vmatprep.subr.bf16.mxu1 %v5541_v26  ;;  %v1317_v26 = vld [vmem:[#allocation5 + $0x220] sm:$0xff] }
 0x255   : > { %5481 = vmatmul.mubr.msk.bf16.vlgmr.msra.gmra.mxu1 %vm5479_vm11, %v5480_v4  ;;  %v5516_v4 = vcombine.low %v1346_v54, %v1350_v55 }
 0x256   : > { %1770 = vmatprep.mubr.bf16.mxu1 %v6823_v0  ;;  %1739 = vmatpush1.bf16.msra.mxu1 %v5540_v25  ;;  %v1313_v25 = vld [vmem:[#allocation5 + $0x200] sm:$0xff] }
 0x257   : > { %1740 = vmatprep.subr.bf16.mxu1 %v5533_v36  ;;  %v5483_v28 = vcombine.high %v1313_v25, %v1317_v26  ;;  %v5482_v30 = vcombine.low %v1313_v25, %v1317_v26  ;;  %v1375_v36 = vld [vmem:[#allocation5 + $0x3f0] sm:$0xff]  ;;  %v1332_v25 = vld [vmem:[#allocation5 + $0x298] sm:$0xff] }
 0x258   : > { %v1336_v26 = vld [vmem:[#allocation5 + $0x2b8] sm:$0xff] }
 0x25a   : > { %1741 = vmatpush1.bf16.msra.mxu1 %v5532_v45 }
 0x25b   : > { %1742 = vmatprep.subr.bf16.mxu1 %v5525_v48 }
 0x25e   : > { %1743 = vmatpush1.bf16.msra.mxu1 %v5524_v59  ;;  %v1367_v59 = vld [vmem:[#allocation5 + $0x3b0] sm:$0xff] }
 0x25f   : > { %1744 = vmatprep.subr.bf16.mxu1 %v5517_v61  ;;  %v1368_v61 = vld [vmem:[#allocation5 + $0x3b8] sm:$0xff] }
 0x262   : > { %1745 = vmatpush1.bf16.msra.mxu1 %v5516_v4  ;;  %v5536_v4 = vcombine.low %v1364_v60, %v1368_v61 }
 0x2f5   : > { %v931_v5 = vpop.f32.mrf.mxu1 }
 0x2f7   : > { %v933_v6 = vpop.f32.mrf.mxu1  ;;  %v1052_v7 = vpop.f32.mrf.mxu0 }
 0x2f8   : > { %v1053_v17 = vadd.f32 %v1052_v7, %v931_v5  ;;  %v5507_v5 = vcombine.high %v1337_v62, %v1341_v63  ;;  %v1329_v7 = vld [vmem:[#allocation5 + $0x280] sm:$0xff] }
 0x2f9   : > { %v935_v8 = vpop.f32.mrf.mxu1  ;;  %v1054_v9 = vpop.f32.mrf.mxu0 }
 0x2fa   : > { %v1055_v31 = vadd.f32 %v1054_v9, %v933_v6  ;;  %v5509_v6 = vcombine.high %v1338_v1, %v1342_v2  ;;  %v1333_v8 = vld [vmem:[#allocation5 + $0x2a0] sm:$0xff]  ;;  %v1330_v9 = vld [vmem:[#allocation5 + $0x288] sm:$0xff]  ;;  %1705 = vmatprep.subr.bf16.mxu0 %v5507_v5 }
 0x2fb   : > { %v936_v10 = vpop.f32.mrf.mxu1  ;;  %v1056_v11 = vpop.f32.mrf.mxu0  ;;  %v5499_v13 = vcombine.high %v1329_v7, %v1333_v8  ;;  %v5498_v15 = vcombine.low %v1329_v7, %v1333_v8  ;;  %v1347_v7 = vld [vmem:[#allocation5 + $0x310] sm:$0xff] }
 0x2fc   : > { %v1334_v10 = vld [vmem:[#allocation5 + $0x2a8] sm:$0xff]  ;;  %v5506_v11 = vcombine.low %v1337_v62, %v1341_v63  ;;  %1746 = vmatprep.subr.bf16.mxu1 %v5509_v6  ;;  %v1359_v63 = vld [vmem:[#allocation5 + $0x370] sm:$0xff] }
 0x2fd   : > { %v1057_v12 = vpop.f32.mrf.mxu0  ;;  %v5501_v14 = vcombine.high %v1330_v9, %v1334_v10  ;;  %v5500_v16 = vcombine.low %v1330_v9, %v1334_v10  ;;  %v1351_v8 = vld [vmem:[#allocation5 + $0x330] sm:$0xff]  ;;  %v1348_v9 = vld [vmem:[#allocation5 + $0x318] sm:$0xff] }
 0x2fe   : > { %v5508_v12 = vcombine.low %v1338_v1, %v1342_v2  ;;  %1706 = vmatpush1.bf16.msra.mxu0 %v5506_v11  ;;  %v1356_v1 = vld [vmem:[#allocation5 + $0x358] sm:$0xff] }
 0x2ff   : > { %1707 = vmatprep.subr.bf16.mxu0 %v5499_v13  ;;  %v1360_v2 = vld [vmem:[#allocation5 + $0x378] sm:$0xff]  ;;  %v5519_v13 = vcombine.high %v1347_v7, %v1351_v8 }
 0x300   : > { %1747 = vmatpush1.bf16.msra.mxu1 %v5508_v12  ;;  %v5529_v6 = vcombine.high %v1356_v1, %v1360_v2  ;;  %v1352_v10 = vld [vmem:[#allocation5 + $0x338] sm:$0xff]  ;;  %v5528_v12 = vcombine.low %v1356_v1, %v1360_v2  ;;  %v1300_v1 = vld [vmem:[#allocation5 + $0x1a8] sm:$0xff] }
 0x301   : > { %1748 = vmatprep.subr.bf16.mxu1 %v5501_v14  ;;  %v5521_v14 = vcombine.high %v1348_v9, %v1352_v10 }
 0x302   : > { %1708 = vmatpush1.bf16.msra.mxu0 %v5498_v15  ;;  %v1339_v15 = vld [vmem:[#allocation5 + $0x2d0] sm:$0xff] }
 0x304   : > { %1749 = vmatpush1.bf16.msra.mxu1 %v5500_v16  ;;  %v1343_v16 = vld [vmem:[#allocation5 + $0x2f0] sm:$0xff] }
 0x315   : > { %v1191_v24 = vpop.f32.mrf.mxu1 }
 0x316   : > { %v1198_v33 = vadd.f32 %v1191_v24, %v1053_v17  ;;  %v1321_v17 = vld [vmem:[#allocation5 + $0x240] sm:$0xff]  ;;  %v5493_v24 = vcombine.high %v1322_v19, %v1326_v21  ;;  %v5518_v19 = vcombine.low %v1347_v7, %v1351_v8  ;;  %v5511_v21 = vcombine.high %v1339_v15, %v1343_v16  ;;  %v1288_v8 = vld [vmem:[#allocation5 + $0x148] sm:$0xff] }
 0x317   : > { %v1193_v41 = vpop.f32.mrf.mxu1  ;;  %v1291_v7 = vld [vmem:[#allocation5 + $0x160] sm:$0xff] }
 0x318   : > { %v7245_v43 = vadd.f32 %v1205_v18, %v1198_v33  ;;  %v1199_v44 = vadd.f32 %v1193_v41, %v1055_v31  ;;  %v1325_v18 = vld [vmem:[#allocation5 + $0x260] sm:$0xff]  ;;  %1750 = vmatprep.subr.bf16.mxu1 %v5493_v24  ;;  %v5484_v31 = vcombine.low %v1314_v27, %v1318_v29  ;;  %v5485_v33 = vcombine.high %v1314_v27, %v1318_v29  ;;  %v1335_v24 = vld [vmem:[#allocation5 + $0x2b0] sm:$0xff] }
 0x319   : > { %v1195_v46 = vpop.f32.mrf.mxu1  ;;  %v5491_v20 = vcombine.high %v1321_v17, %v1325_v18  ;;  %v5490_v22 = vcombine.low %v1321_v17, %v1325_v18  ;;  %1751 = vmatpush1.bf16.msra.mxu1 %v5492_v23  ;;  %v1340_v17 = vld [vmem:[#allocation5 + $0x2d8] sm:$0xff]  ;;  %v1331_v23 = vld [vmem:[#allocation5 + $0x290] sm:$0xff]  ;;  %v5510_v27 = vcombine.low %v1339_v15, %v1343_v16  ;;  %v1283_v15 = vld [vmem:[#allocation5 + $0x120] sm:$0xff] }
 0x31a   : > { %v1214_v52 = vmax.f32 %v7245_v43, 0.0  ;;  %v7248_v53 = vadd.f32 %v1209_v34, %v1199_v44  ;;  %1752 = vmatprep.subr.bf16.mxu1 %v5485_v33  ;;  %v1371_v34 = vld [vmem:[#allocation5 + $0x3d0] sm:$0xff]  ;;  %v5545_v44 = vcombine.high %v1372_v37, %v1376_v40  ;;  %v5537_v43 = vcombine.high %v1364_v60, %v1368_v61  ;;  %v1344_v18 = vld [vmem:[#allocation5 + $0x2f8] sm:$0xff]  ;;  %v1280_v16 = vld [vmem:[#allocation5 + $0x108] sm:$0xff] }
 0x31b   : > { %v1196_v56 = vpop.f32.mrf.mxu1  ;;  %1709 = vmatprep.subr.bf16.mxu0 %v5491_v20  ;;  %v5543_v39 = vcombine.high %v1371_v34, %v1375_v36  ;;  %v5542_v41 = vcombine.low %v1371_v34, %v1375_v36  ;;  %v5520_v20 = vcombine.low %v1348_v9, %v1352_v10  ;;  %v5503_v29 = vcombine.high %v1331_v23, %v1335_v24  ;;  %v1327_v33 = vld [vmem:[#allocation5 + $0x270] sm:$0xff]  ;;  %v1324_v34 = vld [vmem:[#allocation5 + $0x258] sm:$0xff]  ;;  %v1292_v9 = vld [vmem:[#allocation5 + $0x168] sm:$0xff] }
 0x31c   : > { %v1215_v58 = vmax.f32 %v7248_v53, 0.0  ;;  %1217 = vrot.lane.b32.xlu1 %v1214_v52, %s6825_s20  ;;  %1710 = vmatpush1.bf16.msra.mxu0 %v5490_v22  ;;  %v1363_v56 = vld [vmem:[#allocation5 + $0x390] sm:$0xff]  ;;  %v5513_v22 = vcombine.high %v1340_v17, %v1344_v18  ;;  %v1328_v36 = vld [vmem:[#allocation5 + $0x278] sm:$0xff]  ;;  %v5502_v37 = vcombine.low %v1331_v23, %v1335_v24  ;;  %v1272_v23 = vld [vmem:[#allocation5 + $0xc8] sm:$0xff] }
 0x31d   : > { %1711 = vmatprep.subr.bf16.mxu0 %v5483_v28  ;;  %1753 = vmatpush1.bf16.msra.mxu1 %v5484_v31  ;;  %v5534_v3 = vcombine.low %v1363_v56, %v1367_v59  ;;  %v5512_v28 = vcombine.low %v1340_v17, %v1344_v18  ;;  %v1323_v31 = vld [vmem:[#allocation5 + $0x250] sm:$0xff]  ;;  %v1284_v17 = vld [vmem:[#allocation5 + $0x128] sm:$0xff] }
 0x31e   : > { %1222 = vrot.lane.b32.xlu0 %v1215_v58, %s6825_s20  ;;  %1820 = vmatprep.subr.bf16.mxu1 %v5545_v44  ;;  %v5495_v40 = vcombine.high %v1323_v31, %v1327_v33  ;;  %v1319_v44 = vld [vmem:[#allocation5 + $0x230] sm:$0xff]  ;;  %v1276_v24 = vld [vmem:[#allocation5 + $0xe8] sm:$0xff] }
 0x320   : > { %1712 = vmatpush1.bf16.msra.mxu0 %v5482_v30  ;;  %v5505_v30 = vcombine.high %v1332_v25, %v1336_v26 }
 0x321   : > { %1779 = vmatprep.subr.bf16.mxu0 %v5543_v39  ;;  %v5504_v39 = vcombine.low %v1332_v25, %v1336_v26  ;;  %v5580_v26 = vcombine.low %v1280_v16, %v1284_v17 }
 0x38e   : > { %v1218_v47 = vpop.permute.xlu1 %1217 }
 0x38f   : > { %v1220_v48 = vmax.f32 %v1214_v52, %v1218_v47  ;;  %v1355_v52 = vld [vmem:[#allocation5 + $0x350] sm:$0xff]  ;;  %v5494_v47 = vcombine.low %v1323_v31, %v1327_v33  ;;  %v1264_v31 = vld [vmem:[#allocation5 + $0x88] sm:$0xff] }
 0x390   : > { %v1223_v45 = vpop.permute.xlu0 %1222  ;;  %v5527_v5 = vcombine.high %v1355_v52, %v1359_v63  ;;  %v5526_v11 = vcombine.low %v1355_v52, %v1359_v63  ;;  %v1299_v52 = vld [vmem:[#allocation5 + $0x1a0] sm:$0xff]  ;;  %v1296_v63 = vld [vmem:[#allocation5 + $0x188] sm:$0xff] }
 0x391   : > { %v1225_v46 = vmax.f32 %v1215_v58, %v1223_v45  ;;  %v5535_v58 = vcombine.high %v1363_v56, %v1367_v59  ;;  %v1316_v45 = vld [vmem:[#allocation5 + $0x218] sm:$0xff]  ;;  %v1304_v56 = vld [vmem:[#allocation5 + $0x1c8] sm:$0xff] }
 0x392   : > { %v1268_v33 = vld [vmem:[#allocation5 + $0xa8] sm:$0xff] }
 0x393   : > { %1227 = vrot.lane.b32.xlu0 %v1225_v46, %s6825_s20  ;;  %v1320_v46 = vld [vmem:[#allocation5 + $0x238] sm:$0xff] }
 0x394   : > { %v5488_v60 = vcombine.low %v1316_v45, %v1320_v46 }
 0x405   : > { %v1228_v49 = vpop.permute.xlu0 %1227 }
 0x406   : > { %v1230_v50 = vsel %vm755_vm5, %v1220_v48, %v1228_v49  ;;  %v5496_v48 = vcombine.low %v1324_v34, %v1328_v36 }
 0x407   : > { %v1232_v54 = vrot.slane %v1230_v50, 1 }
 0x409   : > { %v1234_v55 = vmax.f32 %v1230_v50, %v1232_v54  ;;  %v5489_v50 = vcombine.high %v1316_v45, %v1320_v46  ;;  %v1303_v54 = vld [vmem:[#allocation5 + $0x1c0] sm:$0xff]  ;;  %v5564_v46 = vcombine.low %v1264_v31, %v1268_v33 }
 0x40b   : > { %v1236_v57 = vrot.slane %v1234_v55, 1 }
 0x40d   : > { %v7264_v62 = vsel %vm497_vm2, %v1234_v55, %v1236_v57  ;;  %v1307_v55 = vld [vmem:[#allocation5 + $0x1e0] sm:$0xff]  ;;  %v1308_v57 = vld [vmem:[#allocation5 + $0x1e8] sm:$0xff] }
 0x40e   : > { %v7268_v53 = vpack.c.bf16 %v7264_v62, %v7264_v62  ;;  %v5603_v61 = vcombine.high %v1303_v54, %v1307_v55  ;;  %v5602_v2 = vcombine.low %v1303_v54, %v1307_v55  ;;  %v1248_v54 = vld [vmem:[#allocation5 + $0x8] sm:$0xff] }
 0x40f   : > { %v1252_v55 = vld [vmem:[#allocation5 + $0x28] sm:$0xff] }
 0x410   : > { %1730 = vmatmul.mubr.bf16.vlgmr.msra.gmra.mxu0 %v7268_v53  ;;  %1771 = vmatmul.mubr.bf16.vlgmr.msra.gmra.mxu1 %v7268_v53 }
 0x411   : > { %1780 = vmatpush1.bf16.msra.mxu0 %v5542_v41  ;;  %1821 = vmatpush1.bf16.msra.mxu1 %v5544_v42  ;;  %v5497_v41 = vcombine.high %v1324_v34, %v1328_v36  ;;  %v1315_v42 = vld [vmem:[#allocation5 + $0x210] sm:$0xff]  ;;  %v5572_v36 = vcombine.low %v1272_v23, %v1276_v24 }
 0x412   : > { %1781 = vmatprep.subr.bf16.mxu0 %v5535_v58  ;;  %1822 = vmatprep.subr.bf16.mxu1 %v5537_v43  ;;  %v5487_v49 = vcombine.high %v1315_v42, %v1319_v44  ;;  %v5486_v59 = vcombine.low %v1315_v42, %v1319_v44  ;;  %v5605_v58 = vcombine.high %v1304_v56, %v1308_v57  ;;  %v1295_v43 = vld [vmem:[#allocation5 + $0x180] sm:$0xff]  ;;  %v1256_v42 = vld [vmem:[#allocation5 + $0x48] sm:$0xff] }
 0x413   : > { %1811 = vmatprep.mubr.bf16.mxu0 %v6823_v0  ;;  %1852 = vmatprep.mubr.bf16.mxu1 %v6823_v0  ;;  %v5594_v10 = vcombine.low %v1295_v43, %v1299_v52  ;;  %v1260_v44 = vld [vmem:[#allocation5 + $0x68] sm:$0xff] }
 0x415   : > { %1782 = vmatpush1.bf16.msra.mxu0 %v5534_v3  ;;  %1823 = vmatpush1.bf16.msra.mxu1 %v5536_v4  ;;  %v5604_v3 = vcombine.low %v1304_v56, %v1308_v57  ;;  %v5595_v4 = vcombine.high %v1295_v43, %v1299_v52  ;;  %v5556_v57 = vcombine.low %v1256_v42, %v1260_v44  ;;  %v1306_v43 = vld [vmem:[#allocation5 + $0x1d8] sm:$0xff] }
 0x416   : > { %1783 = vmatprep.subr.bf16.mxu0 %v5527_v5  ;;  %1824 = vmatprep.subr.bf16.mxu1 %v5529_v6  ;;  %v5597_v5 = vcombine.high %v1296_v63, %v1300_v1  ;;  %v1287_v6 = vld [vmem:[#allocation5 + $0x140] sm:$0xff]  ;;  %v1310_v52 = vld [vmem:[#allocation5 + $0x1f8] sm:$0xff] }
 0x417   : > { %v5586_v18 = vcombine.low %v1287_v6, %v1291_v7 }
 0x419   : > { %1784 = vmatpush1.bf16.msra.mxu0 %v5526_v11  ;;  %1825 = vmatpush1.bf16.msra.mxu1 %v5528_v12  ;;  %v5596_v11 = vcombine.low %v1296_v63, %v1300_v1  ;;  %v5587_v12 = vcombine.high %v1287_v6, %v1291_v7  ;;  %v5548_v1 = vcombine.low %v1248_v54, %v1252_v55  ;;  %v1301_v6 = vld [vmem:[#allocation5 + $0x1b0] sm:$0xff]  ;;  %v1298_v7 = vld [vmem:[#allocation5 + $0x198] sm:$0xff] }
 0x41a   : > { %1785 = vmatprep.subr.bf16.mxu0 %v5519_v13  ;;  %1826 = vmatprep.subr.bf16.mxu1 %v5521_v14  ;;  %v5589_v13 = vcombine.high %v1288_v8, %v1292_v9  ;;  %v1279_v14 = vld [vmem:[#allocation5 + $0x100] sm:$0xff] }
 0x41b   : > { %v5578_v25 = vcombine.low %v1279_v14, %v1283_v15 }
 0x41d   : > { %1786 = vmatpush1.bf16.msra.mxu0 %v5518_v19  ;;  %1827 = vmatpush1.bf16.msra.mxu1 %v5520_v20  ;;  %v5579_v19 = vcombine.high %v1279_v14, %v1283_v15  ;;  %v5581_v20 = vcombine.high %v1280_v16, %v1284_v17  ;;  %v1289_v14 = vld [vmem:[#allocation5 + $0x150] sm:$0xff]  ;;  %v1290_v16 = vld [vmem:[#allocation5 + $0x158] sm:$0xff] }
 0x41e   : > { %1787 = vmatprep.subr.bf16.mxu0 %v5511_v21  ;;  %1828 = vmatprep.subr.bf16.mxu1 %v5513_v22  ;;  %v1271_v21 = vld [vmem:[#allocation5 + $0xc0] sm:$0xff]  ;;  %v1293_v15 = vld [vmem:[#allocation5 + $0x170] sm:$0xff]  ;;  %v1294_v17 = vld [vmem:[#allocation5 + $0x178] sm:$0xff] }
 0x41f   : > { %v1275_v22 = vld [vmem:[#allocation5 + $0xe0] sm:$0xff] }
 0x420   : > { %v5570_v34 = vcombine.low %v1271_v21, %v1275_v22 }
 0x421   : > { %1788 = vmatpush1.bf16.msra.mxu0 %v5510_v27  ;;  %1829 = vmatpush1.bf16.msra.mxu1 %v5512_v28  ;;  %v5571_v27 = vcombine.high %v1271_v21, %v1275_v22  ;;  %v5573_v28 = vcombine.high %v1272_v23, %v1276_v24  ;;  %v1281_v21 = vld [vmem:[#allocation5 + $0x110] sm:$0xff]  ;;  %v1282_v23 = vld [vmem:[#allocation5 + $0x118] sm:$0xff] }
 0x422   : > { %1789 = vmatprep.subr.bf16.mxu0 %v5503_v29  ;;  %1830 = vmatprep.subr.bf16.mxu1 %v5505_v30  ;;  %v1263_v29 = vld [vmem:[#allocation5 + $0x80] sm:$0xff]  ;;  %v1285_v22 = vld [vmem:[#allocation5 + $0x130] sm:$0xff]  ;;  %v1286_v24 = vld [vmem:[#allocation5 + $0x138] sm:$0xff] }
 0x423   : > { %v1267_v30 = vld [vmem:[#allocation5 + $0xa0] sm:$0xff] }
 0x424   : > { %v5562_v45 = vcombine.low %v1263_v29, %v1267_v30 }
 0x425   : > { %1790 = vmatpush1.bf16.msra.mxu0 %v5502_v37  ;;  %1831 = vmatpush1.bf16.msra.mxu1 %v5504_v39  ;;  %v5563_v37 = vcombine.high %v1263_v29, %v1267_v30  ;;  %v5565_v39 = vcombine.high %v1264_v31, %v1268_v33  ;;  %v1273_v29 = vld [vmem:[#allocation5 + $0xd0] sm:$0xff]  ;;  %v1274_v31 = vld [vmem:[#allocation5 + $0xd8] sm:$0xff] }
 0x426   : > { %1791 = vmatprep.subr.bf16.mxu0 %v5495_v40  ;;  %1832 = vmatprep.subr.bf16.mxu1 %v5497_v41  ;;  %v1255_v40 = vld [vmem:[#allocation5 + $0x40] sm:$0xff]  ;;  %v1277_v30 = vld [vmem:[#allocation5 + $0xf0] sm:$0xff]  ;;  %v1278_v33 = vld [vmem:[#allocation5 + $0xf8] sm:$0xff] }
 0x427   : > { %v1259_v41 = vld [vmem:[#allocation5 + $0x60] sm:$0xff] }
 0x428   : > { %v5554_v56 = vcombine.low %v1255_v40, %v1259_v41 }
 0x429   : > { %1792 = vmatpush1.bf16.msra.mxu0 %v5494_v47  ;;  %1833 = vmatpush1.bf16.msra.mxu1 %v5496_v48  ;;  %v5555_v47 = vcombine.high %v1255_v40, %v1259_v41  ;;  %v5557_v48 = vcombine.high %v1256_v42, %v1260_v44  ;;  %v1265_v40 = vld [vmem:[#allocation5 + $0x90] sm:$0xff]  ;;  %v1266_v42 = vld [vmem:[#allocation5 + $0x98] sm:$0xff] }
 0x42a   : > { %1793 = vmatprep.subr.bf16.mxu0 %v5487_v49  ;;  %1834 = vmatprep.subr.bf16.mxu1 %v5489_v50  ;;  %v1247_v49 = vld [vmem:[#allocation5] sm:$0xff]  ;;  %v1269_v41 = vld [vmem:[#allocation5 + $0xb0] sm:$0xff]  ;;  %v1270_v44 = vld [vmem:[#allocation5 + $0xb8] sm:$0xff] }
 0x42b   : > { %v1251_v50 = vld [vmem:[#allocation5 + $0x20] sm:$0xff] }
 0x42c   : > { %v5546_v63 = vcombine.low %v1247_v49, %v1251_v50 }
 0x42d   : > { %1794 = vmatpush1.bf16.msra.mxu0 %v5486_v59  ;;  %1835 = vmatpush1.bf16.msra.mxu1 %v5488_v60  ;;  %v5547_v59 = vcombine.high %v1247_v49, %v1251_v50  ;;  %v5549_v60 = vcombine.high %v1248_v54, %v1252_v55  ;;  %v1257_v49 = vld [vmem:[#allocation5 + $0x50] sm:$0xff]  ;;  %v1258_v54 = vld [vmem:[#allocation5 + $0x58] sm:$0xff] }
 0x42e   : > { %2181 = vmatprep.subr.bf16.mxu0 %v5603_v61  ;;  %2222 = vmatprep.subr.bf16.mxu1 %v5605_v58  ;;  %v1305_v61 = vld [vmem:[#allocation5 + $0x1d0] sm:$0xff]  ;;  %v1262_v55 = vld [vmem:[#allocation5 + $0x78] sm:$0xff] }
 0x42f   : > { %v1309_v58 = vld [vmem:[#allocation5 + $0x1f0] sm:$0xff] }
 0x430   : > { %1812 = vmatmul.mubr.bf16.vlgmr.msra.gmra.mxu0 %v7268_v53  ;;  %1853 = vmatmul.mubr.bf16.vlgmr.msra.gmra.mxu1 %v7268_v53  ;;  %v5588_v53 = vcombine.low %v1288_v8, %v1292_v9  ;;  %v1302_v8 = vld [vmem:[#allocation5 + $0x1b8] sm:$0xff]  ;;  %v5606_v9 = vcombine.low %v1305_v61, %v1309_v58  ;;  %v1261_v50 = vld [vmem:[#allocation5 + $0x70] sm:$0xff] }
 0x431   : > { %2182 = vmatpush1.bf16.msra.mxu0 %v5602_v2  ;;  %2223 = vmatpush1.bf16.msra.mxu1 %v5604_v3  ;;  %v1240_v2 = vrot.slane %v7264_v62, 7  ;;  %v5607_v3 = vcombine.high %v1305_v61, %v1309_v58  ;;  %v1249_v61 = vld [vmem:[#allocation5 + $0x10] sm:$0xff] }
 0x432   : > { %2183 = vmatprep.subr.bf16.mxu0 %v5595_v4  ;;  %2224 = vmatprep.subr.bf16.mxu1 %v5597_v5  ;;  %v5609_v4 = vcombine.high %v1306_v43, %v1310_v52  ;;  %v1297_v5 = vld [vmem:[#allocation5 + $0x190] sm:$0xff] }
 0x433   : > { %2213 = vmatprep.mubr.bf16.mxu0 %v6823_v0  ;;  %2254 = vmatprep.mubr.bf16.mxu1 %v6823_v0  ;;  %v1253_v58 = vld [vmem:[#allocation5 + $0x30] sm:$0xff] }
 0x435   : > { %2184 = vmatpush1.bf16.msra.mxu0 %v5594_v10  ;;  %2225 = vmatpush1.bf16.msra.mxu1 %v5596_v11  ;;  %v5608_v10 = vcombine.low %v1306_v43, %v1310_v52  ;;  %v7279_v11 = vpack.c.bf16 %v1240_v2, %v1240_v2  ;;  %v1250_v43 = vld [vmem:[#allocation5 + $0x18] sm:$0xff]  ;;  %v5551_v2 = vcombine.high %v1249_v61, %v1253_v58 }
 0x436   : > { %2185 = vmatprep.subr.bf16.mxu0 %v5587_v12  ;;  %2226 = vmatprep.subr.bf16.mxu1 %v5589_v13  ;;  %v5599_v12 = vcombine.high %v1297_v5, %v1301_v6  ;;  %v5601_v13 = vcombine.high %v1298_v7, %v1302_v8  ;;  %v1254_v52 = vld [vmem:[#allocation5 + $0x38] sm:$0xff] }
 0x439   : > { %2186 = vmatpush1.bf16.msra.mxu0 %v5586_v18  ;;  %2227 = vmatpush1.bf16.msra.mxu1 %v5588_v53  ;;  %v5598_v18 = vcombine.low %v1297_v5, %v1301_v6  ;;  %v5600_v53 = vcombine.low %v1298_v7, %v1302_v8  ;;  %v2407_v5 = vld [vmem:[#allocation5 + $0x5e0] sm:$0xff]  ;;  %v2404_v6 = vld [vmem:[#allocation5 + $0x5c8] sm:$0xff]  ;;  %v5550_v8 = vcombine.low %v1249_v61, %v1253_v58 }
 0x43a   : > { %2187 = vmatprep.subr.bf16.mxu0 %v5579_v19  ;;  %2228 = vmatprep.subr.bf16.mxu1 %v5581_v20  ;;  %v5591_v19 = vcombine.high %v1289_v14, %v1293_v15  ;;  %v5593_v20 = vcombine.high %v1290_v16, %v1294_v17  ;;  %v2408_v7 = vld [vmem:[#allocation5 + $0x5e8] sm:$0xff] }
 0x43b   : > { %v2360_v61 = vld [vmem:[#allocation5 + $0x468] sm:$0xff] }
 0x43d   : > { %2188 = vmatpush1.bf16.msra.mxu0 %v5578_v25  ;;  %2229 = vmatpush1.bf16.msra.mxu1 %v5580_v26  ;;  %v5590_v25 = vcombine.low %v1289_v14, %v1293_v15  ;;  %v5592_v26 = vcombine.low %v1290_v16, %v1294_v17  ;;  %v2399_v14 = vld [vmem:[#allocation5 + $0x5a0] sm:$0xff]  ;;  %v2396_v15 = vld [vmem:[#allocation5 + $0x588] sm:$0xff] }
 0x43e   : > { %2189 = vmatprep.subr.bf16.mxu0 %v5571_v27  ;;  %2230 = vmatprep.subr.bf16.mxu1 %v5573_v28  ;;  %v5583_v27 = vcombine.high %v1281_v21, %v1285_v22  ;;  %v5585_v28 = vcombine.high %v1282_v23, %v1286_v24  ;;  %v2400_v16 = vld [vmem:[#allocation5 + $0x5a8] sm:$0xff] }
 0x441   : > { %2190 = vmatpush1.bf16.msra.mxu0 %v5570_v34  ;;  %2231 = vmatpush1.bf16.msra.mxu1 %v5572_v36  ;;  %v5582_v34 = vcombine.low %v1281_v21, %v1285_v22  ;;  %v5584_v36 = vcombine.low %v1282_v23, %v1286_v24  ;;  %v2391_v21 = vld [vmem:[#allocation5 + $0x560] sm:$0xff]  ;;  %v2388_v22 = vld [vmem:[#allocation5 + $0x548] sm:$0xff] }
 0x442   : > { %2191 = vmatprep.subr.bf16.mxu0 %v5563_v37  ;;  %2232 = vmatprep.subr.bf16.mxu1 %v5565_v39  ;;  %v5575_v37 = vcombine.high %v1273_v29, %v1277_v30  ;;  %v5577_v39 = vcombine.high %v1274_v31, %v1278_v33  ;;  %v2392_v23 = vld [vmem:[#allocation5 + $0x568] sm:$0xff] }
 0x445   : > { %2192 = vmatpush1.bf16.msra.mxu0 %v5562_v45  ;;  %2233 = vmatpush1.bf16.msra.mxu1 %v5564_v46  ;;  %v5574_v45 = vcombine.low %v1273_v29, %v1277_v30  ;;  %v5576_v46 = vcombine.low %v1274_v31, %v1278_v33  ;;  %v2383_v29 = vld [vmem:[#allocation5 + $0x520] sm:$0xff]  ;;  %v2380_v30 = vld [vmem:[#allocation5 + $0x508] sm:$0xff] }
 0x446   : > { %2193 = vmatprep.subr.bf16.mxu0 %v5555_v47  ;;  %2234 = vmatprep.subr.bf16.mxu1 %v5557_v48  ;;  %v5567_v47 = vcombine.high %v1265_v40, %v1269_v41  ;;  %v5569_v48 = vcombine.high %v1266_v42, %v1270_v44  ;;  %v2384_v31 = vld [vmem:[#allocation5 + $0x528] sm:$0xff] }
 0x449   : > { %2194 = vmatpush1.bf16.msra.mxu0 %v5554_v56  ;;  %2235 = vmatpush1.bf16.msra.mxu1 %v5556_v57  ;;  %v5566_v56 = vcombine.low %v1265_v40, %v1269_v41  ;;  %v5568_v57 = vcombine.low %v1266_v42, %v1270_v44  ;;  %v2376_v40 = vld [vmem:[#allocation5 + $0x4e8] sm:$0xff]  ;;  %v5664_v42 = vcombine.low %v2380_v30, %v2384_v31 }
 0x44a   : > { %2195 = vmatprep.subr.bf16.mxu0 %v5547_v59  ;;  %2236 = vmatprep.subr.bf16.mxu1 %v5549_v60  ;;  %v5559_v59 = vcombine.high %v1257_v49, %v1261_v50  ;;  %v5561_v60 = vcombine.high %v1258_v54, %v1262_v55 }
 0x44d   : > { %2196 = vmatpush1.bf16.msra.mxu0 %v5546_v63  ;;  %2237 = vmatpush1.bf16.msra.mxu1 %v5548_v1  ;;  %v5558_v63 = vcombine.low %v1257_v49, %v1261_v50  ;;  %v5560_v1 = vcombine.low %v1258_v54, %v1262_v55  ;;  %v2368_v49 = vld [vmem:[#allocation5 + $0x4a8] sm:$0xff] }
 0x44e   : > { %2263 = vmatprep.subr.bf16.mxu0 %v5607_v3  ;;  %2304 = vmatprep.subr.bf16.mxu1 %v5609_v4  ;;  %v5553_v3 = vcombine.high %v1250_v43, %v1254_v52  ;;  %v2403_v4 = vld [vmem:[#allocation5 + $0x5c0] sm:$0xff] }
 0x44f   : > { %v5686_v17 = vcombine.low %v2403_v4, %v2407_v5 }
 0x450   : > { %5614 = vmatmul.mubr.msk.bf16.vlgmr.msra.gmra.mxu0 %vm7193_vm10, %v7279_v11  ;;  %5619 = vmatmul.mubr.msk.bf16.vlgmr.msra.gmra.mxu1 %vm7193_vm10, %v7279_v11 }
 0x451   : > { %2264 = vmatpush1.bf16.msra.mxu0 %v5606_v9  ;;  %2305 = vmatpush1.bf16.msra.mxu1 %v5608_v10  ;;  %v5552_v9 = vcombine.low %v1250_v43, %v1254_v52  ;;  %v5687_v10 = vcombine.high %v2403_v4, %v2407_v5  ;;  %v2352_v4 = vld [vmem:[#allocation5 + $0x428] sm:$0xff] }
 0x452   : > { %2265 = vmatprep.subr.bf16.mxu0 %v5599_v12  ;;  %2306 = vmatprep.subr.bf16.mxu1 %v5601_v13  ;;  %v5689_v12 = vcombine.high %v2404_v6, %v2408_v7  ;;  %v2395_v13 = vld [vmem:[#allocation5 + $0x580] sm:$0xff] }
 0x453   : > { %2295 = vmatprep.mubr.bf16.mxu0 %v6823_v0  ;;  %2336 = vmatprep.mubr.bf16.mxu1 %v6823_v0  ;;  %v5678_v24 = vcombine.low %v2395_v13, %v2399_v14 }
 0x455   : > { %2266 = vmatpush1.bf16.msra.mxu0 %v5598_v18  ;;  %2307 = vmatpush1.bf16.msra.mxu1 %v5600_v53  ;;  %v5688_v18 = vcombine.low %v2404_v6, %v2408_v7  ;;  %v5679_v53 = vcombine.high %v2395_v13, %v2399_v14  ;;  %v2410_v13 = vld [vmem:[#allocation5 + $0x5f8] sm:$0xff] }
 0x456   : > { %2267 = vmatprep.subr.bf16.mxu0 %v5591_v19  ;;  %2308 = vmatprep.subr.bf16.mxu1 %v5593_v20  ;;  %v5681_v19 = vcombine.high %v2396_v15, %v2400_v16  ;;  %v2387_v20 = vld [vmem:[#allocation5 + $0x540] sm:$0xff] }
 0x457   : > { %v5670_v51 = vcombine.low %v2387_v20, %v2391_v21 }
 0x459   : > { %2268 = vmatpush1.bf16.msra.mxu0 %v5590_v25  ;;  %2309 = vmatpush1.bf16.msra.mxu1 %v5592_v26  ;;  %v5680_v25 = vcombine.low %v2396_v15, %v2400_v16  ;;  %v5671_v26 = vcombine.high %v2387_v20, %v2391_v21  ;;  %v1243_v16 = vrot.slane %v7264_v62, 1  ;;  %v2398_v20 = vld [vmem:[#allocation5 + $0x598] sm:$0xff] }
 0x45a   : > { %2269 = vmatprep.subr.bf16.mxu0 %v5583_v27  ;;  %2310 = vmatprep.subr.bf16.mxu1 %v5585_v28  ;;  %v5673_v27 = vcombine.high %v2388_v22, %v2392_v23  ;;  %v2379_v28 = vld [vmem:[#allocation5 + $0x500] sm:$0xff]  ;;  %v2402_v21 = vld [vmem:[#allocation5 + $0x5b8] sm:$0xff] }
 0x45b   : > { %v5663_v33 = vcombine.high %v2379_v28, %v2383_v29  ;;  %v5662_v41 = vcombine.low %v2379_v28, %v2383_v29  ;;  %v2393_v28 = vld [vmem:[#allocation5 + $0x570] sm:$0xff]  ;;  %v2390_v29 = vld [vmem:[#allocation5 + $0x558] sm:$0xff] }
 0x45d   : > { %2270 = vmatpush1.bf16.msra.mxu0 %v5582_v34  ;;  %2311 = vmatpush1.bf16.msra.mxu1 %v5584_v36  ;;  %v5665_v34 = vcombine.high %v2380_v30, %v2384_v31  ;;  %v2371_v36 = vld [vmem:[#allocation5 + $0x4c0] sm:$0xff]  ;;  %v2394_v30 = vld [vmem:[#allocation5 + $0x578] sm:$0xff] }
 0x45e   : > { %2271 = vmatprep.subr.bf16.mxu0 %v5575_v37  ;;  %2312 = vmatprep.subr.bf16.mxu1 %v5577_v39  ;;  %v2375_v37 = vld [vmem:[#allocation5 + $0x4e0] sm:$0xff]  ;;  %v2372_v39 = vld [vmem:[#allocation5 + $0x4c8] sm:$0xff] }
 0x45f   : > { %v5655_v44 = vcombine.high %v2371_v36, %v2375_v37  ;;  %v5654_v50 = vcombine.low %v2371_v36, %v2375_v37  ;;  %v5656_v54 = vcombine.low %v2372_v39, %v2376_v40  ;;  %v2385_v36 = vld [vmem:[#allocation5 + $0x530] sm:$0xff]  ;;  %v2382_v37 = vld [vmem:[#allocation5 + $0x518] sm:$0xff] }
 0x461   : > { %2272 = vmatpush1.bf16.msra.mxu0 %v5574_v45  ;;  %2313 = vmatpush1.bf16.msra.mxu1 %v5576_v46  ;;  %v5657_v45 = vcombine.high %v2372_v39, %v2376_v40  ;;  %v2363_v46 = vld [vmem:[#allocation5 + $0x480] sm:$0xff]  ;;  %v2386_v39 = vld [vmem:[#allocation5 + $0x538] sm:$0xff] }
 0x462   : > { %2273 = vmatprep.subr.bf16.mxu0 %v5567_v47  ;;  %2314 = vmatprep.subr.bf16.mxu1 %v5569_v48  ;;  %v2367_v47 = vld [vmem:[#allocation5 + $0x4a0] sm:$0xff]  ;;  %v2364_v48 = vld [vmem:[#allocation5 + $0x488] sm:$0xff] }
 0x463   : > { %v5647_v55 = vcombine.high %v2363_v46, %v2367_v47  ;;  %v5646_v58 = vcombine.low %v2363_v46, %v2367_v47  ;;  %v5648_v43 = vcombine.low %v2364_v48, %v2368_v49  ;;  %v2377_v46 = vld [vmem:[#allocation5 + $0x4f0] sm:$0xff]  ;;  %v2374_v47 = vld [vmem:[#allocation5 + $0x4d8] sm:$0xff] }
 0x465   : > { %2274 = vmatpush1.bf16.msra.mxu0 %v5566_v56  ;;  %2315 = vmatpush1.bf16.msra.mxu1 %v5568_v57  ;;  %v5649_v56 = vcombine.high %v2364_v48, %v2368_v49  ;;  %v2355_v57 = vld [vmem:[#allocation5 + $0x440] sm:$0xff]  ;;  %v2378_v48 = vld [vmem:[#allocation5 + $0x4f8] sm:$0xff] }
 0x466   : > { %2275 = vmatprep.subr.bf16.mxu0 %v5559_v59  ;;  %2316 = vmatprep.subr.bf16.mxu1 %v5561_v60  ;;  %v2359_v59 = vld [vmem:[#allocation5 + $0x460] sm:$0xff]  ;;  %v2356_v60 = vld [vmem:[#allocation5 + $0x448] sm:$0xff] }
 0x467   : > { %v5639_v52 = vcombine.high %v2355_v57, %v2359_v59  ;;  %v5638_v5 = vcombine.low %v2355_v57, %v2359_v59  ;;  %v5640_v6 = vcombine.low %v2356_v60, %v2360_v61  ;;  %v2366_v57 = vld [vmem:[#allocation5 + $0x498] sm:$0xff] }
 0x468   : > { %v2370_v59 = vld [vmem:[#allocation5 + $0x4b8] sm:$0xff] }
 0x469   : > { %2276 = vmatpush1.bf16.msra.mxu0 %v5558_v63  ;;  %2317 = vmatpush1.bf16.msra.mxu1 %v5560_v1  ;;  %v5641_v63 = vcombine.high %v2356_v60, %v2360_v61  ;;  %v2347_v1 = vld [vmem:[#allocation5 + $0x400] sm:$0xff]  ;;  %v5660_v61 = vcombine.low %v2374_v47, %v2378_v48 }
 0x46a   : > { %2277 = vmatprep.subr.bf16.mxu0 %v5551_v2  ;;  %2318 = vmatprep.subr.bf16.mxu1 %v5553_v3  ;;  %v2351_v2 = vld [vmem:[#allocation5 + $0x420] sm:$0xff]  ;;  %v2348_v3 = vld [vmem:[#allocation5 + $0x408] sm:$0xff] }
 0x46b   : > { %v5631_v7 = vcombine.high %v2347_v1, %v2351_v2  ;;  %v5630_v14 = vcombine.low %v2347_v1, %v2351_v2  ;;  %v5632_v15 = vcombine.low %v2348_v3, %v2352_v4  ;;  %v2358_v1 = vld [vmem:[#allocation5 + $0x458] sm:$0xff] }
 0x46c   : > { %v2362_v2 = vld [vmem:[#allocation5 + $0x478] sm:$0xff] }
 0x46d   : > { %2278 = vmatpush1.bf16.msra.mxu0 %v5550_v8  ;;  %2319 = vmatpush1.bf16.msra.mxu1 %v5552_v9  ;;  %v5633_v8 = vcombine.high %v2348_v3, %v2352_v4  ;;  %v2405_v9 = vld [vmem:[#allocation5 + $0x5d0] sm:$0xff]  ;;  %v5652_v4 = vcombine.low %v2366_v57, %v2370_v59 }
 0x46e   : > { %2731 = vmatprep.subr.bf16.mxu0 %v5687_v10  ;;  %2772 = vmatprep.subr.bf16.mxu1 %v5689_v12  ;;  %v2409_v10 = vld [vmem:[#allocation5 + $0x5f0] sm:$0xff]  ;;  %v2406_v12 = vld [vmem:[#allocation5 + $0x5d8] sm:$0xff] }
 0x470   : > { %5624 = vmatmul.mubr.msk.bf16.vlgmr.msra.gmra.mxu0 %vm7193_vm10, %v7279_v11  ;;  %5629 = vmatmul.mubr.msk.bf16.vlgmr.msra.gmra.mxu1 %vm7193_vm10, %v7279_v11  ;;  %v5672_v11 = vcombine.low %v2388_v22, %v2392_v23  ;;  %v5690_v23 = vcombine.low %v2405_v9, %v2409_v10  ;;  %v6236_v22 = vld [vmem:[#allocation7 + $0x2a0] ss:$16 sps:$4 sm:$0xff]  }
 0x471   : > { %2732 = vmatpush1.bf16.msra.mxu0 %v5686_v17  ;;  %2773 = vmatpush1.bf16.msra.mxu1 %v5688_v18  ;;  %v5691_v17 = vcombine.high %v2405_v9, %v2409_v10  ;;  %v5693_v18 = vcombine.high %v2406_v12, %v2410_v13  ;;  %v2350_v9 = vld [vmem:[#allocation5 + $0x418] sm:$0xff] }
 0x472   : > { %2733 = vmatprep.subr.bf16.mxu0 %v5679_v53  ;;  %2774 = vmatprep.subr.bf16.mxu1 %v5681_v19  ;;  %v2397_v53 = vld [vmem:[#allocation5 + $0x590] sm:$0xff]  ;;  %v2354_v10 = vld [vmem:[#allocation5 + $0x438] sm:$0xff] }
 0x473   : > { %2763 = vmatprep.mubr.bf16.mxu0 %v6823_v0  ;;  %2804 = vmatprep.mubr.bf16.mxu1 %v6823_v0  ;;  %v2401_v19 = vld [vmem:[#allocation5 + $0x5b0] sm:$0xff] }
 0x474   : > { %v5683_v62 = vcombine.high %v2397_v53, %v2401_v19  ;;  %v5682_v31 = vcombine.low %v2397_v53, %v2401_v19  ;;  %v6223_v53 = vld [vmem:[#allocation7 + $0xe4] ss:$16 sps:$4 sm:$0xff]   ;;  %v6224_v19 = vld [vmem:[#allocation7 + $0x2e0] ss:$16 sps:$4 sm:$0xff]  }
 0x475   : > { %2734 = vmatpush1.bf16.msra.mxu0 %v5678_v24  ;;  %2775 = vmatpush1.bf16.msra.mxu1 %v5680_v25  ;;  %v5692_v24 = vcombine.low %v2406_v12, %v2410_v13  ;;  %v7304_v25 = vpack.c.bf16 %v1243_v16, %v1243_v16  ;;  %v5644_v13 = vcombine.low %v2358_v1, %v2362_v2 }
 0x476   : > { %2735 = vmatprep.subr.bf16.mxu0 %v5671_v26  ;;  %2776 = vmatprep.subr.bf16.mxu1 %v5673_v27  ;;  %v5685_v26 = vcombine.high %v2398_v20, %v2402_v21  ;;  %v2389_v27 = vld [vmem:[#allocation5 + $0x550] sm:$0xff] }
 0x477   : > { %v5674_v40 = vcombine.low %v2389_v27, %v2393_v28 }
 0x479   : > { %2736 = vmatpush1.bf16.msra.mxu0 %v5670_v51  ;;  %2777 = vmatpush1.bf16.msra.mxu1 %v5672_v11  ;;  %v5684_v51 = vcombine.low %v2398_v20, %v2402_v21  ;;  %v5675_v11 = vcombine.high %v2389_v27, %v2393_v28  ;;  %v6226_v20 = vld [vmem:[#allocation7 + $0x2e4] ss:$16 sps:$4 sm:$0xff]   ;;  %v6233_v28 = vld [vmem:[#allocation7 + $0xa0] ss:$16 sps:$4 sm:$0xff]  }
 0x47a   : > { %2737 = vmatprep.subr.bf16.mxu0 %v5663_v33  ;;  %2778 = vmatprep.subr.bf16.mxu1 %v5665_v34  ;;  %v5677_v33 = vcombine.high %v2390_v29, %v2394_v30  ;;  %v2381_v34 = vld [vmem:[#allocation5 + $0x510] sm:$0xff] }
 0x47b   : > { %v5666_v49 = vcombine.low %v2381_v34, %v2385_v36  ;;  %v6229_v21 = vld [vmem:[#allocation7 + $0xc4] ss:$16 sps:$4 sm:$0xff]  }
 0x47c   : > { %v6238_v27 = vld [vmem:[#allocation7 + $0x2a4] ss:$16 sps:$4 sm:$0xff]  }
 0x47d   : > { %2738 = vmatpush1.bf16.msra.mxu0 %v5662_v41  ;;  %2779 = vmatpush1.bf16.msra.mxu1 %v5664_v42  ;;  %v5676_v41 = vcombine.low %v2390_v29, %v2394_v30  ;;  %v5667_v42 = vcombine.high %v2381_v34, %v2385_v36  ;;  %v6244_v29 = vld [vmem:[#allocation7 + $0x284] ss:$16 sps:$4 sm:$0xff]   ;;  %v6239_v30 = vld [vmem:[#allocation7 + $0x80] ss:$16 sps:$4 sm:$0xff]  }
 0x47e   : > { %2739 = vmatprep.subr.bf16.mxu0 %v5655_v44  ;;  %2780 = vmatprep.subr.bf16.mxu1 %v5657_v45  ;;  %v5669_v44 = vcombine.high %v2382_v37, %v2386_v39  ;;  %v2373_v45 = vld [vmem:[#allocation5 + $0x4d0] sm:$0xff] }
 0x47f   : > { %v5658_v60 = vcombine.low %v2373_v45, %v2377_v46  ;;  %v6245_v36 = vld [vmem:[#allocation7 + $0x60] ss:$16 sps:$4 sm:$0xff]  }
 0x481   : > { %2740 = vmatpush1.bf16.msra.mxu0 %v5654_v50  ;;  %2781 = vmatpush1.bf16.msra.mxu1 %v5656_v54  ;;  %v5668_v50 = vcombine.low %v2382_v37, %v2386_v39  ;;  %v5659_v54 = vcombine.high %v2373_v45, %v2377_v46  ;;  %v6248_v37 = vld [vmem:[#allocation7 + $0x260] ss:$16 sps:$4 sm:$0xff]  }
 0x482   : > { %2741 = vmatprep.subr.bf16.mxu0 %v5647_v55  ;;  %2782 = vmatprep.subr.bf16.mxu1 %v5649_v56  ;;  %v2365_v55 = vld [vmem:[#allocation5 + $0x490] sm:$0xff] }
 0x483   : > { %v2369_v56 = vld [vmem:[#allocation5 + $0x4b0] sm:$0xff] }
 0x484   : > { %v5650_v3 = vcombine.low %v2365_v55, %v2369_v56  ;;  %v6251_v46 = vld [vmem:[#allocation7 + $0x40] ss:$16 sps:$4 sm:$0xff]  }
 0x485   : > { %2742 = vmatpush1.bf16.msra.mxu0 %v5646_v58  ;;  %2783 = vmatpush1.bf16.msra.mxu1 %v5648_v43  ;;  %v5651_v58 = vcombine.high %v2365_v55, %v2369_v56  ;;  %v5653_v43 = vcombine.high %v2366_v57, %v2370_v59  ;;  %v6262_v55 = vld [vmem:[#allocation7 + $0x224] ss:$16 sps:$4 sm:$0xff]   ;;  %v6263_v59 = vld [vmem:[#allocation7] ss:$16 sps:$4 sm:$0xff]  }
 0x486   : > { %2743 = vmatprep.subr.bf16.mxu0 %v5639_v52  ;;  %2784 = vmatprep.subr.bf16.mxu1 %v5641_v63  ;;  %v2357_v52 = vld [vmem:[#allocation5 + $0x450] sm:$0xff] }
 0x487   : > { %v2361_v63 = vld [vmem:[#allocation5 + $0x470] sm:$0xff] }
 0x488   : > { %v5642_v12 = vcombine.low %v2357_v52, %v2361_v63  ;;  %v6265_v56 = vld [vmem:[#allocation7 + $0x4] ss:$16 sps:$4 sm:$0xff]  }
 0x489   : > { %2744 = vmatpush1.bf16.msra.mxu0 %v5638_v5  ;;  %2785 = vmatpush1.bf16.msra.mxu1 %v5640_v6  ;;  %v5643_v5 = vcombine.high %v2357_v52, %v2361_v63  ;;  %v5645_v6 = vcombine.high %v2358_v1, %v2362_v2  ;;  %v6268_v57 = vld [vmem:[#allocation7 + $0x204] ss:$16 sps:$4 sm:$0xff]   ;;  %v6272_v52 = vld [vmem:[#allocation7 + $0x3e0] ss:$16 sps:$4 sm:$0xff]  }
 0x48a   : > { %2745 = vmatprep.subr.bf16.mxu0 %v5631_v7  ;;  %2786 = vmatprep.subr.bf16.mxu1 %v5633_v8  ;;  %v2349_v7 = vld [vmem:[#allocation5 + $0x410] sm:$0xff] }
 0x48b   : > { %v2353_v8 = vld [vmem:[#allocation5 + $0x430] sm:$0xff] }
 0x48c   : > { %v5634_v16 = vcombine.low %v2349_v7, %v2353_v8  ;;  %v6277_v63 = vld [vmem:[#allocation7 + $0x1c4] ss:$16 sps:$4 sm:$0xff]   ;;  %v6275_v2 = vld [vmem:[#allocation7 + $0x1c0] ss:$16 sps:$4 sm:$0xff]  }
 0x48d   : > { %2746 = vmatpush1.bf16.msra.mxu0 %v5630_v14  ;;  %2787 = vmatpush1.bf16.msra.mxu1 %v5632_v15  ;;  %v5635_v14 = vcombine.high %v2349_v7, %v2353_v8  ;;  %v5637_v15 = vcombine.high %v2350_v9, %v2354_v10  ;;  %v6280_v1 = vld [vmem:[#allocation7 + $0x3c4] ss:$16 sps:$4 sm:$0xff]   ;;  %v6284_v7 = vld [vmem:[#allocation7 + $0x3a0] ss:$16 sps:$4 sm:$0xff]  }
 0x48e   : > { %2813 = vmatprep.subr.bf16.mxu0 %v5691_v17  ;;  %2854 = vmatprep.subr.bf16.mxu1 %v5693_v18  ;;  %v5636_v17 = vcombine.low %v2350_v9, %v2354_v10  ;;  %v6221_v18 = vld [vmem:[#allocation7 + $0xe0] ss:$16 sps:$4 sm:$0xff]   ;;  %v6289_v8 = vld [vmem:[#allocation7 + $0x184] ss:$16 sps:$4 sm:$0xff]  }
 0x48f   : > { %v6292_v9 = vld [vmem:[#allocation7 + $0x384] ss:$16 sps:$4 sm:$0xff]   ;;  %v6287_v10 = vld [vmem:[#allocation7 + $0x180] ss:$16 sps:$4 sm:$0xff]  }
 0x490   : > { %5696 = vmatmul.mubr.msk.bf16.vlgmr.msra.gmra.mxu0 %vm7300_vm12, %v7304_v25  ;;  %5699 = vmatmul.mubr.msk.bf16.vlgmr.msra.gmra.mxu1 %vm7300_vm12, %v7304_v25 }
 0x491   : > { %2814 = vmatpush1.bf16.msra.mxu0 %v5690_v23  ;;  %2855 = vmatpush1.bf16.msra.mxu1 %v5692_v24  ;;  %v6232_v23 = vld [vmem:[#allocation7 + $0x2c4] ss:$16 sps:$4 sm:$0xff]   ;;  %v6227_v24 = vld [vmem:[#allocation7 + $0xc0] ss:$16 sps:$4 sm:$0xff]  }
 0x492   : > { %2815 = vmatprep.subr.bf16.mxu0 %v5683_v62  ;;  %2856 = vmatprep.subr.bf16.mxu1 %v5685_v26  ;;  %v6230_v62 = vld [vmem:[#allocation7 + $0x2c0] ss:$16 sps:$4 sm:$0xff]   ;;  %v6235_v26 = vld [vmem:[#allocation7 + $0xa4] ss:$16 sps:$4 sm:$0xff]  }
 0x493   : > { %2845 = vmatprep.mubr.bf16.mxu0 %v6823_v0  ;;  %2886 = vmatprep.mubr.bf16.mxu1 %v6823_v0  ;;  %v5661_v0 = vcombine.high %v2374_v47, %v2378_v48  ;;  %v6254_v47 = vld [vmem:[#allocation7 + $0x240] ss:$16 sps:$4 sm:$0xff]  }
 0x495   : > { %2816 = vmatpush1.bf16.msra.mxu0 %v5682_v31  ;;  %2857 = vmatpush1.bf16.msra.mxu1 %v5684_v51  ;;  %v6242_v31 = vld [vmem:[#allocation7 + $0x280] ss:$16 sps:$4 sm:$0xff]   ;;  %v6247_v51 = vld [vmem:[#allocation7 + $0x64] ss:$16 sps:$4 sm:$0xff]  }
 0x496   : > { %2817 = vmatprep.subr.bf16.mxu0 %v5675_v11  ;;  %2858 = vmatprep.subr.bf16.mxu1 %v5677_v33  ;;  %v6250_v11 = vld [vmem:[#allocation7 + $0x264] ss:$16 sps:$4 sm:$0xff]  }
 0x499   : > { %2818 = vmatpush1.bf16.msra.mxu0 %v5674_v40  ;;  %2859 = vmatpush1.bf16.msra.mxu1 %v5676_v41  ;;  %v6253_v41 = vld [vmem:[#allocation7 + $0x44] ss:$16 sps:$4 sm:$0xff]  }
 0x49a   : > { %2819 = vmatprep.subr.bf16.mxu0 %v5667_v42  ;;  %2860 = vmatprep.subr.bf16.mxu1 %v5669_v44  ;;  %v6256_v42 = vld [vmem:[#allocation7 + $0x244] ss:$16 sps:$4 sm:$0xff]  }
 0x49d   : > { %2820 = vmatpush1.bf16.msra.mxu0 %v5666_v49  ;;  %2861 = vmatpush1.bf16.msra.mxu1 %v5668_v50  ;;  %v6257_v50 = vld [vmem:[#allocation7 + $0x20] ss:$16 sps:$4 sm:$0xff]  }
 0x49e   : > { %2821 = vmatprep.subr.bf16.mxu0 %v5659_v54  ;;  %2862 = vmatprep.subr.bf16.mxu1 %v5661_v0  ;;  %v6259_v54 = vld [vmem:[#allocation7 + $0x24] ss:$16 sps:$4 sm:$0xff]   ;;  %v6260_v0 = vld [vmem:[#allocation7 + $0x220] ss:$16 sps:$4 sm:$0xff]  }
 0x4a1   : > { %2822 = vmatpush1.bf16.msra.mxu0 %v5658_v60  ;;  %2863 = vmatpush1.bf16.msra.mxu1 %v5660_v61  ;;  %v6266_v60 = vld [vmem:[#allocation7 + $0x200] ss:$16 sps:$4 sm:$0xff]   ;;  %v6271_v61 = vld [vmem:[#allocation7 + $0x1e4] ss:$16 sps:$4 sm:$0xff]  }
 0x4a2   : > { %2823 = vmatprep.subr.bf16.mxu0 %v5651_v58  ;;  %2864 = vmatprep.subr.bf16.mxu1 %v5653_v43  ;;  %v6274_v58 = vld [vmem:[#allocation7 + $0x3e4] ss:$16 sps:$4 sm:$0xff]   ;;  %v6269_v43 = vld [vmem:[#allocation7 + $0x1e0] ss:$16 sps:$4 sm:$0xff]  }
 0x4a5   : > { %2824 = vmatpush1.bf16.msra.mxu0 %v5650_v3  ;;  %2865 = vmatpush1.bf16.msra.mxu1 %v5652_v4  ;;  %v6278_v3 = vld [vmem:[#allocation7 + $0x3c0] ss:$16 sps:$4 sm:$0xff]   ;;  %v6283_v4 = vld [vmem:[#allocation7 + $0x1a4] ss:$16 sps:$4 sm:$0xff]  }
 0x4a6   : > { %2825 = vmatprep.subr.bf16.mxu0 %v5643_v5  ;;  %2866 = vmatprep.subr.bf16.mxu1 %v5645_v6  ;;  %v6286_v5 = vld [vmem:[#allocation7 + $0x3a4] ss:$16 sps:$4 sm:$0xff]   ;;  %v6281_v6 = vld [vmem:[#allocation7 + $0x1a0] ss:$16 sps:$4 sm:$0xff]  }
 0x4a9   : > { %2826 = vmatpush1.bf16.msra.mxu0 %v5642_v12  ;;  %2867 = vmatpush1.bf16.msra.mxu1 %v5644_v13  ;;  %v6290_v12 = vld [vmem:[#allocation7 + $0x380] ss:$16 sps:$4 sm:$0xff]   ;;  %v6295_v13 = vld [vmem:[#allocation7 + $0x164] ss:$16 sps:$4 sm:$0xff]  }
 0x4aa   : > { %2827 = vmatprep.subr.bf16.mxu0 %v5635_v14  ;;  %2868 = vmatprep.subr.bf16.mxu1 %v5637_v15  ;;  %v6298_v14 = vld [vmem:[#allocation7 + $0x364] ss:$16 sps:$4 sm:$0xff]  }
 0x4ad   : > { %2828 = vmatpush1.bf16.msra.mxu0 %v5634_v16  ;;  %2869 = vmatpush1.bf16.msra.mxu1 %v5636_v17  ;;  %v6293_v17 = vld [vmem:[#allocation7 + $0x160] ss:$16 sps:$4 sm:$0xff]  }
 0x4ae   : > { %3775 = vmatprep.subr.bf16.mxu0 %v6223_v53  ;;  %3816 = vmatprep.subr.bf16.mxu1 %v6226_v20  ;;  %v6301_v20 = vld [vmem:[#allocation7 + $0x144] ss:$16 sps:$4 sm:$0xff]  }
 0x4b0   : > { %5702 = vmatmul.mubr.msk.bf16.vlgmr.msra.gmra.mxu0 %vm7300_vm12, %v7304_v25  ;;  %5705 = vmatmul.mubr.msk.bf16.vlgmr.msra.gmra.mxu1 %vm7300_vm12, %v7304_v25  ;;  %v6241_v25 = vld [vmem:[#allocation7 + $0x84] ss:$16 sps:$4 sm:$0xff]  }
 0x4b1   : > { %3776 = vmatpush1.bf16.msra.mxu0 %v6221_v18  ;;  %3817 = vmatpush1.bf16.msra.mxu1 %v6224_v19  ;;  %v6296_v18 = vld [vmem:[#allocation7 + $0x360] ss:$16 sps:$4 sm:$0xff]  }
 0x4b2   : > { %3777 = vmatprep.subr.bf16.mxu0 %v6229_v21  ;;  %3818 = vmatprep.subr.bf16.mxu1 %v6232_v23  ;;  %v6304_v21 = vld [vmem:[#allocation7 + $0x344] ss:$16 sps:$4 sm:$0xff]  }
 0x4b5   : > { %3778 = vmatpush1.bf16.msra.mxu0 %v6227_v24  ;;  %3819 = vmatpush1.bf16.msra.mxu1 %v6230_v62  ;;  %v6299_v62 = vld [vmem:[#allocation7 + $0x140] ss:$16 sps:$4 sm:$0xff]  }
 0x4b6   : > { %3779 = vmatprep.subr.bf16.mxu0 %v6235_v26  ;;  %3820 = vmatprep.subr.bf16.mxu1 %v6238_v27  ;;  %v6302_v26 = vld [vmem:[#allocation7 + $0x340] ss:$16 sps:$4 sm:$0xff]  }
 0x4b9   : > { %3780 = vmatpush1.bf16.msra.mxu0 %v6233_v28  ;;  %3821 = vmatpush1.bf16.msra.mxu1 %v6236_v22  ;;  %v6307_v22 = vld [vmem:[#allocation7 + $0x124] ss:$16 sps:$4 sm:$0xff]  }
 0x4ba   : > { %3781 = vmatprep.subr.bf16.mxu0 %v6241_v25  ;;  %3822 = vmatprep.subr.bf16.mxu1 %v6244_v29  ;;  %v6310_v25 = vld [vmem:[#allocation7 + $0x324] ss:$16 sps:$4 sm:$0xff]   ;;  %v6305_v29 = vld [vmem:[#allocation7 + $0x120] ss:$16 sps:$4 sm:$0xff]  }
 0x4bd   : > { %3782 = vmatpush1.bf16.msra.mxu0 %v6239_v30  ;;  %3823 = vmatpush1.bf16.msra.mxu1 %v6242_v31  ;;  %v6308_v30 = vld [vmem:[#allocation7 + $0x320] ss:$16 sps:$4 sm:$0xff]  }
 0x4be   : > { %3783 = vmatprep.subr.bf16.mxu0 %v6247_v51  ;;  %3824 = vmatprep.subr.bf16.mxu1 %v6250_v11  ;;  %v6311_v31 = vld [vmem:[#allocation7 + $0x100] ss:$16 sps:$4 sm:$0xff]   ;;  %v6313_v51 = vld [vmem:[#allocation7 + $0x104] ss:$16 sps:$4 sm:$0xff]  }
 0x4bf   : > { %v6314_v11 = vld [vmem:[#allocation7 + $0x300] ss:$16 sps:$4 sm:$0xff]  }
 0x4c1   : > { %3784 = vmatpush1.bf16.msra.mxu0 %v6245_v36  ;;  %3825 = vmatpush1.bf16.msra.mxu1 %v6248_v37  ;;  %v6316_v36 = vld [vmem:[#allocation7 + $0x304] ss:$16 sps:$4 sm:$0xff]   ;;  %v6319_v37 = vld [vmem:[#allocation7 + $0xec] ss:$16 sps:$4 sm:$0xff]  }
 0x4c2   : > { %3785 = vmatprep.subr.bf16.mxu0 %v6253_v41  ;;  %3826 = vmatprep.subr.bf16.mxu1 %v6256_v42  ;;  %v6322_v41 = vld [vmem:[#allocation7 + $0x2ec] ss:$16 sps:$4 sm:$0xff]  }
 0x4c5   : > { %3786 = vmatpush1.bf16.msra.mxu0 %v6251_v46  ;;  %3827 = vmatpush1.bf16.msra.mxu1 %v6254_v47 }
 0x4c6   : > { %3787 = vmatprep.subr.bf16.mxu0 %v6259_v54  ;;  %3828 = vmatprep.subr.bf16.mxu1 %v6262_v55 }
 0x4c9   : > { %3788 = vmatpush1.bf16.msra.mxu0 %v6257_v50  ;;  %3829 = vmatpush1.bf16.msra.mxu1 %v6260_v0 }
 0x4ca   : > { %3789 = vmatprep.subr.bf16.mxu0 %v6265_v56  ;;  %3830 = vmatprep.subr.bf16.mxu1 %v6268_v57 }
 0x4cd   : > { %3790 = vmatpush1.bf16.msra.mxu0 %v6263_v59  ;;  %3831 = vmatpush1.bf16.msra.mxu1 %v6266_v60 }
 0x4ce   : > { %3791 = vmatprep.subr.bf16.mxu0 %v6271_v61  ;;  %3832 = vmatprep.subr.bf16.mxu1 %v6274_v58 }
 0x4d0   : > { %v7320_v33 = vpop.f32.mrf.mxu0  ;;  %v7322_v34 = vpop.f32.mrf.mxu1 }
 0x4d1   : > { %3792 = vmatpush2.bf16.msra.mxu0 %v6269_v43  ;;  %3833 = vmatpush2.bf16.msra.mxu1 %v6272_v52 }
 0x4d2   : > { %v7324_v39 = vpop.f32.mrf.mxu0  ;;  %v7326_v40 = vpop.f32.mrf.mxu1  ;;  %3793 = vmatprep.subr.bf16.mxu0 %v6277_v63  ;;  %3834 = vmatprep.subr.bf16.mxu1 %v6280_v1 }
 0x4d4   : > { %v1735_v44 = vpop.f32.mrf.mxu0  ;;  %v1776_v45 = vpop.f32.mrf.mxu1 }
 0x4d5   : > { %3794 = vmatpush2.bf16.msra.mxu0 %v6275_v2  ;;  %3835 = vmatpush2.bf16.msra.mxu1 %v6278_v3 }
 0x4d6   : > { %v1736_v48 = vpop.f32.mrf.mxu0  ;;  %v1777_v49 = vpop.f32.mrf.mxu1  ;;  %3795 = vmatprep.subr.bf16.mxu0 %v6283_v4  ;;  %3836 = vmatprep.subr.bf16.mxu1 %v6286_v5 }
 0x4d9   : > { %3796 = vmatpush2.bf16.msra.mxu0 %v6281_v6  ;;  %3837 = vmatpush2.bf16.msra.mxu1 %v6284_v7  ;;  %v7337_v7 = vsub.s32 2, %v7054_v32 }
 0x4da   : > { %3797 = vmatprep.subr.bf16.mxu0 %v6289_v8  ;;  %3838 = vmatprep.subr.bf16.mxu1 %v6292_v9  ;;  %v2903_v8 = vld [vmem:[%s7536_s6] sm:$0xff]  ;;  %v7343_v9 = vsub.s32 3, %v7054_v32 }
 0x4dd   : > { %3798 = vmatpush2.bf16.msra.mxu0 %v6287_v10  ;;  %3839 = vmatpush2.bf16.msra.mxu1 %v6290_v12  ;;  %v2908_v10 = vrot.slane %v2903_v8, %v7057_v35  ;;  %v2916_v12 = vrot.slane %v2903_v8, %v7337_v7 }
 0x4de   : > { %3799 = vmatprep.subr.bf16.mxu0 %v6295_v13  ;;  %3840 = vmatprep.subr.bf16.mxu1 %v6298_v14  ;;  %v2923_v13 = vsub.s32 4, %v7054_v32  ;;  %v2931_v14 = vsub.s32 6, %v7054_v32 }
 0x4e1   : > { %3800 = vmatpush2.bf16.msra.mxu0 %v6293_v17  ;;  %3841 = vmatpush2.bf16.msra.mxu1 %v6296_v18  ;;  %v2927_v17 = vsub.s32 5, %v7054_v32  ;;  %v2935_v18 = vsub.s32 7, %v7054_v32 }
 0x4e2   : > { %3801 = vmatprep.subr.bf16.mxu0 %v6301_v20  ;;  %3842 = vmatprep.subr.bf16.mxu1 %v6304_v21  ;;  %v2912_v21 = vrot.slane %v2903_v8, %v7063_v38 }
 0x4e5   : > { %3802 = vmatpush2.bf16.msra.mxu0 %v6299_v62  ;;  %3843 = vmatpush2.bf16.msra.mxu1 %v6302_v26  ;;  %v2924_v62 = vrot.slane %v2903_v8, %v2923_v13  ;;  %v2932_v26 = vrot.slane %v2903_v8, %v2931_v14 }
 0x4e6   : > { %3803 = vmatprep.subr.bf16.mxu0 %v6307_v22  ;;  %3844 = vmatprep.subr.bf16.mxu1 %v6310_v25 }
 0x4e9   : > { %3804 = vmatpush2.bf16.msra.mxu0 %v6305_v29  ;;  %3845 = vmatpush2.bf16.msra.mxu1 %v6308_v30  ;;  %v2928_v29 = vrot.slane %v2903_v8, %v2927_v17  ;;  %v2936_v30 = vrot.slane %v2903_v8, %v2935_v18  ;;  %v6323_v17 = vld [vmem:[#allocation7 + $0xc8] ss:$16 sps:$4 sm:$0xff]  }
 0x4ea   : > { %3805 = vmatprep.subr.bf16.mxu0 %v6313_v51  ;;  %3846 = vmatprep.subr.bf16.mxu1 %v6316_v36  ;;  %v6326_v18 = vld [vmem:[#allocation7 + $0x2c8] ss:$16 sps:$4 sm:$0xff]  }
 0x4ed   : > { %3806 = vmatpush2.bf16.msra.mxu0 %v6311_v31  ;;  %3847 = vmatpush2.bf16.msra.mxu1 %v6314_v11 }
 0x4ee   : > { %3857 = vmatprep.subr.bf16.mxu0 %v6319_v37  ;;  %3898 = vmatprep.subr.bf16.mxu1 %v6322_v41 }
 0x4f0   : > { %v1813_v15 = vpop.f32.mrf.mxu0  ;;  %v1854_v16 = vpop.f32.mrf.mxu1 }
 0x4f2   : > { %v7328_v53 = vpop.f32.mrf.mxu0  ;;  %v7330_v19 = vpop.f32.mrf.mxu1 }
 0x4f4   : > { %v1817_v23 = vpop.f32.mrf.mxu0  ;;  %v1858_v24 = vpop.f32.mrf.mxu1 }
 0x4f5   : > { %v2920_v24 = vrot.slane %v2903_v8, %v7343_v9 }
 0x4f6   : > { %v1818_v27 = vpop.f32.mrf.mxu0  ;;  %v1859_v28 = vpop.f32.mrf.mxu1 }
 0x510   : > { %v2215_v42 = vpop.f32.mrf.mxu0  ;;  %v2256_v44 = vpop.f32.mrf.mxu1 }
 0x511   : > { %v2216_v45 = vadd.f32 %v2215_v42, %v7320_v33  ;;  %v2257_v46 = vadd.f32 %v2256_v44, %v7322_v34 }
 0x512   : > { %v2217_v47 = vpop.f32.mrf.mxu0  ;;  %v2258_v48 = vpop.f32.mrf.mxu1 }
 0x513   : > { %v2218_v49 = vadd.f32 %v2217_v47, %v7324_v39  ;;  %v2259_v50 = vadd.f32 %v2258_v48, %v7326_v40 }
 0x514   : > { %v2219_v54 = vpop.f32.mrf.mxu0  ;;  %v2260_v0 = vpop.f32.mrf.mxu1 }
 0x516   : > { %v2220_v55 = vpop.f32.mrf.mxu0  ;;  %v2261_v56 = vpop.f32.mrf.mxu1 }
 0x530   : > { %v2297_v57 = vpop.f32.mrf.mxu0  ;;  %v2338_v59 = vpop.f32.mrf.mxu1 }
 0x531   : > { %v2298_v60 = vadd.f32 %v2297_v57, %v1813_v15  ;;  %v2339_v61 = vadd.f32 %v2338_v59, %v1854_v16 }
 0x532   : > { %v2299_v58 = vpop.f32.mrf.mxu0  ;;  %v2340_v43 = vpop.f32.mrf.mxu1 }
 0x533   : > { %v2300_v31 = vadd.f32 %v2299_v58, %v7328_v53  ;;  %v2341_v51 = vadd.f32 %v2340_v43, %v7330_v19 }
 0x534   : > { %v2301_v52 = vpop.f32.mrf.mxu0  ;;  %v2342_v33 = vpop.f32.mrf.mxu1 }
 0x536   : > { %v2302_v63 = vpop.f32.mrf.mxu0  ;;  %v2343_v34 = vpop.f32.mrf.mxu1 }
 0x550   : > { %v2765_v1 = vpop.f32.mrf.mxu0  ;;  %v2806_v2 = vpop.f32.mrf.mxu1 }
 0x551   : > { %v2895_v15 = vadd.f32 %v2765_v1, %v2216_v45  ;;  %v2897_v16 = vadd.f32 %v2806_v2, %v2257_v46 }
 0x552   : > { %v2767_v3 = vpop.f32.mrf.mxu0  ;;  %v2808_v39 = vpop.f32.mrf.mxu1 }
 0x553   : > { %v2896_v20 = vadd.f32 %v2767_v3, %v2218_v49  ;;  %v2898_v23 = vadd.f32 %v2808_v39, %v2259_v50  ;;  %v2945_v27 = vadd.f32 %v2908_v10, %v2895_v15  ;;  %v2947_v28 = vadd.f32 %v2916_v12, %v2897_v16  ;;  %v6317_v10 = vld [vmem:[#allocation7 + $0xe8] ss:$16 sps:$4 sm:$0xff]   ;;  %v6325_v15 = vld [vmem:[#allocation7 + $0xcc] ss:$16 sps:$4 sm:$0xff]  }
 0x554   : > { %v2769_v4 = vpop.f32.mrf.mxu0  ;;  %v2810_v40 = vpop.f32.mrf.mxu1  ;;  %v6320_v12 = vld [vmem:[#allocation7 + $0x2e8] ss:$16 sps:$4 sm:$0xff]   ;;  %v6328_v16 = vld [vmem:[#allocation7 + $0x2cc] ss:$16 sps:$4 sm:$0xff]  }
 0x555   : > { %v2946_v36 = vadd.f32 %v2912_v21, %v2896_v20  ;;  %v2948_v37 = vadd.f32 %v2920_v24, %v2898_v23  ;;  %v2953_v48 = vmax.f32 %v2945_v27, 0.0  ;;  %v2955_v49 = vmax.f32 %v2947_v28, 0.0  ;;  %v6331_v20 = vld [vmem:[#allocation7 + $0xac] ss:$16 sps:$4 sm:$0xff]   ;;  %v6329_v23 = vld [vmem:[#allocation7 + $0xa8] ss:$16 sps:$4 sm:$0xff]  }
 0x556   : > { %v2770_v5 = vpop.f32.mrf.mxu0  ;;  %v2811_v6 = vpop.f32.mrf.mxu1  ;;  %v6334_v21 = vld [vmem:[#allocation7 + $0x2ac] ss:$16 sps:$4 sm:$0xff]   ;;  %v6332_v24 = vld [vmem:[#allocation7 + $0x2a8] ss:$16 sps:$4 sm:$0xff]  }
 0x557   : > { %v2954_v57 = vmax.f32 %v2946_v36, 0.0  ;;  %v2956_v19 = vmax.f32 %v2948_v37, 0.0  ;;  %v6335_v27 = vld [vmem:[#allocation7 + $0x88] ss:$16 sps:$4 sm:$0xff]   ;;  %v6355_v36 = vld [vmem:[#allocation7 + $0x2c] ss:$16 sps:$4 sm:$0xff]  }
 0x558   : > { %v6338_v28 = vld [vmem:[#allocation7 + $0x288] ss:$16 sps:$4 sm:$0xff]   ;;  %v6358_v37 = vld [vmem:[#allocation7 + $0x22c] ss:$16 sps:$4 sm:$0xff]  }
 0x570   : > { %v2847_v22 = vpop.f32.mrf.mxu0  ;;  %v2888_v25 = vpop.f32.mrf.mxu1 }
 0x571   : > { %v2899_v11 = vadd.f32 %v2847_v22, %v2298_v60  ;;  %v2901_v32 = vadd.f32 %v2888_v25, %v2339_v61  ;;  %v6343_v22 = vld [vmem:[#allocation7 + $0x6c] ss:$16 sps:$4 sm:$0xff]  }
 0x572   : > { %v2849_v41 = vpop.f32.mrf.mxu0  ;;  %v2890_v42 = vpop.f32.mrf.mxu1  ;;  %v6346_v25 = vld [vmem:[#allocation7 + $0x26c] ss:$16 sps:$4 sm:$0xff]  }
 0x573   : > { %v2949_v44 = vadd.f32 %v2924_v62, %v2899_v11  ;;  %v2951_v45 = vadd.f32 %v2932_v26, %v2901_v32  ;;  %v2900_v46 = vadd.f32 %v2849_v41, %v2300_v31  ;;  %v2902_v47 = vadd.f32 %v2890_v42, %v2341_v51  ;;  %v6337_v62 = vld [vmem:[#allocation7 + $0x8c] ss:$16 sps:$4 sm:$0xff]   ;;  %v6347_v11 = vld [vmem:[#allocation7 + $0x48] ss:$16 sps:$4 sm:$0xff]  }
 0x574   : > { %v2851_v50 = vpop.f32.mrf.mxu0  ;;  %v2892_v54 = vpop.f32.mrf.mxu1  ;;  %v6340_v26 = vld [vmem:[#allocation7 + $0x28c] ss:$16 sps:$4 sm:$0xff]   ;;  %v6350_v32 = vld [vmem:[#allocation7 + $0x248] ss:$16 sps:$4 sm:$0xff]  }
 0x575   : > { %v2957_v0 = vmax.f32 %v2949_v44, 0.0  ;;  %v2959_v55 = vmax.f32 %v2951_v45, 0.0  ;;  %v2950_v56 = vadd.f32 %v2928_v29, %v2900_v46  ;;  %v2952_v53 = vadd.f32 %v2936_v30, %v2902_v47  ;;  %v6341_v29 = vld [vmem:[#allocation7 + $0x68] ss:$16 sps:$4 sm:$0xff]   ;;  %v6349_v31 = vld [vmem:[#allocation7 + $0x4c] ss:$16 sps:$4 sm:$0xff]  }
 0x576   : > { %v2852_v59 = vpop.f32.mrf.mxu0  ;;  %v2893_v60 = vpop.f32.mrf.mxu1  ;;  %v6344_v30 = vld [vmem:[#allocation7 + $0x268] ss:$16 sps:$4 sm:$0xff]   ;;  %v6352_v51 = vld [vmem:[#allocation7 + $0x24c] ss:$16 sps:$4 sm:$0xff]  }
 0x577   : > { %v2961_v61 = vmax.f32 %v2953_v48, %v2957_v0  ;;  %v2963_v58 = vmax.f32 %v2955_v49, %v2959_v55  ;;  %v2958_v43 = vmax.f32 %v2950_v56, 0.0  ;;  %v2960_v52 = vmax.f32 %v2952_v53, 0.0  ;;  %v6353_v41 = vld [vmem:[#allocation7 + $0x28] ss:$16 sps:$4 sm:$0xff]   ;;  %v6361_v44 = vld [vmem:[#allocation7 + $0xc] ss:$16 sps:$4 sm:$0xff]  }
 0x578   : > { %v6356_v42 = vld [vmem:[#allocation7 + $0x228] ss:$16 sps:$4 sm:$0xff]   ;;  %v6364_v45 = vld [vmem:[#allocation7 + $0x20c] ss:$16 sps:$4 sm:$0xff]  }
 0x579   : > { %v2969_v33 = vrot.slane %v2961_v61, 1  ;;  %v2971_v63 = vrot.slane %v2963_v58, 1  ;;  %v2962_v34 = vmax.f32 %v2954_v57, %v2958_v43  ;;  %v2964_v1 = vmax.f32 %v2956_v19, %v2960_v52  ;;  %v6359_v46 = vld [vmem:[#allocation7 + $0x8] ss:$16 sps:$4 sm:$0xff]   ;;  %v6367_v48 = vld [vmem:[#allocation7 + $0x1ec] ss:$16 sps:$4 sm:$0xff]  }
 0x57a   : > { %v6362_v47 = vld [vmem:[#allocation7 + $0x208] ss:$16 sps:$4 sm:$0xff]   ;;  %v6370_v49 = vld [vmem:[#allocation7 + $0x3ec] ss:$16 sps:$4 sm:$0xff]  }
 0x57b   : > { %v2970_v2 = vrot.slane %v2962_v34, 1  ;;  %v2972_v3 = vrot.slane %v2964_v1, 1  ;;  %v2977_v39 = vmax.f32 %v2961_v61, %v2969_v33  ;;  %v2979_v4 = vmax.f32 %v2963_v58, %v2971_v63  ;;  %v6365_v50 = vld [vmem:[#allocation7 + $0x1e8] ss:$16 sps:$4 sm:$0xff]   ;;  %v6373_v0 = vld [vmem:[#allocation7 + $0x1cc] ss:$16 sps:$4 sm:$0xff]  }
 0x57c   : > { %v6368_v54 = vld [vmem:[#allocation7 + $0x3e8] ss:$16 sps:$4 sm:$0xff]   ;;  %v6376_v55 = vld [vmem:[#allocation7 + $0x3cc] ss:$16 sps:$4 sm:$0xff]  }
 0x57d   : > { %v2978_v40 = vmax.f32 %v2962_v34, %v2970_v2  ;;  %v2980_v5 = vmax.f32 %v2964_v1, %v2972_v3  ;;  %v7355_v13 = vpack.c.bf16 %v2977_v39, %v2977_v39  ;;  %v7357_v14 = vpack.c.bf16 %v2979_v4, %v2979_v4  ;;  %v6371_v56 = vld [vmem:[#allocation7 + $0x1c8] ss:$16 sps:$4 sm:$0xff]   ;;  %v6379_v57 = vld [vmem:[#allocation7 + $0x1ac] ss:$16 sps:$4 sm:$0xff]  }
 0x57e   : > { %v6374_v53 = vld [vmem:[#allocation7 + $0x3c8] ss:$16 sps:$4 sm:$0xff]   ;;  %v6382_v19 = vld [vmem:[#allocation7 + $0x3ac] ss:$16 sps:$4 sm:$0xff]  }
 0x57f   : > { %v2982_v6 = vpack.c.bf16 %v2978_v40, %v2978_v40  ;;  %v2984_v8 = vpack.c.bf16 %v2980_v5, %v2980_v5  ;;  %v6377_v59 = vld [vmem:[#allocation7 + $0x1a8] ss:$16 sps:$4 sm:$0xff]   ;;  %v6385_v61 = vld [vmem:[#allocation7 + $0x18c] ss:$16 sps:$4 sm:$0xff]  }
 0x580   : > { %v6380_v60 = vld [vmem:[#allocation7 + $0x3a8] ss:$16 sps:$4 sm:$0xff]   ;;  %v6388_v58 = vld [vmem:[#allocation7 + $0x38c] ss:$16 sps:$4 sm:$0xff]  }
 0x581   : > { %3807 = vmatprep.mubr.bf16.mxu0 %v2982_v6  ;;  %3848 = vmatprep.mubr.bf16.mxu1 %v2984_v8  ;;  %v6383_v43 = vld [vmem:[#allocation7 + $0x188] ss:$16 sps:$4 sm:$0xff]   ;;  %v6391_v33 = vld [vmem:[#allocation7 + $0x16c] ss:$16 sps:$4 sm:$0xff]  }
 0x582   : > { %3808 = vmatmul.mubr.bf16.vlgmr.msra.gmra.mxu0 %v7355_v13  ;;  %3849 = vmatmul.mubr.bf16.vlgmr.msra.gmra.mxu1 %v7357_v14  ;;  %v6386_v52 = vld [vmem:[#allocation7 + $0x388] ss:$16 sps:$4 sm:$0xff]   ;;  %v6394_v63 = vld [vmem:[#allocation7 + $0x36c] ss:$16 sps:$4 sm:$0xff]  }
 0x583   : > { %3858 = vmatpush1.bf16.msra.mxu0 %v6317_v10  ;;  %3899 = vmatpush1.bf16.msra.mxu1 %v6320_v12  ;;  %v6389_v34 = vld [vmem:[#allocation7 + $0x168] ss:$16 sps:$4 sm:$0xff]   ;;  %v6397_v2 = vld [vmem:[#allocation7 + $0x14c] ss:$16 sps:$4 sm:$0xff]  }
 0x584   : > { %3889 = vmatprep.mubr.bf16.mxu0 %v2982_v6  ;;  %3930 = vmatprep.mubr.bf16.mxu1 %v2984_v8  ;;  %v6392_v1 = vld [vmem:[#allocation7 + $0x368] ss:$16 sps:$4 sm:$0xff]   ;;  %v6400_v3 = vld [vmem:[#allocation7 + $0x34c] ss:$16 sps:$4 sm:$0xff]  }
 0x585   : > { %3859 = vmatprep.subr.bf16.mxu0 %v6325_v15  ;;  %3900 = vmatprep.subr.bf16.mxu1 %v6328_v16  ;;  %v6395_v39 = vld [vmem:[#allocation7 + $0x148] ss:$16 sps:$4 sm:$0xff]   ;;  %v6403_v40 = vld [vmem:[#allocation7 + $0x12c] ss:$16 sps:$4 sm:$0xff]  }
 0x586   : > { %v6398_v4 = vld [vmem:[#allocation7 + $0x348] ss:$16 sps:$4 sm:$0xff]   ;;  %v6406_v5 = vld [vmem:[#allocation7 + $0x32c] ss:$16 sps:$4 sm:$0xff]  }
 0x587   : > { %3860 = vmatpush1.bf16.msra.mxu0 %v6323_v17  ;;  %3901 = vmatpush1.bf16.msra.mxu1 %v6326_v18  ;;  %v6401_v6 = vld [vmem:[#allocation7 + $0x128] ss:$16 sps:$4 sm:$0xff]   ;;  %v6409_v10 = vld [vmem:[#allocation7 + $0x10c] ss:$16 sps:$4 sm:$0xff]   ;;  %v6415_v17 = vld [vmem:[#allocation8 + $0xe4] ss:$16 sps:$4 sm:$0xff]  }
 0x588   : > { %3861 = vmatprep.subr.bf16.mxu0 %v6331_v20  ;;  %3902 = vmatprep.subr.bf16.mxu1 %v6334_v21  ;;  %v6404_v8 = vld [vmem:[#allocation7 + $0x328] ss:$16 sps:$4 sm:$0xff]   ;;  %v6412_v12 = vld [vmem:[#allocation7 + $0x30c] ss:$16 sps:$4 sm:$0xff]   ;;  %v6413_v18 = vld [vmem:[#allocation8 + $0xe0] ss:$16 sps:$4 sm:$0xff]  }
 0x589   : > { %v6407_v15 = vld [vmem:[#allocation7 + $0x108] ss:$16 sps:$4 sm:$0xff]   ;;  %v6418_v20 = vld [vmem:[#allocation8 + $0xc4] ss:$16 sps:$4 sm:$0xff]   ;;  %v6416_v21 = vld [vmem:[#allocation8 + $0xc0] ss:$16 sps:$4 sm:$0xff]  }
 0x58a   : > { %v6410_v16 = vld [vmem:[#allocation7 + $0x308] ss:$16 sps:$4 sm:$0xff]  }
 0x58b   : > { %3862 = vmatpush1.bf16.msra.mxu0 %v6329_v23  ;;  %3903 = vmatpush1.bf16.msra.mxu1 %v6332_v24  ;;  %v6421_v23 = vld [vmem:[#allocation8 + $0xa4] ss:$16 sps:$4 sm:$0xff]   ;;  %v6419_v24 = vld [vmem:[#allocation8 + $0xa0] ss:$16 sps:$4 sm:$0xff]  }
 0x58c   : > { %3863 = vmatprep.subr.bf16.mxu0 %v6337_v62  ;;  %3904 = vmatprep.subr.bf16.mxu1 %v6340_v26  ;;  %v6424_v62 = vld [vmem:[#allocation8 + $0x84] ss:$16 sps:$4 sm:$0xff]   ;;  %v6422_v26 = vld [vmem:[#allocation8 + $0x80] ss:$16 sps:$4 sm:$0xff]  }
 0x58f   : > { %3864 = vmatpush1.bf16.msra.mxu0 %v6335_v27  ;;  %3905 = vmatpush1.bf16.msra.mxu1 %v6338_v28  ;;  %v6461_v27 = vld [vmem:[#allocation8 + $0x2e0] ss:$16 sps:$4 sm:$0xff]   ;;  %v6463_v28 = vld [vmem:[#allocation8 + $0x2e4] ss:$16 sps:$4 sm:$0xff]  }
 0x590   : > { %3865 = vmatprep.subr.bf16.mxu0 %v6343_v22  ;;  %3906 = vmatprep.subr.bf16.mxu1 %v6346_v25  ;;  %v6427_v22 = vld [vmem:[#allocation8 + $0x64] ss:$16 sps:$4 sm:$0xff]   ;;  %v6467_v25 = vld [vmem:[#allocation8 + $0x2c0] ss:$16 sps:$4 sm:$0xff]  }
 0x593   : > { %3866 = vmatpush1.bf16.msra.mxu0 %v6341_v29  ;;  %3907 = vmatpush1.bf16.msra.mxu1 %v6344_v30  ;;  %v6430_v29 = vld [vmem:[#allocation8 + $0x44] ss:$16 sps:$4 sm:$0xff]   ;;  %v6428_v30 = vld [vmem:[#allocation8 + $0x40] ss:$16 sps:$4 sm:$0xff]  }
 0x594   : > { %3867 = vmatprep.subr.bf16.mxu0 %v6349_v31  ;;  %3908 = vmatprep.subr.bf16.mxu1 %v6352_v51  ;;  %v6473_v31 = vld [vmem:[#allocation8 + $0x2a0] ss:$16 sps:$4 sm:$0xff]   ;;  %v6475_v51 = vld [vmem:[#allocation8 + $0x2a4] ss:$16 sps:$4 sm:$0xff]  }
 0x597   : > { %3868 = vmatpush1.bf16.msra.mxu0 %v6347_v11  ;;  %3909 = vmatpush1.bf16.msra.mxu1 %v6350_v32  ;;  %v6433_v11 = vld [vmem:[#allocation8 + $0x24] ss:$16 sps:$4 sm:$0xff]   ;;  %v6431_v32 = vld [vmem:[#allocation8 + $0x20] ss:$16 sps:$4 sm:$0xff]  }
 0x598   : > { %3869 = vmatprep.subr.bf16.mxu0 %v6355_v36  ;;  %3910 = vmatprep.subr.bf16.mxu1 %v6358_v37  ;;  %v6479_v36 = vld [vmem:[#allocation8 + $0x280] ss:$16 sps:$4 sm:$0xff]   ;;  %v6481_v37 = vld [vmem:[#allocation8 + $0x284] ss:$16 sps:$4 sm:$0xff]  }
 0x59b   : > { %3870 = vmatpush1.bf16.msra.mxu0 %v6353_v41  ;;  %3911 = vmatpush1.bf16.msra.mxu1 %v6356_v42  ;;  %v6436_v41 = vld [vmem:[#allocation8 + $0x4] ss:$16 sps:$4 sm:$0xff]   ;;  %v6434_v42 = vld [vmem:[#allocation8] ss:$16 sps:$4 sm:$0xff]  }
 0x59c   : > { %3871 = vmatprep.subr.bf16.mxu0 %v6361_v44  ;;  %3912 = vmatprep.subr.bf16.mxu1 %v6364_v45  ;;  %v6485_v44 = vld [vmem:[#allocation8 + $0x260] ss:$16 sps:$4 sm:$0xff]   ;;  %v6487_v45 = vld [vmem:[#allocation8 + $0x264] ss:$16 sps:$4 sm:$0xff]  }
 0x59f   : > { %3872 = vmatpush1.bf16.msra.mxu0 %v6359_v46  ;;  %3913 = vmatpush1.bf16.msra.mxu1 %v6362_v47  ;;  %v6439_v46 = vld [vmem:[#allocation8 + $0x1e4] ss:$16 sps:$4 sm:$0xff]   ;;  %v6437_v47 = vld [vmem:[#allocation8 + $0x1e0] ss:$16 sps:$4 sm:$0xff]  }
 0x5a0   : > { %3873 = vmatprep.subr.bf16.mxu0 %v6367_v48  ;;  %3914 = vmatprep.subr.bf16.mxu1 %v6370_v49  ;;  %v6491_v48 = vld [vmem:[#allocation8 + $0x240] ss:$16 sps:$4 sm:$0xff]   ;;  %v6493_v49 = vld [vmem:[#allocation8 + $0x244] ss:$16 sps:$4 sm:$0xff]  }
 0x5a3   : > { %3874 = vmatpush2.bf16.msra.mxu0 %v6365_v50  ;;  %3915 = vmatpush2.bf16.msra.mxu1 %v6368_v54  ;;  %v6442_v50 = vld [vmem:[#allocation8 + $0x1c4] ss:$16 sps:$4 sm:$0xff]   ;;  %v6440_v54 = vld [vmem:[#allocation8 + $0x1c0] ss:$16 sps:$4 sm:$0xff]  }
 0x5a4   : > { %3875 = vmatprep.subr.bf16.mxu0 %v6373_v0  ;;  %3916 = vmatprep.subr.bf16.mxu1 %v6376_v55  ;;  %v6497_v0 = vld [vmem:[#allocation8 + $0x220] ss:$16 sps:$4 sm:$0xff]   ;;  %v6499_v55 = vld [vmem:[#allocation8 + $0x224] ss:$16 sps:$4 sm:$0xff]  }
 0x5a7   : > { %3876 = vmatpush2.bf16.msra.mxu0 %v6371_v56  ;;  %3917 = vmatpush2.bf16.msra.mxu1 %v6374_v53  ;;  %v6445_v56 = vld [vmem:[#allocation8 + $0x1a4] ss:$16 sps:$4 sm:$0xff]   ;;  %v6443_v53 = vld [vmem:[#allocation8 + $0x1a0] ss:$16 sps:$4 sm:$0xff]  }
 0x5a8   : > { %3877 = vmatprep.subr.bf16.mxu0 %v6379_v57  ;;  %3918 = vmatprep.subr.bf16.mxu1 %v6382_v19  ;;  %v6503_v57 = vld [vmem:[#allocation8 + $0x200] ss:$16 sps:$4 sm:$0xff]   ;;  %v6505_v19 = vld [vmem:[#allocation8 + $0x204] ss:$16 sps:$4 sm:$0xff]  }
 0x5ab   : > { %3878 = vmatpush2.bf16.msra.mxu0 %v6377_v59  ;;  %3919 = vmatpush2.bf16.msra.mxu1 %v6380_v60  ;;  %v6448_v59 = vld [vmem:[#allocation8 + $0x184] ss:$16 sps:$4 sm:$0xff]   ;;  %v6446_v60 = vld [vmem:[#allocation8 + $0x180] ss:$16 sps:$4 sm:$0xff]  }
 0x5ac   : > { %3879 = vmatprep.subr.bf16.mxu0 %v6385_v61  ;;  %3920 = vmatprep.subr.bf16.mxu1 %v6388_v58  ;;  %v6509_v61 = vld [vmem:[#allocation8 + $0x3e0] ss:$16 sps:$4 sm:$0xff]   ;;  %v6511_v58 = vld [vmem:[#allocation8 + $0x3e4] ss:$16 sps:$4 sm:$0xff]  }
 0x5af   : > { %3880 = vmatpush2.bf16.msra.mxu0 %v6383_v43  ;;  %3921 = vmatpush2.bf16.msra.mxu1 %v6386_v52  ;;  %v6451_v43 = vld [vmem:[#allocation8 + $0x164] ss:$16 sps:$4 sm:$0xff]   ;;  %v6449_v52 = vld [vmem:[#allocation8 + $0x160] ss:$16 sps:$4 sm:$0xff]  }
 0x5b0   : > { %3881 = vmatprep.subr.bf16.mxu0 %v6391_v33  ;;  %3922 = vmatprep.subr.bf16.mxu1 %v6394_v63  ;;  %v6515_v33 = vld [vmem:[#allocation8 + $0x3c0] ss:$16 sps:$4 sm:$0xff]   ;;  %v6517_v63 = vld [vmem:[#allocation8 + $0x3c4] ss:$16 sps:$4 sm:$0xff]  }
 0x5b3   : > { %3882 = vmatpush2.bf16.msra.mxu0 %v6389_v34  ;;  %3923 = vmatpush2.bf16.msra.mxu1 %v6392_v1  ;;  %v6454_v34 = vld [vmem:[#allocation8 + $0x144] ss:$16 sps:$4 sm:$0xff]   ;;  %v6452_v1 = vld [vmem:[#allocation8 + $0x140] ss:$16 sps:$4 sm:$0xff]  }
 0x5b4   : > { %3883 = vmatprep.subr.bf16.mxu0 %v6397_v2  ;;  %3924 = vmatprep.subr.bf16.mxu1 %v6400_v3  ;;  %v6521_v2 = vld [vmem:[#allocation8 + $0x3a0] ss:$16 sps:$4 sm:$0xff]   ;;  %v6523_v3 = vld [vmem:[#allocation8 + $0x3a4] ss:$16 sps:$4 sm:$0xff]  }
 0x5b7   : > { %3884 = vmatpush2.bf16.msra.mxu0 %v6395_v39  ;;  %3925 = vmatpush2.bf16.msra.mxu1 %v6398_v4  ;;  %v6457_v39 = vld [vmem:[#allocation8 + $0x124] ss:$16 sps:$4 sm:$0xff]   ;;  %v6455_v4 = vld [vmem:[#allocation8 + $0x120] ss:$16 sps:$4 sm:$0xff]  }
 0x5b8   : > { %3885 = vmatprep.subr.bf16.mxu0 %v6403_v40  ;;  %3926 = vmatprep.subr.bf16.mxu1 %v6406_v5  ;;  %v6527_v40 = vld [vmem:[#allocation8 + $0x380] ss:$16 sps:$4 sm:$0xff]   ;;  %v6529_v5 = vld [vmem:[#allocation8 + $0x384] ss:$16 sps:$4 sm:$0xff]  }
 0x5bb   : > { %3886 = vmatpush2.bf16.msra.mxu0 %v6401_v6  ;;  %3927 = vmatpush2.bf16.msra.mxu1 %v6404_v8  ;;  %v6460_v6 = vld [vmem:[#allocation8 + $0x104] ss:$16 sps:$4 sm:$0xff]   ;;  %v6458_v8 = vld [vmem:[#allocation8 + $0x100] ss:$16 sps:$4 sm:$0xff]  }
 0x5bc   : > { %3887 = vmatprep.subr.bf16.mxu0 %v6409_v10  ;;  %3928 = vmatprep.subr.bf16.mxu1 %v6412_v12  ;;  %v6533_v10 = vld [vmem:[#allocation8 + $0x360] ss:$16 sps:$4 sm:$0xff]   ;;  %v6535_v12 = vld [vmem:[#allocation8 + $0x364] ss:$16 sps:$4 sm:$0xff]  }
 0x5bf   : > { %3888 = vmatpush2.bf16.msra.mxu0 %v6407_v15  ;;  %3929 = vmatpush2.bf16.msra.mxu1 %v6410_v16  ;;  %v6466_v15 = vld [vmem:[#allocation8 + $0xec] ss:$16 sps:$4 sm:$0xff]   ;;  %v6539_v16 = vld [vmem:[#allocation8 + $0x340] ss:$16 sps:$4 sm:$0xff]  }
 0x5c0   : > { %4737 = vmatprep.subr.bf16.mxu0 %v6415_v17  ;;  %4778 = vmatprep.subr.bf16.mxu1 %v6463_v28  ;;  %v6541_v17 = vld [vmem:[#allocation8 + $0x344] ss:$16 sps:$4 sm:$0xff]  }
 0x5c2   : > { %3890 = vmatmul.mubr.bf16.vlgmr.msra.gmra.mxu0 %v7355_v13  ;;  %3931 = vmatmul.mubr.bf16.vlgmr.msra.gmra.mxu1 %v7357_v14  ;;  %v6425_v13 = vld [vmem:[#allocation8 + $0x60] ss:$16 sps:$4 sm:$0xff]   ;;  %v6469_v14 = vld [vmem:[#allocation8 + $0x2c4] ss:$16 sps:$4 sm:$0xff]  }
 0x5c3   : > { %4738 = vmatpush1.bf16.msra.mxu0 %v6413_v18  ;;  %4779 = vmatpush1.bf16.msra.mxu1 %v6461_v27  ;;  %v6547_v18 = vld [vmem:[#allocation8 + $0x324] ss:$16 sps:$4 sm:$0xff]  }
 0x5c4   : > { %4739 = vmatprep.subr.bf16.mxu0 %v6418_v20  ;;  %4780 = vmatprep.subr.bf16.mxu1 %v6469_v14  ;;  %v6545_v20 = vld [vmem:[#allocation8 + $0x320] ss:$16 sps:$4 sm:$0xff]  }
 0x5c7   : > { %4740 = vmatpush1.bf16.msra.mxu0 %v6416_v21  ;;  %4781 = vmatpush1.bf16.msra.mxu1 %v6467_v25  ;;  %v6553_v21 = vld [vmem:[#allocation8 + $0x304] ss:$16 sps:$4 sm:$0xff]  }
 0x5c8   : > { %4741 = vmatprep.subr.bf16.mxu0 %v6421_v23  ;;  %4782 = vmatprep.subr.bf16.mxu1 %v6475_v51  ;;  %v6551_v23 = vld [vmem:[#allocation8 + $0x300] ss:$16 sps:$4 sm:$0xff]  }
 0x5cb   : > { %4742 = vmatpush1.bf16.msra.mxu0 %v6419_v24  ;;  %4783 = vmatpush1.bf16.msra.mxu1 %v6473_v31  ;;  %v6559_v24 = vld [vmem:[#allocation8 + $0x2ec] ss:$16 sps:$4 sm:$0xff]  }
 0x5cc   : > { %4743 = vmatprep.subr.bf16.mxu0 %v6424_v62  ;;  %4784 = vmatprep.subr.bf16.mxu1 %v6481_v37  ;;  %v7366_v62 = vld [vmem:[%s7538_s8] sm:$0xf] }
 0x5cd   : > { %v3762_v27 = vrot.slane %v7366_v62, %v7063_v38 }
 0x5cf   : > { %4744 = vmatpush1.bf16.msra.mxu0 %v6422_v26  ;;  %4785 = vmatpush1.bf16.msra.mxu1 %v6479_v36  ;;  %v3758_v26 = vrot.slane %v7366_v62, %v7057_v35 }
 0x5d0   : > { %4745 = vmatprep.subr.bf16.mxu0 %v6427_v22  ;;  %4786 = vmatprep.subr.bf16.mxu1 %v6487_v45 }
 0x5d3   : > { %4746 = vmatpush1.bf16.msra.mxu0 %v6425_v13  ;;  %4787 = vmatpush1.bf16.msra.mxu1 %v6485_v44  ;;  %v6464_v44 = vld [vmem:[#allocation8 + $0xe8] ss:$16 sps:$4 sm:$0xff]  }
 0x5d4   : > { %4747 = vmatprep.subr.bf16.mxu0 %v6430_v29  ;;  %4788 = vmatprep.subr.bf16.mxu1 %v6493_v49  ;;  %v6476_v49 = vld [vmem:[#allocation8 + $0xa8] ss:$16 sps:$4 sm:$0xff]  }
 0x5d7   : > { %4748 = vmatpush1.bf16.msra.mxu0 %v6428_v30  ;;  %4789 = vmatpush1.bf16.msra.mxu1 %v6491_v48  ;;  %v6478_v48 = vld [vmem:[#allocation8 + $0xac] ss:$16 sps:$4 sm:$0xff]  }
 0x5d8   : > { %4749 = vmatprep.subr.bf16.mxu0 %v6433_v11  ;;  %4790 = vmatprep.subr.bf16.mxu1 %v6499_v55  ;;  %v6488_v55 = vld [vmem:[#allocation8 + $0x68] ss:$16 sps:$4 sm:$0xff]  }
 0x5db   : > { %4750 = vmatpush1.bf16.msra.mxu0 %v6431_v32  ;;  %4791 = vmatpush1.bf16.msra.mxu1 %v6497_v0  ;;  %v6490_v0 = vld [vmem:[#allocation8 + $0x6c] ss:$16 sps:$4 sm:$0xff]  }
 0x5dc   : > { %4751 = vmatprep.subr.bf16.mxu0 %v6436_v41  ;;  %4792 = vmatprep.subr.bf16.mxu1 %v6505_v19  ;;  %v6500_v19 = vld [vmem:[#allocation8 + $0x28] ss:$16 sps:$4 sm:$0xff]  }
 0x5df   : > { %4752 = vmatpush1.bf16.msra.mxu0 %v6434_v42  ;;  %4793 = vmatpush1.bf16.msra.mxu1 %v6503_v57  ;;  %v6502_v57 = vld [vmem:[#allocation8 + $0x2c] ss:$16 sps:$4 sm:$0xff]  }
 0x5e0   : > { %4753 = vmatprep.subr.bf16.mxu0 %v6439_v46  ;;  %4794 = vmatprep.subr.bf16.mxu1 %v6511_v58  ;;  %v6472_v46 = vld [vmem:[#allocation8 + $0xcc] ss:$16 sps:$4 sm:$0xff]   ;;  %v6512_v58 = vld [vmem:[#allocation8 + $0x1e8] ss:$16 sps:$4 sm:$0xff]  }
 0x5e3   : > { %4754 = vmatpush2.bf16.msra.mxu0 %v6437_v47  ;;  %4795 = vmatpush2.bf16.msra.mxu1 %v6509_v61  ;;  %v6470_v47 = vld [vmem:[#allocation8 + $0xc8] ss:$16 sps:$4 sm:$0xff]   ;;  %v6514_v61 = vld [vmem:[#allocation8 + $0x1ec] ss:$16 sps:$4 sm:$0xff]  }
 0x5e4   : > { %4755 = vmatprep.subr.bf16.mxu0 %v6442_v50  ;;  %4796 = vmatprep.subr.bf16.mxu1 %v6517_v63  ;;  %v6484_v50 = vld [vmem:[#allocation8 + $0x8c] ss:$16 sps:$4 sm:$0xff]   ;;  %v6524_v63 = vld [vmem:[#allocation8 + $0x1a8] ss:$16 sps:$4 sm:$0xff]  }
 0x5e7   : > { %4756 = vmatpush2.bf16.msra.mxu0 %v6440_v54  ;;  %4797 = vmatpush2.bf16.msra.mxu1 %v6515_v33  ;;  %v6482_v54 = vld [vmem:[#allocation8 + $0x88] ss:$16 sps:$4 sm:$0xff]   ;;  %v6526_v33 = vld [vmem:[#allocation8 + $0x1ac] ss:$16 sps:$4 sm:$0xff]  }
 0x5e8   : > { %4757 = vmatprep.subr.bf16.mxu0 %v6445_v56  ;;  %4798 = vmatprep.subr.bf16.mxu1 %v6523_v3  ;;  %v6496_v56 = vld [vmem:[#allocation8 + $0x4c] ss:$16 sps:$4 sm:$0xff]   ;;  %v6536_v3 = vld [vmem:[#allocation8 + $0x168] ss:$16 sps:$4 sm:$0xff]  }
 0x5eb   : > { %4758 = vmatpush2.bf16.msra.mxu0 %v6443_v53  ;;  %4799 = vmatpush2.bf16.msra.mxu1 %v6521_v2  ;;  %v6494_v53 = vld [vmem:[#allocation8 + $0x48] ss:$16 sps:$4 sm:$0xff]   ;;  %v6538_v2 = vld [vmem:[#allocation8 + $0x16c] ss:$16 sps:$4 sm:$0xff]  }
 0x5ec   : > { %4759 = vmatprep.subr.bf16.mxu0 %v6448_v59  ;;  %4800 = vmatprep.subr.bf16.mxu1 %v6529_v5  ;;  %v6508_v59 = vld [vmem:[#allocation8 + $0xc] ss:$16 sps:$4 sm:$0xff]  }
 0x5ed   : > { %v6550_v5 = vld [vmem:[#allocation8 + $0x12c] ss:$16 sps:$4 sm:$0xff]  }
 0x5ef   : > { %4760 = vmatpush2.bf16.msra.mxu0 %v6446_v60  ;;  %4801 = vmatpush2.bf16.msra.mxu1 %v6527_v40  ;;  %v6506_v60 = vld [vmem:[#allocation8 + $0x8] ss:$16 sps:$4 sm:$0xff]  }
 0x5f0   : > { %4761 = vmatprep.subr.bf16.mxu0 %v6451_v43  ;;  %4802 = vmatprep.subr.bf16.mxu1 %v6535_v12  ;;  %v6520_v43 = vld [vmem:[#allocation8 + $0x1cc] ss:$16 sps:$4 sm:$0xff]   ;;  %v6542_v40 = vld [vmem:[#allocation8 + $0x148] ss:$16 sps:$4 sm:$0xff]  }
 0x5f3   : > { %4762 = vmatpush2.bf16.msra.mxu0 %v6449_v52  ;;  %4803 = vmatpush2.bf16.msra.mxu1 %v6533_v10  ;;  %v6518_v52 = vld [vmem:[#allocation8 + $0x1c8] ss:$16 sps:$4 sm:$0xff]  }
 0x5f4   : > { %4763 = vmatprep.subr.bf16.mxu0 %v6454_v34  ;;  %4804 = vmatprep.subr.bf16.mxu1 %v6541_v17  ;;  %v6532_v34 = vld [vmem:[#allocation8 + $0x18c] ss:$16 sps:$4 sm:$0xff]  }
 0x5f7   : > { %4764 = vmatpush2.bf16.msra.mxu0 %v6452_v1  ;;  %4805 = vmatpush2.bf16.msra.mxu1 %v6539_v16  ;;  %v6530_v1 = vld [vmem:[#allocation8 + $0x188] ss:$16 sps:$4 sm:$0xff]  }
 0x5f8   : > { %4765 = vmatprep.subr.bf16.mxu0 %v6457_v39  ;;  %4806 = vmatprep.subr.bf16.mxu1 %v6547_v18  ;;  %v6544_v39 = vld [vmem:[#allocation8 + $0x14c] ss:$16 sps:$4 sm:$0xff]  }
 0x5f9   : > { %v6556_v18 = vld [vmem:[#allocation8 + $0x10c] ss:$16 sps:$4 sm:$0xff]  }
 0x5fb   : > { %4766 = vmatpush2.bf16.msra.mxu0 %v6455_v4  ;;  %4807 = vmatpush2.bf16.msra.mxu1 %v6545_v20  ;;  %v3766_v4 = vrot.slane %v7366_v62, %v7337_v7 }
 0x5fc   : > { %4767 = vmatprep.subr.bf16.mxu0 %v6460_v6  ;;  %4808 = vmatprep.subr.bf16.mxu1 %v6553_v21  ;;  %v3770_v6 = vrot.slane %v7366_v62, %v7343_v9 }
 0x5ff   : > { %4768 = vmatpush2.bf16.msra.mxu0 %v6458_v8  ;;  %4809 = vmatpush2.bf16.msra.mxu1 %v6551_v23 }
 0x600   : > { %4819 = vmatprep.subr.bf16.mxu0 %v6466_v15  ;;  %4860 = vmatprep.subr.bf16.mxu1 %v6559_v24  ;;  %v6548_v15 = vld [vmem:[#allocation8 + $0x128] ss:$16 sps:$4 sm:$0xff]  }
 0x642   : > { %v3809_v28 = vpop.f32.mrf.mxu0  ;;  %v3850_v22 = vpop.f32.mrf.mxu1 }
 0x643   : > { %v3810_v13 = vadd.f32 %v3809_v28, %v3758_v26 }
 0x644   : > { %v3811_v25 = vpop.f32.mrf.mxu0  ;;  %v3852_v14 = vpop.f32.mrf.mxu1 }
 0x645   : > { %v3851_v29 = vadd.f32 %v3850_v22, %v3810_v13  ;;  %v3812_v30 = vadd.f32 %v3811_v25, %v3762_v27  ;;  %v6554_v27 = vld [vmem:[#allocation8 + $0x108] ss:$16 sps:$4 sm:$0xff]  }
 0x646   : > { %v3813_v31 = vpop.f32.mrf.mxu0  ;;  %v3854_v51 = vpop.f32.mrf.mxu1 }
 0x647   : > { %v3853_v11 = vadd.f32 %v3852_v14, %v3812_v30  ;;  %v3939_v32 = vmax.f32 %v3851_v29, 0.0  ;;  %v6557_v14 = vld [vmem:[#allocation8 + $0x2e8] ss:$16 sps:$4 sm:$0xff]   ;;  %v6562_v30 = vld [vmem:[#allocation8 + $0x2cc] ss:$16 sps:$4 sm:$0xff]  }
 0x648   : > { %v3814_v36 = vpop.f32.mrf.mxu0  ;;  %v3855_v37 = vpop.f32.mrf.mxu1  ;;  %v6560_v31 = vld [vmem:[#allocation8 + $0x2c8] ss:$16 sps:$4 sm:$0xff]   ;;  %v6565_v51 = vld [vmem:[#allocation8 + $0x2ac] ss:$16 sps:$4 sm:$0xff]  }
 0x649   : > { %v3940_v41 = vmax.f32 %v3853_v11, 0.0  ;;  %v7372_v45 = vpack.c.bf16 %v3939_v32, %v3939_v32  ;;  %v6563_v11 = vld [vmem:[#allocation8 + $0x2a8] ss:$16 sps:$4 sm:$0xff]   ;;  %v6568_v32 = vld [vmem:[#allocation8 + $0x28c] ss:$16 sps:$4 sm:$0xff]  }
 0x64a   : > { %v6605_v36 = vld [vmem:[%s7541_s11 + $0x78] sm:$0xff]  }
 0x64b   : > { %v3944_v42 = vpack.c.bf16 %v3940_v41, %v3940_v41  ;;  %v6606_v37 = vld [vmem:[%s7541_s11 + $0x38] sm:$0xff]   ;;  %v6607_v41 = vld [vmem:[%s7541_s11 + $0x70] sm:$0xff]  }
 0x64d   : > { %4769 = vmatprep.mubr.bf16.mxu0 %v3944_v42 }
 0x64e   : > { %4770 = vmatmul.mubr.bf16.vlgmr.msra.gmra.mxu0 %v7372_v45 }
 0x64f   : > { %4820 = vmatpush1.bf16.msra.mxu0 %v6464_v44  ;;  %4851 = vmatprep.mubr.bf16.mxu0 %v3944_v42  ;;  %v6566_v42 = vld [vmem:[#allocation8 + $0x288] ss:$16 sps:$4 sm:$0xff]   ;;  %v6608_v44 = vld [vmem:[%s7541_s11 + $0x30] sm:$0xff]  }
 0x650   : > { %4821 = vmatprep.subr.bf16.mxu0 %v6472_v46  ;;  %v6609_v46 = vld [vmem:[%s7541_s11 + $0x68] sm:$0xff]  }
 0x653   : > { %4822 = vmatpush1.bf16.msra.mxu0 %v6470_v47  ;;  %v6569_v47 = vld [vmem:[#allocation8 + $0x268] ss:$16 sps:$4 sm:$0xff]  }
 0x654   : > { %4823 = vmatprep.subr.bf16.mxu0 %v6478_v48  ;;  %v6610_v48 = vld [vmem:[%s7541_s11 + $0x28] sm:$0xff]  }
 0x657   : > { %4824 = vmatpush1.bf16.msra.mxu0 %v6476_v49  ;;  %v6574_v49 = vld [vmem:[#allocation8 + $0x24c] ss:$16 sps:$4 sm:$0xff]  }
 0x658   : > { %4825 = vmatprep.subr.bf16.mxu0 %v6484_v50  ;;  %v6611_v50 = vld [vmem:[%s7541_s11 + $0x60] sm:$0xff]  }
 0x65b   : > { %4826 = vmatpush1.bf16.msra.mxu0 %v6482_v54  ;;  %v6572_v54 = vld [vmem:[#allocation8 + $0x248] ss:$16 sps:$4 sm:$0xff]  }
 0x65c   : > { %4827 = vmatprep.subr.bf16.mxu0 %v6490_v0  ;;  %v6612_v0 = vld [vmem:[%s7541_s11 + $0x20] sm:$0xff]  }
 0x65f   : > { %4828 = vmatpush1.bf16.msra.mxu0 %v6488_v55  ;;  %v6577_v55 = vld [vmem:[#allocation8 + $0x22c] ss:$16 sps:$4 sm:$0xff]  }
 0x660   : > { %4829 = vmatprep.subr.bf16.mxu0 %v6496_v56  ;;  %v6613_v56 = vld [vmem:[%s7541_s11 + $0x58] sm:$0xff]  }
 0x663   : > { %4830 = vmatpush1.bf16.msra.mxu0 %v6494_v53  ;;  %v6575_v53 = vld [vmem:[#allocation8 + $0x228] ss:$16 sps:$4 sm:$0xff]  }
 0x664   : > { %4831 = vmatprep.subr.bf16.mxu0 %v6502_v57  ;;  %v6614_v57 = vld [vmem:[%s7541_s11 + $0x18] sm:$0xff]  }
 0x667   : > { %4832 = vmatpush1.bf16.msra.mxu0 %v6500_v19  ;;  %v6580_v19 = vld [vmem:[#allocation8 + $0x20c] ss:$16 sps:$4 sm:$0xff]  }
 0x668   : > { %4833 = vmatprep.subr.bf16.mxu0 %v6508_v59  ;;  %v6615_v59 = vld [vmem:[%s7541_s11 + $0x50] sm:$0xff]  }
 0x66b   : > { %4834 = vmatpush1.bf16.msra.mxu0 %v6506_v60  ;;  %v6578_v60 = vld [vmem:[#allocation8 + $0x208] ss:$16 sps:$4 sm:$0xff]  }
 0x66c   : > { %4835 = vmatprep.subr.bf16.mxu0 %v6514_v61  ;;  %v6616_v61 = vld [vmem:[%s7541_s11 + $0x10] sm:$0xff]  }
 0x66f   : > { %4836 = vmatpush2.bf16.msra.mxu0 %v6512_v58  ;;  %v6583_v58 = vld [vmem:[#allocation8 + $0x3ec] ss:$16 sps:$4 sm:$0xff]  }
 0x670   : > { %4837 = vmatprep.subr.bf16.mxu0 %v6520_v43  ;;  %v6581_v43 = vld [vmem:[#allocation8 + $0x3e8] ss:$16 sps:$4 sm:$0xff]  }
 0x673   : > { %4838 = vmatpush2.bf16.msra.mxu0 %v6518_v52  ;;  %v6586_v52 = vld [vmem:[#allocation8 + $0x3cc] ss:$16 sps:$4 sm:$0xff]  }
 0x674   : > { %4839 = vmatprep.subr.bf16.mxu0 %v6526_v33  ;;  %v6584_v33 = vld [vmem:[#allocation8 + $0x3c8] ss:$16 sps:$4 sm:$0xff]  }
 0x677   : > { %4840 = vmatpush2.bf16.msra.mxu0 %v6524_v63  ;;  %v6589_v63 = vld [vmem:[#allocation8 + $0x3ac] ss:$16 sps:$4 sm:$0xff]  }
 0x678   : > { %4841 = vmatprep.subr.bf16.mxu0 %v6532_v34  ;;  %v6587_v34 = vld [vmem:[#allocation8 + $0x3a8] ss:$16 sps:$4 sm:$0xff]  }
 0x67b   : > { %4842 = vmatpush2.bf16.msra.mxu0 %v6530_v1  ;;  %v6592_v1 = vld [vmem:[#allocation8 + $0x38c] ss:$16 sps:$4 sm:$0xff]  }
 0x67c   : > { %4843 = vmatprep.subr.bf16.mxu0 %v6538_v2  ;;  %v6590_v2 = vld [vmem:[#allocation8 + $0x388] ss:$16 sps:$4 sm:$0xff]  }
 0x67f   : > { %4844 = vmatpush2.bf16.msra.mxu0 %v6536_v3  ;;  %v6595_v3 = vld [vmem:[#allocation8 + $0x36c] ss:$16 sps:$4 sm:$0xff]  }
 0x680   : > { %4845 = vmatprep.subr.bf16.mxu0 %v6544_v39  ;;  %v6593_v39 = vld [vmem:[#allocation8 + $0x368] ss:$16 sps:$4 sm:$0xff]  }
 0x682   : > { %v3891_v8 = vpop.f32.mrf.mxu0  ;;  %v3932_v10 = vpop.f32.mrf.mxu1 }
 0x683   : > { %v3892_v12 = vadd.f32 %v3891_v8, %v3766_v4  ;;  %4846 = vmatpush2.bf16.msra.mxu0 %v6542_v40  ;;  %v6598_v4 = vld [vmem:[#allocation8 + $0x34c] ss:$16 sps:$4 sm:$0xff]   ;;  %v6596_v40 = vld [vmem:[#allocation8 + $0x348] ss:$16 sps:$4 sm:$0xff]  }
 0x684   : > { %v3893_v16 = vpop.f32.mrf.mxu0  ;;  %v3934_v17 = vpop.f32.mrf.mxu1  ;;  %4847 = vmatprep.subr.bf16.mxu0 %v6550_v5  ;;  %v6601_v5 = vld [vmem:[#allocation8 + $0x32c] ss:$16 sps:$4 sm:$0xff]  }
 0x685   : > { %v3933_v20 = vadd.f32 %v3932_v10, %v3892_v12  ;;  %v3894_v21 = vadd.f32 %v3893_v16, %v3770_v6  ;;  %v6599_v6 = vld [vmem:[#allocation8 + $0x328] ss:$16 sps:$4 sm:$0xff]   ;;  %v6604_v8 = vld [vmem:[#allocation8 + $0x30c] ss:$16 sps:$4 sm:$0xff]  }
 0x686   : > { %v3895_v23 = vpop.f32.mrf.mxu0  ;;  %v3936_v24 = vpop.f32.mrf.mxu1  ;;  %v6602_v10 = vld [vmem:[#allocation8 + $0x308] ss:$16 sps:$4 sm:$0xff]   ;;  %v6619_v16 = vld [vmem:[%s7541_s11 + $0x40] sm:$0xff]  }
 0x687   : > { %v3935_v26 = vadd.f32 %v3934_v17, %v3894_v21  ;;  %4848 = vmatpush2.bf16.msra.mxu0 %v6548_v15  ;;  %v3941_v28 = vmax.f32 %v3933_v20, 0.0  ;;  %v6617_v12 = vld [vmem:[%s7541_s11 + $0x48] sm:$0xff]   ;;  %v6620_v17 = vld [vmem:[%s7541_s11] sm:$0xff]   ;;  %v6622_v20 = vld [vmem:[%s7541_s11 + $0xb8] sm:$0xff]  }
 0x688   : > { %v3896_v22 = vpop.f32.mrf.mxu0  ;;  %v3937_v13 = vpop.f32.mrf.mxu1  ;;  %4849 = vmatprep.subr.bf16.mxu0 %v6556_v18  ;;  %v6618_v15 = vld [vmem:[%s7541_s11 + $0x8] sm:$0xff]   ;;  %v6621_v18 = vld [vmem:[%s7541_s11 + $0xf8] sm:$0xff]   ;;  %v6623_v21 = vld [vmem:[%s7541_s11 + $0xf0] sm:$0xff]  }
 0x689   : > { %v3942_v62 = vmax.f32 %v3935_v26, 0.0  ;;  %v7379_v29 = vpack.c.bf16 %v3941_v28, %v3941_v28  ;;  %v6624_v23 = vld [vmem:[%s7541_s11 + $0xb0] sm:$0xff]   ;;  %v6625_v24 = vld [vmem:[%s7541_s11 + $0xe8] sm:$0xff]   ;;  %v6628_v28 = vld [vmem:[%s7541_s11 + $0xa0] sm:$0xff]  }
 0x68a   : > { %v6626_v26 = vld [vmem:[%s7541_s11 + $0xa8] sm:$0xff]   ;;  %v6629_v22 = vld [vmem:[%s7541_s11 + $0xd8] sm:$0xff]  }
 0x68b   : > { %v3946_v25 = vpack.c.bf16 %v3942_v62, %v3942_v62  ;;  %4850 = vmatpush2.bf16.msra.mxu0 %v6554_v27  ;;  %v6627_v27 = vld [vmem:[%s7541_s11 + $0xe0] sm:$0xff]   ;;  %v6630_v13 = vld [vmem:[%s7541_s11 + $0x98] sm:$0xff]   ;;  %v6631_v62 = vld [vmem:[%s7541_s11 + $0xd0] sm:$0xff]  }
 0x68c   : > { %5997 = vmatprep.subr.bf16.mxu0 %v6605_v36 }
 0x68d   : > { %4810 = vmatprep.mubr.bf16.mxu1 %v3946_v25 }
 0x68e   : > { %4811 = vmatmul.mubr.bf16.vlgmr.msra.gmra.mxu1 %v7379_v29  ;;  %4852 = vmatmul.mubr.bf16.vlgmr.msra.gmra.mxu0 %v7372_v45  ;;  %v6571_v45 = vld [vmem:[#allocation8 + $0x26c] ss:$16 sps:$4 sm:$0xff]  }
 0x68f   : > { %4861 = vmatpush1.bf16.msra.mxu1 %v6557_v14  ;;  %4892 = vmatprep.mubr.bf16.mxu1 %v3946_v25  ;;  %v6632_v25 = vld [vmem:[%s7541_s11 + $0x90] sm:$0xff]  }
 0x690   : > { %4862 = vmatprep.subr.bf16.mxu1 %v6562_v30  ;;  %5998 = vmatpush3.bf16.msra.mxu0 %v6606_v37  ;;  %v6634_v30 = vld [vmem:[%s7541_s11 + $0x88] sm:$0xff]   ;;  %v4075_v37 = vld [vmem:[%s7540_s10] sm:$0xf] }
 0x691   : > { %5999 = vmatprep.subr.bf16.mxu0 %v6607_v41  ;;  %v4720_v41 = vrot.slane %v4075_v37, %v7057_v35  ;;  %v4728_v35 = vrot.slane %v4075_v37, %v7337_v7 }
 0x693   : > { %4863 = vmatpush1.bf16.msra.mxu1 %v6560_v31 }
 0x694   : > { %4864 = vmatprep.subr.bf16.mxu1 %v6565_v51  ;;  %6000 = vmatpush3.bf16.msra.mxu0 %v6608_v44 }
 0x695   : > { %6001 = vmatprep.subr.bf16.mxu0 %v6609_v46 }
 0x697   : > { %4865 = vmatpush1.bf16.msra.mxu1 %v6563_v11  ;;  %v6635_v11 = vld [vmem:[%s7541_s11 + $0xc0] sm:$0xff]  }
 0x698   : > { %4866 = vmatprep.subr.bf16.mxu1 %v6568_v32  ;;  %6002 = vmatpush3.bf16.msra.mxu0 %v6610_v48  ;;  %v6636_v32 = vld [vmem:[%s7541_s11 + $0x80] sm:$0xff]  }
 0x699   : > { %6003 = vmatprep.subr.bf16.mxu0 %v6611_v50 }
 0x69b   : > { %4867 = vmatpush1.bf16.msra.mxu1 %v6566_v42  ;;  %v4724_v42 = vrot.slane %v4075_v37, %v7063_v38  ;;  %v4732_v38 = vrot.slane %v4075_v37, %v7343_v9 }
 0x69c   : > { %4868 = vmatprep.subr.bf16.mxu1 %v6571_v45  ;;  %6004 = vmatpush3.bf16.msra.mxu0 %v6612_v0 }
 0x69d   : > { %6005 = vmatprep.subr.bf16.mxu0 %v6613_v56 }
 0x69f   : > { %4869 = vmatpush1.bf16.msra.mxu1 %v6569_v47 }
 0x6a0   : > { %4870 = vmatprep.subr.bf16.mxu1 %v6574_v49  ;;  %6006 = vmatpush3.bf16.msra.mxu0 %v6614_v57 }
 0x6a1   : > { %6007 = vmatprep.subr.bf16.mxu0 %v6615_v59 }
 0x6a3   : > { %4871 = vmatpush1.bf16.msra.mxu1 %v6572_v54 }
 0x6a4   : > { %4872 = vmatprep.subr.bf16.mxu1 %v6577_v55  ;;  %6008 = vmatpush3.bf16.msra.mxu0 %v6616_v61 }
 0x6a5   : > { %6009 = vmatprep.subr.bf16.mxu0 %v6617_v12 }
 0x6a7   : > { %4873 = vmatpush1.bf16.msra.mxu1 %v6575_v53 }
 0x6a8   : > { %4874 = vmatprep.subr.bf16.mxu1 %v6580_v19  ;;  %6010 = vmatpush3.bf16.msra.mxu0 %v6618_v15 }
 0x6a9   : > { %6011 = vmatprep.subr.bf16.mxu0 %v6619_v16 }
 0x6ab   : > { %4875 = vmatpush1.bf16.msra.mxu1 %v6578_v60 }
 0x6ac   : > { %4876 = vmatprep.subr.bf16.mxu1 %v6583_v58  ;;  %6012 = vmatpush3.bf16.msra.mxu0 %v6620_v17 }
 0x6af   : > { %4877 = vmatpush2.bf16.msra.mxu1 %v6581_v43 }
 0x6b0   : > { %4878 = vmatprep.subr.bf16.mxu1 %v6586_v52 }
 0x6b3   : > { %4879 = vmatpush2.bf16.msra.mxu1 %v6584_v33 }
 0x6b4   : > { %4880 = vmatprep.subr.bf16.mxu1 %v6589_v63 }
 0x6b7   : > { %4881 = vmatpush2.bf16.msra.mxu1 %v6587_v34 }
 0x6b8   : > { %4882 = vmatprep.subr.bf16.mxu1 %v6592_v1 }
 0x6bb   : > { %4883 = vmatpush2.bf16.msra.mxu1 %v6590_v2 }
 0x6bc   : > { %4884 = vmatprep.subr.bf16.mxu1 %v6595_v3 }
 0x6bf   : > { %4885 = vmatpush2.bf16.msra.mxu1 %v6593_v39 }
 0x6c0   : > { %4886 = vmatprep.subr.bf16.mxu1 %v6598_v4 }
 0x6c3   : > { %4887 = vmatpush2.bf16.msra.mxu1 %v6596_v40 }
 0x6c4   : > { %4888 = vmatprep.subr.bf16.mxu1 %v6601_v5 }
 0x6c7   : > { %4889 = vmatpush2.bf16.msra.mxu1 %v6599_v6 }
 0x6c8   : > { %4890 = vmatprep.subr.bf16.mxu1 %v6604_v8  ;;  %v4973_v8 = vld [vmem:[%s7542_s12] sm:$0x1] }
 0x6cb   : > { %4891 = vmatpush2.bf16.msra.mxu1 %v6602_v10 }
 0x6cc   : > { %6019 = vmatprep.subr.bf16.mxu1 %v6621_v18 }
 0x6ce   : > { %4893 = vmatmul.mubr.bf16.vlgmr.msra.gmra.mxu1 %v7379_v29  ;;  %v6633_v29 = vld [vmem:[%s7541_s11 + $0xc8] sm:$0xff]  }
 0x6cf   : > { %6020 = vmatpush3.bf16.msra.mxu1 %v6622_v20 }
 0x6d0   : > { %6021 = vmatprep.subr.bf16.mxu1 %v6623_v21 }
 0x6d3   : > { %6022 = vmatpush3.bf16.msra.mxu1 %v6624_v23 }
 0x6d4   : > { %6023 = vmatprep.subr.bf16.mxu1 %v6625_v24 }
 0x6d7   : > { %6024 = vmatpush3.bf16.msra.mxu1 %v6626_v26 }
 0x6d8   : > { %6025 = vmatprep.subr.bf16.mxu1 %v6627_v27 }
 0x6db   : > { %6026 = vmatpush3.bf16.msra.mxu1 %v6628_v28 }
 0x6dc   : > { %6027 = vmatprep.subr.bf16.mxu1 %v6629_v22 }
 0x6df   : > { %6028 = vmatpush3.bf16.msra.mxu1 %v6630_v13 }
 0x6e0   : > { %6029 = vmatprep.subr.bf16.mxu1 %v6631_v62 }
 0x6e3   : > { %6030 = vmatpush3.bf16.msra.mxu1 %v6632_v25 }
 0x6e4   : > { %6031 = vmatprep.subr.bf16.mxu1 %v6633_v29 }
 0x6e7   : > { %6032 = vmatpush3.bf16.msra.mxu1 %v6634_v30 }
 0x6e8   : > { %6033 = vmatprep.subr.bf16.mxu1 %v6635_v11 }
 0x6eb   : > { %6034 = vmatpush3.bf16.msra.mxu1 %v6636_v32 }
 0x70e   : > { %v4771_v14 = vpop.f32.mrf.mxu0 }
 0x70f   : > { %v4772_v44 = vadd.f32 %v4771_v14, %v4720_v41 }
 0x710   : > { %v4773_v31 = vpop.f32.mrf.mxu0 }
 0x711   : > { %v4774_v47 = vadd.f32 %v4773_v31, %v4724_v42 }
 0x712   : > { %v4775_v51 = vpop.f32.mrf.mxu0 }
 0x714   : > { %v4776_v36 = vpop.f32.mrf.mxu0 }
 0x74e   : > { %v4812_v45 = vpop.f32.mrf.mxu1  ;;  %v4853_v46 = vpop.f32.mrf.mxu0 }
 0x74f   : > { %v4813_v48 = vadd.f32 %v4812_v45, %v4772_v44  ;;  %v4854_v61 = vadd.f32 %v4853_v46, %v4728_v35 }
 0x750   : > { %v4814_v49 = vpop.f32.mrf.mxu1  ;;  %v4855_v50 = vpop.f32.mrf.mxu0 }
 0x751   : > { %v4815_v54 = vadd.f32 %v4814_v49, %v4774_v47  ;;  %v4901_v0 = vmax.f32 %v4813_v48, 0.0  ;;  %v4856_v43 = vadd.f32 %v4855_v50, %v4732_v38 }
 0x752   : > { %v4816_v55 = vpop.f32.mrf.mxu1  ;;  %v4857_v56 = vpop.f32.mrf.mxu0 }
 0x753   : > { %v4902_v53 = vmax.f32 %v4815_v54, 0.0  ;;  %v4905_v60 = vpack.c.bf16 %v4901_v0, %v4901_v0 }
 0x754   : > { %v4817_v57 = vpop.f32.mrf.mxu1  ;;  %v4858_v19 = vpop.f32.mrf.mxu0 }
 0x755   : > { %v4906_v59 = vpack.c.bf16 %v4902_v53, %v4902_v53 }
 0x757   : > { %5198 = vmatprep.mubr.bf16.mxu0 %v4906_v59 }
 0x758   : > { %5199 = vmatmul.mubr.bf16.vlgmr.msra.gmra.mxu0 %v4905_v60 }
 0x78e   : > { %v4894_v58 = vpop.f32.mrf.mxu1 }
 0x78f   : > { %v4895_v52 = vadd.f32 %v4894_v58, %v4854_v61 }
 0x790   : > { %v4896_v33 = vpop.f32.mrf.mxu1 }
 0x791   : > { %v4897_v63 = vadd.f32 %v4896_v33, %v4856_v43  ;;  %v4903_v34 = vmax.f32 %v4895_v52, 0.0 }
 0x792   : > { %v4898_v1 = vpop.f32.mrf.mxu1 }
 0x793   : > { %v4904_v2 = vmax.f32 %v4897_v63, 0.0  ;;  %v4907_v4 = vpack.c.bf16 %v4903_v34, %v4903_v34 }
 0x794   : > { %v4899_v3 = vpop.f32.mrf.mxu1 }
 0x795   : > { %v4908_v39 = vpack.c.bf16 %v4904_v2, %v4904_v2 }
 0x797   : > { %5238 = vmatprep.mubr.bf16.mxu1 %v4908_v39 }
 0x798   : > { %5239 = vmatmul.mubr.bf16.vlgmr.msra.gmra.mxu1 %v4907_v4 }
 0x818   : > { %v6013_v40 = vpop.f32.mrf.mxu0 }
 0x81a   : > { %v6014_v7 = vpop.f32.mrf.mxu0 }
 0x81b   : > { %v6015_v6 = vadd.f32 %v6014_v7, %v6013_v40 }
 0x81c   : > { %v6016_v5 = vpop.f32.mrf.mxu0 }
 0x81d   : > { %v5201_v15 = vadd.f32 %v6015_v6, %v4973_v8 }
 0x81e   : > { %v6017_v9 = vpop.f32.mrf.mxu0 }
 0x858   : > { %v6035_v10 = vpop.f32.mrf.mxu1 }
 0x85a   : > { %v6036_v12 = vpop.f32.mrf.mxu1 }
 0x85b   : > { %v6037_v16 = vadd.f32 %v6036_v12, %v6035_v10 }
 0x85c   : > { %v6038_v17 = vpop.f32.mrf.mxu1 }
 0x85d   : > { %v5241_v18 = vadd.f32 %v6037_v16, %v5201_v15 }
 0x85e   : > { %v6039_v20 = vpop.f32.mrf.mxu1 }
 0x85f   : > { %5247 = vst.msk [vmem:[%s487_s27] sm:$0x1] %vm5246_vm13, %v5241_v18 }
 0x860   : > { %6754 = shalt.err (!%p6751_p8)
}
 0x861   : > { %s6755_s20 = scalar_lea.hbm %s7495_s14, 16  ;;  %s6759_s27 = scalar_lea.hbm %s7543_s13, 32 }
 0x862   : > { %p6756_p13 = scmp.ne.s32.totalorder %s7495_s14, %s6755_s20  ;;  %p6760_p6 = scmp.lt.s32.totalorder %s7495_s14, %s7543_s13 }
 0x863   : > { %p6761_p12 = scmp.lt.s32.totalorder %s6759_s27, %s6755_s20 }
 0x864   : > { %p6757_p11 = pnand %p6756_p13, %p7568_p1 }
 0x865   : > { %p6762_p10 = por %p6761_p12, %p6760_p6 }
 0x866   : > { %p6758_p0 = pneg %p6757_p11 }
 0x868   : > { %p6763_p9 = pnand %p6762_p10, %p6758_p0 }
 0x86a   : > { %6766 = shalt.err (!%p6763_p9)
}
 0x86b   : > { %6057 = dma.vmem_to_hbm [thread:$0]  (%p7568_p1), %s5262_s16, 16, %s7495_s14, %s5249_s22  }
 0x86c PF: > { %s7569_s19 = sld [smem:[#allocation18_spill]]  ;;  %p6084_p3 = scmp.ge.s32.totalorder %s6813_s28, 2 }
 0x86d   : > { %s5273_s29 = sand.u32 1, %s6801_s25  }
 0x86e   : > { %s5274_s21 = scalar_lea.sflag [#allocation4], %s5273_s29 }
 0x872   : > { %p7570_p5 = scmp.ne.s32.totalorder %s7569_s19, 0 }
 0x874   : > { %p6073_p2 = pnand %p6084_p3, %p7570_p5 }
 0x876   : > { %p6074_p4 = pneg %p6073_p2 }
 0x878   : > { %6796 = dma.done.wait (%p6074_p4), %s5274_s21, 16  }
 0x879   : > { %6798 = vsyncadd (%p6074_p4), %s5274_s21, 4294967280  ;;  %s7571_s28 = sld [smem:[#allocation16_spill]]  ;;  %s7574_s25 = smov %s6805_s26 }
 0x87a   : > { %s7572_s15 = sld [smem:[#allocation15_spill]] }
 0x87b   : > { %s7573_s27 = sld [smem:[#allocation17_spill]] }
 0x87f   : > { %p26_p7 = scmp.ge.s32.totalorder %s7571_s28, 4  }
 0x880   : > { %s7575_s26 = smov %s7572_s15 }
 0x881   :  { %28 = sbr.rel (!%p26_p7) target bundleno = 6 (0x6), region = 130 }
 0x886   :  { %5278 = vsyncpa [#allocation3], 1 }
 0x887   :  { %5280 = vsyncpa [#allocation3 + $0x1], 1 }
 0x888   :  { %5281 = vsyncpa [#allocation6], 1 }
 0x889   :  { %5282 = vsyncpa [#allocation9], 1 }
 0x88a   :  { %5283 = vsyncpa [#allocation4], 1 }
 0x88b   :  { %5285 = vsyncpa [#allocation4 + $0x1], 1 }

</bundles_post_ra>
